<compile_context>
chip_gen: v7x
topology: tpu7x:2x2x1
jax: 0.10.0
libtpu: 0.0.40
codegen_flags: <defaults>
</compile_context>

<pallas_src>
import jax
import jax.numpy as jnp
from jax.experimental import pallas as pl
from jax.experimental.pallas import tpu as pltpu

LN_EPS = 1e-5      # torch.nn.LayerNorm default eps
GEN_EPS = 1e-7     # GENConv message eps
NODE_TILE = 128    # node row padding granularity
LANE = 128         # TPU lane width
VMEM_LIMIT = 32 * 1024 * 1024


def _round_up(x, m):
    return ((x + m - 1) // m) * m


def _pick_head_tile(n_pad):
    for t in (1024, 512, 256, 128):
        if n_pad % t == 0:
            return t
    return n_pad


# --------------------------- Pallas kernels ---------------------------------

def _fused_layers_kernel(h0_ref, eemb_ref, src_ref, dst_ref,
                         gamma_ref, beta_ref, w_ref, wb_ref,
                         h_ref, gat_ref, sct_ref):
    """One grid step == one res+ layer:  h <- GENConv(relu(LN(h))) + h.

    The output block h_ref is revisited every step (constant block index on an
    'arbitrary' grid axis), so it doubles as the carried node state that stays
    resident in VMEM across all layers.  Per-layer params arrive via the
    layer-indexed BlockSpecs (gamma/beta/W/b).  The gather/scatter one-hot
    selectors are layer-invariant, so they are built once at layer 0 into bf16
    VMEM scratch and reused by all subsequent layers.
    """
    layer = pl.program_id(0)

    @pl.when(layer == 0)
    def _init():
        h_ref[...] = h0_ref[...]
        n_nodes = h0_ref.shape[0]
        # Gather selector onehot(src): (E, N).  Built in-register from the
        # int32 index vector; no dense matrix ever touches HBM.
        src = src_ref[...]                                          # (E, 1) i32
        n_edges = src.shape[0]
        col_ids = jax.lax.broadcasted_iota(jnp.int32, (n_edges, n_nodes), 1)
        gat_ref[...] = (col_ids == src).astype(jnp.bfloat16)        # (E, N)
        # Scatter selector onehot(dst)^T: (N, E).  Padded edges carry
        # dst == n_pad (out of range) so their column is all-zero.
        dst = dst_ref[...]                                          # (1, E) i32
        row_ids = jax.lax.broadcasted_iota(jnp.int32, (n_nodes, n_edges), 0)
        sct_ref[...] = (row_ids == dst).astype(jnp.bfloat16)        # (N, E)

    h = h_ref[...]                                                  # (N, H) f32

    # LayerNorm (torch biased-variance form) -> ReLU; dropout = identity (eval)
    mu = jnp.mean(h, axis=-1, keepdims=True)
    var = jnp.mean((h - mu) ** 2, axis=-1, keepdims=True)
    h1 = (h - mu) * jax.lax.rsqrt(var + LN_EPS) * gamma_ref[...] + beta_ref[...]
    h2 = jnp.maximum(h1, 0.0)
    h2_bf = h2.astype(jnp.bfloat16)

    # Gather x_j = h2[src] via the cached one-hot selector on the MXU.
    x_j = jnp.dot(gat_ref[...], h2_bf,
                  preferred_element_type=jnp.float32)               # (E, H)

    # GENConv message (aggr='add', msg_norm off, no learned t/p/y):
    msg = jnp.maximum(x_j + eemb_ref[...], 0.0) + GEN_EPS           # (E, H)

    # Scatter-add onto destination nodes via the cached selector.
    m = jnp.dot(sct_ref[...], msg.astype(jnp.bfloat16),
                preferred_element_type=jnp.float32)                 # (N, H)

    # GENConv MLP (mlp_layers=1 -> single Linear) on (x + aggregated msg),
    # then the res+ residual.
    conv = jnp.dot((h2 + m).astype(jnp.bfloat16), w_ref[...],
                   preferred_element_type=jnp.float32) + wb_ref[...]
    h_ref[...] = conv + h
    # TODO(synk): at real ogbn-proteins scale (N~130K, E~40M) the node state /
    # edges must additionally be tiled (node 'parallel' axis + edge 'arbitrary'
    # axis with a VMEM accumulator) and the row gather/scatter done via manual
    # DMA instead of in-register one-hot selectors.


def fused_res_plus_layers(h0, edge_emb, src_col, dst_row, gammas, betas, ws, bs):
    n, hdim = h0.shape
    e = edge_emb.shape[0]
    n_steps = ws.shape[0]                 # num_layers - 1 res+ layers
    return pl.pallas_call(
        _fused_layers_kernel,
        out_shape=jax.ShapeDtypeStruct((n, hdim), jnp.float32),
        grid=(n_steps,),
        in_specs=[
            pl.BlockSpec((n, hdim), lambda l: (0, 0)),              # h0       (DMA once)
            pl.BlockSpec((e, hdim), lambda l: (0, 0)),              # edge_emb (DMA once)
            pl.BlockSpec((e, 1), lambda l: (0, 0)),                 # src idx  (DMA once)
            pl.BlockSpec((1, e), lambda l: (0, 0)),                 # dst idx  (DMA once)
            pl.BlockSpec((None, 1, hdim), lambda l: (l, 0, 0)),     # gamma[layer]
            pl.BlockSpec((None, 1, hdim), lambda l: (l, 0, 0)),     # beta[layer]
            pl.BlockSpec((None, hdim, hdim), lambda l: (l, 0, 0)),  # W[layer] (bf16)
            pl.BlockSpec((None, 1, hdim), lambda l: (l, 0, 0)),     # b[layer]
        ],
        out_specs=pl.BlockSpec((n, hdim), lambda l: (0, 0)),        # carried h (resident)
        scratch_shapes=[
            pltpu.VMEM((e, n), jnp.bfloat16),                       # gather selector
            pltpu.VMEM((n, e), jnp.bfloat16),                       # scatter selector
        ],
        compiler_params=pltpu.CompilerParams(
            dimension_semantics=("arbitrary",),
            vmem_limit_bytes=VMEM_LIMIT),
    )(h0, edge_emb, src_col, dst_row, gammas, betas, ws, bs)


def _final_kernel(h_ref, gamma_ref, beta_ref, w_ref, b_ref, o_ref):
    """Per node-tile: LN -> ReLU -> node_pred_linear (lane-padded output)."""
    h = h_ref[...]
    mu = jnp.mean(h, axis=-1, keepdims=True)
    var = jnp.mean((h - mu) ** 2, axis=-1, keepdims=True)
    h1 = (h - mu) * jax.lax.rsqrt(var + LN_EPS) * gamma_ref[...] + beta_ref[...]
    h2 = jnp.maximum(h1, 0.0)                       # ReLU; dropout identity (eval)
    o_ref[...] = (jnp.dot(h2.astype(jnp.bfloat16), w_ref[...],
                          preferred_element_type=jnp.float32) + b_ref[...])


def final_head(h, gamma, beta, w_pad_bf16, b_pad, node_tile):
    n, hdim = h.shape
    t_pad = w_pad_bf16.shape[1]
    return pl.pallas_call(
        _final_kernel,
        out_shape=jax.ShapeDtypeStruct((n, t_pad), jnp.float32),
        grid=(n // node_tile,),
        in_specs=[
            pl.BlockSpec((node_tile, hdim), lambda i: (i, 0)),
            pl.BlockSpec((1, hdim), lambda i: (0, 0)),
            pl.BlockSpec((1, hdim), lambda i: (0, 0)),
            pl.BlockSpec((hdim, t_pad), lambda i: (0, 0)),
            pl.BlockSpec((1, t_pad), lambda i: (0, 0)),
        ],
        out_specs=pl.BlockSpec((node_tile, t_pad), lambda i: (i, 0)),
        compiler_params=pltpu.CompilerParams(
            dimension_semantics=("parallel",),      # 2 TCs on v7x; no-op v5e/v6e
            vmem_limit_bytes=VMEM_LIMIT),
    )(h, gamma, beta, w_pad_bf16, b_pad)


# ------------------------------ parameters ----------------------------------

def _linear_init(key, fan_in, fan_out):
    # torch.nn.Linear default: U(-1/sqrt(fan_in), 1/sqrt(fan_in)); stored (in, out)
    k1, k2 = jax.random.split(key)
    bound = 1.0 / (fan_in ** 0.5)
    w = jax.random.uniform(k1, (fan_in, fan_out), jnp.float32, -bound, bound)
    b = jax.random.uniform(k2, (fan_out,), jnp.float32, -bound, bound)
    return w, b


def make_params(key, *, num_layers, hidden, num_tasks, node_table_size):
    keys = jax.random.split(key, 6 + 2 * num_layers)
    params = {"num_layers": num_layers}
    # TODO(synk): torch.load(node_features_file_path) replaced by a deterministic
    # synthetic feature table (checkpoint loading is out of scope).
    params["node_features"] = jax.random.normal(keys[0], (node_table_size, 8),
                                                jnp.float32)
    params["onehot_w"], params["onehot_b"] = _linear_init(keys[1], 8, 8)
    params["nfe_w"], params["nfe_b"] = _linear_init(keys[2], 16, hidden)
    params["ee_w"], params["ee_b"] = _linear_init(keys[3], 8, hidden)
    params["pred_w"], params["pred_b"] = _linear_init(keys[4], hidden, num_tasks)
    params["gcns"] = []
    params["layer_norms"] = []
    for layer in range(num_layers):
        w, b = _linear_init(keys[5 + layer], hidden, hidden)
        params["gcns"].append({"w": w, "b": b})   # GENConv MLP (mlp_layers=1)
        params["layer_norms"].append({
            "gamma": jnp.ones((hidden,), jnp.float32),
            "beta": jnp.zeros((hidden,), jnp.float32),
        })
    return params


# ------------------------------- forward ------------------------------------

def deeper_gcn_forward(params, x, node_index, edge_index, edge_attr):
    # ---- tiny encoders left to XLA: K=8/16 under-fills the MXU and separate
    # pallas_call launches would cost more than the matmuls themselves. -------
    nf1 = params["node_features"][node_index]                        # (N, 8)
    nf2 = x @ params["onehot_w"] + params["onehot_b"]                # (N, 8)
    node_features = jnp.concatenate([nf1, nf2], axis=1)              # (N, 16)
    h0 = node_features @ params["nfe_w"] + params["nfe_b"]           # (N, H)
    edge_emb = edge_attr @ params["ee_w"] + params["ee_b"]           # (E, H)

    n_real, hdim = h0.shape
    e_real = edge_emb.shape[0]
    n_pad = _round_up(n_real, NODE_TILE)
    e_pad = _round_up(e_real, LANE)

    # Pad nodes/edges to tile- and lane-friendly sizes.  Padded edges scatter
    # to an out-of-range node id (n_pad) so they contribute nothing; padded
    # node rows never appear as src/dst and are sliced off at the end.
    h0 = jnp.pad(h0, ((0, n_pad - n_real), (0, 0)))
    edge_emb = jnp.pad(edge_emb, ((0, e_pad - e_real), (0, 0)))
    src = jnp.pad(edge_index[0].astype(jnp.int32), (0, e_pad - e_real))
    dst = jnp.pad(edge_index[1].astype(jnp.int32), (0, e_pad - e_real),
                  constant_values=n_pad)
    src_col = src.reshape(e_pad, 1)     # broadcasts along lanes in-kernel
    dst_row = dst.reshape(1, e_pad)     # broadcasts along sublanes in-kernel

    num_layers = params["num_layers"]
    h = h0
    if num_layers > 1:
        # block == 'res+': layers 1 .. num_layers-1 (gcns[0] unused, as in module);
        # layer `l` uses layer_norms[l-1] and gcns[l].
        gammas = jnp.stack([params["layer_norms"][i]["gamma"]
                            for i in range(num_layers - 1)])[:, None, :]
        betas = jnp.stack([params["layer_norms"][i]["beta"]
                           for i in range(num_layers - 1)])[:, None, :]
        ws = jnp.stack([params["gcns"][i]["w"]
                        for i in range(1, num_layers)]).astype(jnp.bfloat16)
        bs = jnp.stack([params["gcns"][i]["b"]
                        for i in range(1, num_layers)])[:, None, :]
        h = fused_res_plus_layers(h, edge_emb, src_col, dst_row,
                                  gammas, betas, ws, bs)

    # final LN -> ReLU -> node_pred_linear; pad tasks 112 -> 128 lanes for
    # unmasked lane-dense stores, slice back afterwards.
    num_tasks = params["pred_w"].shape[1]
    t_pad = _round_up(num_tasks, LANE)
    w_pad = jnp.pad(params["pred_w"],
                    ((0, 0), (0, t_pad - num_tasks))).astype(jnp.bfloat16)
    b_pad = jnp.pad(params["pred_b"], (0, t_pad - num_tasks)).reshape(1, t_pad)
    ln = params["layer_norms"][num_layers - 1]
    head_tile = _pick_head_tile(n_pad)
    out = final_head(h, ln["gamma"].reshape(1, hdim), ln["beta"].reshape(1, hdim),
                     w_pad, b_pad, head_tile)
    return out[:n_real, :num_tasks]                                   # (N, T)


# --------------------------------- main --------------------------------------

if __name__ == "__main__":
    N_NODES = 200        # not a multiple of 128 -> exercises the padding path
    N_EDGES = 500
    HIDDEN = 128
    NUM_TASKS = 112      # ogbn-proteins
    NUM_LAYERS = 4
    NODE_TABLE = 300

    key = jax.random.PRNGKey(0)
    kp, kx, kni, kei, kea = jax.random.split(key, 5)

    params = make_params(kp, num_layers=NUM_LAYERS, hidden=HIDDEN,
                         num_tasks=NUM_TASKS, node_table_size=NODE_TABLE)

    x = jax.random.uniform(kx, (N_NODES, 8), jnp.float32)
    node_index = jax.random.randint(kni, (N_NODES,), 0, NODE_TABLE, jnp.int32)
    edge_index = jax.random.randint(kei, (2, N_EDGES), 0, N_NODES, jnp.int32)
    edge_attr = jax.random.uniform(kea, (N_EDGES, 8), jnp.float32)

    out = deeper_gcn_forward(params, x, node_index, edge_index, edge_attr)
    out = jax.block_until_ready(out)
    assert out.shape == (N_NODES, NUM_TASKS) and out.dtype == jnp.float32
    assert bool(jnp.all(jnp.isfinite(out)))
    print("KERNEL_OK")
</pallas_src>

<mosaic_0001>
module attributes {stable_mosaic.version = 11 : i64} {
  func.func @_fused_layers_kernel(%arg0: i32, %arg1: memref<256x128xf32, #tpu.memory_space<vmem>>, %arg2: memref<512x128xf32, #tpu.memory_space<vmem>>, %arg3: memref<512x1xi32, #tpu.memory_space<vmem>>, %arg4: memref<1x512xi32, #tpu.memory_space<vmem>>, %arg5: memref<1x1x128xf32, #tpu.memory_space<vmem>>, %arg6: memref<1x1x128xf32, #tpu.memory_space<vmem>>, %arg7: memref<1x128x128xbf16, #tpu.memory_space<vmem>>, %arg8: memref<1x1x128xf32, #tpu.memory_space<vmem>>, %arg9: memref<256x128xf32, #tpu.memory_space<vmem>>, %arg10: memref<512x256xbf16, #tpu.memory_space<vmem>>, %arg11: memref<256x512xbf16, #tpu.memory_space<vmem>>) attributes {dimension_semantics = [#tpu.dimension_semantics<arbitrary>], iteration_bounds = array<i64: 3>, scalar_prefetch = 0 : i64, scratch_operands = 2 : i64, tpu.core_type = #tpu.core_type<tc>, window_params = [{pipeline_mode = #tpu.pipeline_mode<synchronous>, transform_indices = @transform_0, window_bounds = array<i64: 256, 128>}, {pipeline_mode = #tpu.pipeline_mode<synchronous>, transform_indices = @transform_1, window_bounds = array<i64: 512, 128>}, {pipeline_mode = #tpu.pipeline_mode<synchronous>, transform_indices = @transform_2, window_bounds = array<i64: 512, 1>}, {pipeline_mode = #tpu.pipeline_mode<synchronous>, transform_indices = @transform_3, window_bounds = array<i64: 1, 512>}, {transform_indices = @transform_4, window_bounds = array<i64: 1, 1, 128>}, {transform_indices = @transform_5, window_bounds = array<i64: 1, 1, 128>}, {transform_indices = @transform_6, window_bounds = array<i64: 1, 128, 128>}, {transform_indices = @transform_7, window_bounds = array<i64: 1, 1, 128>}, {pipeline_mode = #tpu.pipeline_mode<synchronous>, transform_indices = @transform_8, window_bounds = array<i64: 256, 128>}]} {
    %c0_i32 = arith.constant 0 : i32
    %0 = arith.cmpi eq, %arg0, %c0_i32 : i32
    %1 = arith.extui %0 : i1 to i32
    %c0_i32_0 = arith.constant 0 : i32
    %2 = arith.cmpi ne, %1, %c0_i32_0 : i32
    scf.if %2 {
      %c0_32 = arith.constant 0 : index
      %c0_33 = arith.constant 0 : index
      %55 = vector.load %arg1[%c0_32, %c0_33] : memref<256x128xf32, #tpu.memory_space<vmem>>, vector<256x128xf32>
      %c0_34 = arith.constant 0 : index
      %c0_35 = arith.constant 0 : index
      %56 = vector.load %arg9[%c0_34, %c0_35] : memref<256x128xf32, #tpu.memory_space<vmem>>, vector<256x128xf32>
      tpu.vector_store %arg9[%c0_34, %c0_35], %55 {strides = array<i32>} : memref<256x128xf32, #tpu.memory_space<vmem>>, vector<256x128xf32>,
      %c0_36 = arith.constant 0 : index
      %c0_37 = arith.constant 0 : index
      %57 = vector.load %arg3[%c0_36, %c0_37] : memref<512x1xi32, #tpu.memory_space<vmem>>, vector<512x1xi32>
      %58 = tpu.iota {dimensions = array<i32: 1>} : vector<512x256xi32>
      %59 = vector.broadcast %57 : vector<512x1xi32> to vector<512x256xi32>
      %60 = arith.cmpi eq, %58, %59 : vector<512x256xi32>
      %61 = arith.extui %60 : vector<512x256xi1> to vector<512x256xi32>
      %62 = arith.sitofp %61 : vector<512x256xi32> to vector<512x256xf32>
      %63 = arith.truncf %62 : vector<512x256xf32> to vector<512x256xbf16>
      %c0_38 = arith.constant 0 : index
      %c0_39 = arith.constant 0 : index
      %64 = vector.load %arg10[%c0_38, %c0_39] : memref<512x256xbf16, #tpu.memory_space<vmem>>, vector<512x256xbf16>
      tpu.vector_store %arg10[%c0_38, %c0_39], %63 {strides = array<i32>} : memref<512x256xbf16, #tpu.memory_space<vmem>>, vector<512x256xbf16>,
      %c0_40 = arith.constant 0 : index
      %c0_41 = arith.constant 0 : index
      %65 = vector.load %arg4[%c0_40, %c0_41] : memref<1x512xi32, #tpu.memory_space<vmem>>, vector<1x512xi32>
      %66 = tpu.iota {dimensions = array<i32: 0>} : vector<256x512xi32>
      %67 = vector.broadcast %65 : vector<1x512xi32> to vector<256x512xi32>
      %68 = arith.cmpi eq, %66, %67 : vector<256x512xi32>
      %69 = arith.extui %68 : vector<256x512xi1> to vector<256x512xi32>
      %70 = arith.sitofp %69 : vector<256x512xi32> to vector<256x512xf32>
      %71 = arith.truncf %70 : vector<256x512xf32> to vector<256x512xbf16>
      %c0_42 = arith.constant 0 : index
      %c0_43 = arith.constant 0 : index
      %72 = vector.load %arg11[%c0_42, %c0_43] : memref<256x512xbf16, #tpu.memory_space<vmem>>, vector<256x512xbf16>
      tpu.vector_store %arg11[%c0_42, %c0_43], %71 {strides = array<i32>} : memref<256x512xbf16, #tpu.memory_space<vmem>>, vector<256x512xbf16>,
    } else {
    }
    %c0 = arith.constant 0 : index
    %c0_1 = arith.constant 0 : index
    %3 = vector.load %arg9[%c0, %c0_1] : memref<256x128xf32, #tpu.memory_space<vmem>>, vector<256x128xf32>
    %cst = arith.constant dense<0.000000e+00> : vector<256xf32>
    %4 = vector.multi_reduction <add>, %3, %cst [1] : vector<256x128xf32> to vector<256xf32>
    %5 = vector.shape_cast %4 : vector<256xf32> to vector<256x1xf32>
    %cst_2 = arith.constant 1.280000e+02 : f32
    %6 = vector.broadcast %cst_2 : f32 to vector<256x1xf32>
    %7 = arith.divf %5, %6 : vector<256x1xf32>
    %8 = vector.broadcast %7 : vector<256x1xf32> to vector<256x128xf32>
    %9 = arith.subf %3, %8 : vector<256x128xf32>
    %10 = arith.mulf %9, %9 : vector<256x128xf32>
    %cst_3 = arith.constant dense<0.000000e+00> : vector<256xf32>
    %11 = vector.multi_reduction <add>, %10, %cst_3 [1] : vector<256x128xf32> to vector<256xf32>
    %12 = vector.shape_cast %11 : vector<256xf32> to vector<256x1xf32>
    %cst_4 = arith.constant 1.280000e+02 : f32
    %13 = vector.broadcast %cst_4 : f32 to vector<256x1xf32>
    %14 = arith.divf %12, %13 : vector<256x1xf32>
    %15 = vector.broadcast %7 : vector<256x1xf32> to vector<256x128xf32>
    %16 = arith.subf %3, %15 : vector<256x128xf32>
    %cst_5 = arith.constant 9.99999974E-6 : f32
    %17 = vector.broadcast %cst_5 : f32 to vector<256x1xf32>
    %18 = arith.addf %14, %17 : vector<256x1xf32>
    %19 = math.rsqrt %18 : vector<256x1xf32>
    %20 = vector.broadcast %19 : vector<256x1xf32> to vector<256x128xf32>
    %21 = arith.mulf %16, %20 : vector<256x128xf32>
    %c0_6 = arith.constant 0 : index
    %c0_7 = arith.constant 0 : index
    %c0_8 = arith.constant 0 : index
    %22 = vector.load %arg5[%c0_6, %c0_7, %c0_8] : memref<1x1x128xf32, #tpu.memory_space<vmem>>, vector<1x1x128xf32>
    %23 = vector.shape_cast %22 : vector<1x1x128xf32> to vector<1x128xf32>
    %24 = vector.broadcast %23 : vector<1x128xf32> to vector<256x128xf32>
    %25 = arith.mulf %21, %24 : vector<256x128xf32>
    %c0_9 = arith.constant 0 : index
    %c0_10 = arith.constant 0 : index
    %c0_11 = arith.constant 0 : index
    %26 = vector.load %arg6[%c0_9, %c0_10, %c0_11] : memref<1x1x128xf32, #tpu.memory_space<vmem>>, vector<1x1x128xf32>
    %27 = vector.shape_cast %26 : vector<1x1x128xf32> to vector<1x128xf32>
    %28 = vector.broadcast %27 : vector<1x128xf32> to vector<256x128xf32>
    %29 = arith.addf %25, %28 : vector<256x128xf32>
    %cst_12 = arith.constant 0.000000e+00 : f32
    %30 = vector.broadcast %cst_12 : f32 to vector<256x128xf32>
    %31 = arith.maximumf %29, %30 : vector<256x128xf32>
    %32 = arith.truncf %31 : vector<256x128xf32> to vector<256x128xbf16>
    %c0_13 = arith.constant 0 : index
    %c0_14 = arith.constant 0 : index
    %33 = vector.load %arg10[%c0_13, %c0_14] : memref<512x256xbf16, #tpu.memory_space<vmem>>, vector<512x256xbf16>
    %cst_15 = arith.constant dense<0.000000e+00> : vector<512x128xf32>
    %34 = tpu.matmul %33, %32, %cst_15 {dimension_numbers = #tpu.dot_dimension_numbers<[1], [0], [0], [1], [0, 0, 1, 1], [], []>} : vector<512x256xbf16>, vector<256x128xbf16>, vector<512x128xf32> -> vector<512x128xf32>
    %c0_16 = arith.constant 0 : index
    %c0_17 = arith.constant 0 : index
    %35 = vector.load %arg2[%c0_16, %c0_17] : memref<512x128xf32, #tpu.memory_space<vmem>>, vector<512x128xf32>
    %36 = arith.addf %34, %35 : vector<512x128xf32>
    %cst_18 = arith.constant 0.000000e+00 : f32
    %37 = vector.broadcast %cst_18 : f32 to vector<512x128xf32>
    %38 = arith.maximumf %36, %37 : vector<512x128xf32>
    %cst_19 = arith.constant 1.000000e-07 : f32
    %39 = vector.broadcast %cst_19 : f32 to vector<512x128xf32>
    %40 = arith.addf %38, %39 : vector<512x128xf32>
    %c0_20 = arith.constant 0 : index
    %c0_21 = arith.constant 0 : index
    %41 = vector.load %arg11[%c0_20, %c0_21] : memref<256x512xbf16, #tpu.memory_space<vmem>>, vector<256x512xbf16>
    %42 = arith.truncf %40 : vector<512x128xf32> to vector<512x128xbf16>
    %cst_22 = arith.constant dense<0.000000e+00> : vector<256x128xf32>
    %43 = tpu.matmul %41, %42, %cst_22 {dimension_numbers = #tpu.dot_dimension_numbers<[1], [0], [0], [1], [0, 0, 1, 1], [], []>} : vector<256x512xbf16>, vector<512x128xbf16>, vector<256x128xf32> -> vector<256x128xf32>
    %44 = arith.addf %31, %43 : vector<256x128xf32>
    %45 = arith.truncf %44 : vector<256x128xf32> to vector<256x128xbf16>
    %c0_23 = arith.constant 0 : index
    %c0_24 = arith.constant 0 : index
    %c0_25 = arith.constant 0 : index
    %46 = vector.load %arg7[%c0_23, %c0_24, %c0_25] : memref<1x128x128xbf16, #tpu.memory_space<vmem>>, vector<1x128x128xbf16>
    %47 = vector.shape_cast %46 : vector<1x128x128xbf16> to vector<128x128xbf16>
    %cst_26 = arith.constant dense<0.000000e+00> : vector<256x128xf32>
    %48 = tpu.matmul %45, %47, %cst_26 {dimension_numbers = #tpu.dot_dimension_numbers<[1], [0], [0], [1], [0, 0, 1, 1], [], []>} : vector<256x128xbf16>, vector<128x128xbf16>, vector<256x128xf32> -> vector<256x128xf32>
    %c0_27 = arith.constant 0 : index
    %c0_28 = arith.constant 0 : index
    %c0_29 = arith.constant 0 : index
    %49 = vector.load %arg8[%c0_27, %c0_28, %c0_29] : memref<1x1x128xf32, #tpu.memory_space<vmem>>, vector<1x1x128xf32>
    %50 = vector.shape_cast %49 : vector<1x1x128xf32> to vector<1x128xf32>
    %51 = vector.broadcast %50 : vector<1x128xf32> to vector<256x128xf32>
    %52 = arith.addf %48, %51 : vector<256x128xf32>
    %53 = arith.addf %52, %3 : vector<256x128xf32>
    %c0_30 = arith.constant 0 : index
    %c0_31 = arith.constant 0 : index
    %54 = vector.load %arg9[%c0_30, %c0_31] : memref<256x128xf32, #tpu.memory_space<vmem>>, vector<256x128xf32>
    tpu.vector_store %arg9[%c0_30, %c0_31], %53 {strides = array<i32>} : memref<256x128xf32, #tpu.memory_space<vmem>>, vector<256x128xf32>,
    return
  }
  func.func @transform_0(%arg0: i32) -> (i32, i32) {
    %c0_i32 = arith.constant 0 : i32
    %c0_i32_0 = arith.constant 0 : i32
    %c0_i32_1 = arith.constant 0 : i32
    return %c0_i32, %c0_i32_0 : i32, i32
  }
  func.func @transform_1(%arg0: i32) -> (i32, i32) {
    %c0_i32 = arith.constant 0 : i32
    %c0_i32_0 = arith.constant 0 : i32
    %c0_i32_1 = arith.constant 0 : i32
    return %c0_i32, %c0_i32_0 : i32, i32
  }
  func.func @transform_2(%arg0: i32) -> (i32, i32) {
    %c0_i32 = arith.constant 0 : i32
    %c0_i32_0 = arith.constant 0 : i32
    %c0_i32_1 = arith.constant 0 : i32
    return %c0_i32, %c0_i32_0 : i32, i32
  }
  func.func @transform_3(%arg0: i32) -> (i32, i32) {
    %c0_i32 = arith.constant 0 : i32
    %c0_i32_0 = arith.constant 0 : i32
    %c0_i32_1 = arith.constant 0 : i32
    return %c0_i32, %c0_i32_0 : i32, i32
  }
  func.func @transform_4(%arg0: i32) -> (i32, i32, i32) {
    %c0_i32 = arith.constant 0 : i32
    %c0_i32_0 = arith.constant 0 : i32
    %c0_i32_1 = arith.constant 0 : i32
    return %arg0, %c0_i32, %c0_i32_0 : i32, i32, i32
  }
  func.func @transform_5(%arg0: i32) -> (i32, i32, i32) {
    %c0_i32 = arith.constant 0 : i32
    %c0_i32_0 = arith.constant 0 : i32
    %c0_i32_1 = arith.constant 0 : i32
    return %arg0, %c0_i32, %c0_i32_0 : i32, i32, i32
  }
  func.func @transform_6(%arg0: i32) -> (i32, i32, i32) {
    %c0_i32 = arith.constant 0 : i32
    %c0_i32_0 = arith.constant 0 : i32
    %c0_i32_1 = arith.constant 0 : i32
    return %arg0, %c0_i32, %c0_i32_0 : i32, i32, i32
  }
  func.func @transform_7(%arg0: i32) -> (i32, i32, i32) {
    %c0_i32 = arith.constant 0 : i32
    %c0_i32_0 = arith.constant 0 : i32
    %c0_i32_1 = arith.constant 0 : i32
    return %arg0, %c0_i32, %c0_i32_0 : i32, i32, i32
  }
  func.func @transform_8(%arg0: i32) -> (i32, i32) {
    %c0_i32 = arith.constant 0 : i32
    %c0_i32_0 = arith.constant 0 : i32
    %c0_i32_1 = arith.constant 0 : i32
    return %c0_i32, %c0_i32_0 : i32, i32
  }
}

</mosaic_0001>

<bundles_post_ra>
// kernel: tpu_custom_call.1
= control target key start
LH: loop header
LB: loop body
LE: loop exit
PB: predicated region body
PF: predicated region fallthrough
CT: control target
= control target key end

     0   :  { %13 = vsyncpa [#allocation5], 0  ;;  %s7624_s0 = inlined_call_operand.hbm [shape: f32[256,128], index: 0, kind: input, shape index: {}]   ;;  %s7625_s1 = inlined_call_operand.vmem [shape: f32[512,128], index: 1, kind: input, shape index: {}]   ;;  %s7626_s2 = inlined_call_operand.vmem [shape: s32[512,1], index: 2, kind: input, shape index: {}]   ;;  %s7627_s3 = inlined_call_operand.vmem [shape: s32[1,512], index: 3, kind: input, shape index: {}]   ;;  %s7628_s4 = inlined_call_operand.vmem [shape: f32[3,1,128], index: 4, kind: input, shape index: {}]   ;;  %s7629_s5 = inlined_call_operand.vmem [shape: f32[3,1,128], index: 5, kind: input, shape index: {}]   ;;  %s7630_s6 = inlined_call_operand.hbm [shape: bf16[3,128,128], index: 6, kind: input, shape index: {}]   ;;  %s7631_s7 = inlined_call_operand.vmem [shape: f32[3,1,128], index: 7, kind: input, shape index: {}]   ;;  %s7632_s8 = inlined_call_operand.hbm [shape: f32[256,128], index: 8, kind: output, shape index: {}]  }
   0x1   :  { %14 = vsyncpa [#allocation8], 0 }
   0x2   :  { %16 = vsyncpa [#allocation8 + $0x1], 0 }
   0x3   :  { %17 = vsyncpa [#allocation6], 0  ;;  %s4639_s27 = smov 0   ;;  %s4641_s28 = smov 0  }
   0x4   :  { %s4643_s29 = smov 0   ;;  %s4645_s30 = smov 0  }
   0x5 LB: > { %s4658_s9 = sadd.s32 4294967295, %s4580_s30   ;;  %p179_p0 = scmp.ne.s32.totalorder %s4572_s28, %s4568_s27  ;;  %s4580_s30 = sphi %s4645_s30, %s7977_s30   ;;  %s4576_s29 = sphi %s4643_s29, %s7976_s29   ;;  %s4572_s28 = sphi %s4641_s28, %s7975_s28   ;;  %s4568_s27 = sphi %s4639_s27, %s7974_s27  }
   0x6   : > { %p7633_p1 = scmp.eq.s32.totalorder %s4658_s9, 0  ;;  %p3688_p2 = scmp.ge.s32.totalorder %s4580_s30, 1 }
   0x7   : > { %p237_p3 = scmp.lt.s32.totalorder %s4580_s30, 4  ;;  %s4582_s12 = smov [#allocation4]  }
   0x8   : > { %p4667_p5 = por %p7633_p1, %p179_p0  ;;  %s249_s13 = sshll.u32 %s4582_s12, 4  ;;  %s250_s13 = int_to_ptr.vmem [resolvable:$true] %s249_s13 }
   0x9   : > { %p4671_p6 = pnand %p3688_p2, %p237_p3  ;;  %s4684_s15 = sadd.s32 1, %s4580_s30  }
   0xa   : > { %s7686_s10 = scalar_select %p4667_p5, 1, 0 }
   0xb   : > { %s7687_s11 = scalar_select %p4671_p6, 1, 0 }
   0xc   : > { %p4292_p7 = pneg %p4671_p6  ;;  %s166_s16 = sadd.s32 1, %s4576_s29 }
   0xd   : > { %s163_s17 = ssub.s32 %s4580_s30, %s4684_s15  ;;  %s4454_s20 = scalar_lea.hbm %s7624_s0, 4096 }
   0xe   : > { %p4679_p8 = pnand %p4292_p7, %p7633_p1  ;;  %p4455_p9 = scmp.ne.s32.totalorder %s7624_s0, %s4454_s20 }
   0xf   : > { %p4461_p13 = scmp.lt.u32.totalorder %s4454_s20, %s7624_s0 }
  0x10   : > { %p4456_p10 = pneg %p4679_p8 }
  0x12   : > { %p4457_p11 = pnand %p4456_p10, %p4455_p9 }
  0x14   : > { %p4458_p12 = pneg %p4457_p11 }
  0x16   : > { %p4463_p0 = pnand %p4461_p13, %p4458_p12 }
  0x18   : > { %4466 = shalt.err (!%p4463_p0)
}
  0x19   : > { %s4467_s25 = scalar_lea.vmem %s250_s13, 4096  ;;  %p4475_p4 = scmp.lt.s32.totalorder %s250_s13, %s250_s13 }
  0x1a   : > { %p4468_p2 = scmp.ne.s32.totalorder %s250_s13, %s4467_s25  ;;  %p4476_p1 = scmp.lt.s32.totalorder %s4467_s25, %s4467_s25 }
  0x1c   : > { %p4470_p3 = pnand %p4468_p2, %p4456_p10  ;;  %p4477_p5 = por %p4476_p1, %p4475_p4 }
  0x1e   : > { %p4471_p7 = pneg %p4470_p3 }
  0x20   : > { %p4478_p6 = pnand %p4477_p5, %p4471_p7 }
  0x22   : > { %4481 = shalt.err (!%p4478_p6)
}
  0x23   : > { %s4583_s26 = smov 128   ;;  %s4584_s27 = smov 8  }
  0x24   : > { %4295 = dma.hbm_to_vmem [thread:$0]  (!%p4679_p8), %s7624_s0, 4096, %s250_s13, [#allocation5], %s4583_s26, %s4583_s26, %s4584_s27  }
  0x25   : > { %p164_p9 = scmp.eq.s32.totalorder %s163_s17, 0  ;;  %p173_p10 = scmp.ne.s32.totalorder %s4576_s29, %s4572_s28 }
  0x26   : > { %p174_p1 = scmp.eq.s32.totalorder %s4580_s30, 0  ;;  %p4301_p4 = scmp.lt.s32.totalorder %s4580_s30, 3 }
  0x27   : > { %s4710_s19 = scalar_select %p164_p9, %s4576_s29, %s166_s16  }
  0x28   : > { %p175_p5 = por %p174_p1, %p173_p10  ;;  %s284_s20 = sand.u32 1, %s4576_s29  }
  0x29   : > { %s3691_s21 = sshll.u32 %s284_s20, 6  ;;  %s3969_s22 = sshll.u32 %s4580_s30, 10 }
  0x2a   : > { %s4717_s25 = scalar_lea.hbm %s7630_s6, %s3969_s22  ;;  %s288_s13 = scalar_lea.vmem [#allocation7], %s3691_s21 }
  0x2b   : > { %s295_s14 = sshll.u32 %s288_s13, 4  ;;  %p4721_p6 = pnand %p4301_p4, %p175_p5  ;;  %s4719_s14 = int_to_ptr.vmem [resolvable:$true] %s295_s14 }
  0x2c   : > { %s4725_s30 = scalar_lea.sflag [#allocation8], %s284_s20  ;;  %s4482_s17 = scalar_lea.hbm %s4717_s25, 1024 }
  0x2d   : > { %p4483_p8 = scmp.ne.s32.totalorder %s4717_s25, %s4482_s17  ;;  %p4484_p11 = pneg %p4721_p6 }
  0x2e   : > { %s4487_s12 = scalar_lea.hbm %s7630_s6, 3072  ;;  %p4488_p0 = scmp.lt.u32.totalorder %s4717_s25, %s7630_s6 }
  0x2f   : > { %p4485_p12 = pnand %p4484_p11, %p4483_p8  ;;  %p4489_p2 = scmp.lt.u32.totalorder %s4487_s12, %s4482_s17 }
  0x30   : > { %p4491_p7 = scmp.lt.u32.totalorder %s4482_s17, %s4717_s25 }
  0x31   : > { %p4486_p13 = pneg %p4485_p12  ;;  %p4490_p3 = por %p4489_p2, %p4488_p0 }
  0x33   : > { %p4492_p9 = por %p4491_p7, %p4490_p3 }
  0x35   : > { %p4493_p10 = pnand %p4492_p9, %p4486_p13 }
  0x37   : > { %4496 = shalt.err (!%p4493_p10)
}
  0x38   : > { %s4497_s20 = scalar_lea.vmem %s4719_s14, 1024  ;;  %s4585_s22 = smov [#allocation7]  }
  0x39   : > { %p4498_p1 = scmp.ne.s32.totalorder %s4719_s14, %s4497_s20  ;;  %s4502_s23 = sshll.u32 %s4585_s22, 4  ;;  %s4503_s23 = int_to_ptr.vmem [resolvable:$false] %s4502_s23 }
  0x3a   : > { %s4504_s24 = scalar_lea.vmem %s4503_s23, 2048  ;;  %p4505_p8 = scmp.lt.s32.totalorder %s4719_s14, %s4503_s23 }
  0x3b   : > { %p4500_p4 = pnand %p4498_p1, %p4484_p11  ;;  %p4506_p12 = scmp.lt.s32.totalorder %s4504_s24, %s4497_s20 }
  0x3d   : > { %p4501_p5 = pneg %p4500_p4  ;;  %p4507_p0 = por %p4506_p12, %p4505_p8 }
  0x3f   : > { %p4508_p2 = pnand %p4507_p0, %p4501_p5 }
  0x41   : > { %4511 = shalt.err (!%p4508_p2)
}
  0x42   : > { %s4586_s13 = smov 64   ;;  %s4587_s17 = smov 4  }
  0x43   : > { %4299 = dma.hbm_to_vmem [thread:$0]  (!%p4721_p6), %s4717_s25, 1024, %s4719_s14, %s4725_s30, %s4586_s13, %s4586_s13, %s4587_s17  }
  0x44   : > { %p7690_p11 = scmp.ne.s32.totalorder %s7687_s11, 0 }
  0x46   : > { %313 = sbr.rel (%p7690_p11) target bundleno = 1835 (0x72b), region = 52 }
  0x4d   : > { %p7691_p13 = scmp.eq.s32.totalorder %s4658_s9, 0 }
  0x4f   : > { %4555 = dma.done.wait (%p7691_p13), [#allocation5], 4096   ;;  %p7692_p3 = pmov %p7691_p13 }
  0x50   : > { %s319_s26 = sand.u32 1, %s4572_s28   ;;  %p7693_p7 = scmp.ne.s32.totalorder %s7686_s10, 0 }
  0x51   : > { %4557 = vsyncadd (%p7692_p3), [#allocation5], 4294963200  ;;  %s3696_s27 = sshll.u32 %s319_s26, 6  ;;  %s320_s12 = scalar_lea.sflag [#allocation8], %s319_s26 }
  0x52   : > { %s4760_s18 = scalar_lea.vmem [#allocation7], %s3696_s27 }
  0x53   : > { %4559 = dma.done.wait (%p7693_p7), %s320_s12, 1024  }
  0x54   : > { %4561 = vsyncadd (%p7693_p7), %s320_s12, 4294966272  ;;  %p360_p6 = scmp.lt.s32.totalorder %s4658_s9, 2  ;;  %p7694_p9 = scmp.ne.s32.totalorder %s4658_s9, 0 }
  0x56   : > { %s4768_s11 = scalar_select %p360_p6, %s4658_s9, 2 }
  0x57   : > { %373 = sbr.rel (%p7694_p9) target bundleno = 400 (0x190), region = 64 }
  0x58   : > { %s362_s16 = scalar_lea.vmem %s7628_s4, %s4768_s11  ;;  %s365_s20 = scalar_lea.vmem %s7629_s5, %s4768_s11 }
  0x59   : > { %s368_s10 = scalar_lea.vmem %s7631_s7, %s4768_s11 }
  0x5e   : > { %v440_v0 = vld [vmem:[%s7626_s2 + $0x10] sm:$0xff]  ;;  %v438_v1 = vld [vmem:[%s7626_s2] sm:$0xff]  ;;  %v4588_v2 = vmov 0   ;;  %v441_v3 = vld [vmem:[%s7626_s2 + $0x18] sm:$0xff]  ;;  %v502_v57 = vlaneseq }
  0x5f   : > { %4349 = vset.pattern.permute.xlu1 %v4588_v2  ;;  %4348 = vset.pattern.permute.xlu0 %v4588_v2  ;;  %v439_v4 = vld [vmem:[%s7626_s2 + $0x8] sm:$0xff]  ;;  %v442_v6 = vld [vmem:[%s7626_s2 + $0x20] sm:$0xff]  ;;  %v445_v7 = vld [vmem:[%s7626_s2 + $0x38] sm:$0xff] }
  0x60   : > { %512 = vperm.xlu1 %4349, %v440_v0   ;;  %506 = vperm.xlu0 %4348, %v438_v1   ;;  %v443_v5 = vld [vmem:[%s7626_s2 + $0x28] sm:$0xff]  ;;  %v444_v8 = vld [vmem:[%s7626_s2 + $0x30] sm:$0xff]  ;;  %v446_v10 = vld [vmem:[%s7626_s2 + $0x40] sm:$0xff]  ;;  %v4958_v60 = vand.u32 127, %v502_v57  ;;  %v4966_v63 = vshrl.u32 %v502_v57, 7 }
  0x61   : > { %v447_v9 = vld [vmem:[%s7626_s2 + $0x48] sm:$0xff]  ;;  %v449_v11 = vld [vmem:[%s7626_s2 + $0x58] sm:$0xff]  ;;  %v448_v12 = vld [vmem:[%s7626_s2 + $0x50] sm:$0xff] }
  0x62   : > { %v451_v13 = vld [vmem:[%s7626_s2 + $0x68] sm:$0xff]  ;;  %v450_v14 = vld [vmem:[%s7626_s2 + $0x60] sm:$0xff]  ;;  %v453_v15 = vld [vmem:[%s7626_s2 + $0x78] sm:$0xff]  ;;  %7695 = vst [vmem:[#allocation13_spill] sm:$0xff] %v4958_v60  ;;  %v4969_v0 = vadd.s32 128, %v4958_v60  ;;  %v4972_v1 = vadd.s32 8, %v4966_v63 }
  0x63   : > { %v452_v16 = vld [vmem:[%s7626_s2 + $0x70] sm:$0xff]  ;;  %v455_v17 = vld [vmem:[%s7626_s2 + $0x88] sm:$0xff]  ;;  %v454_v18 = vld [vmem:[%s7626_s2 + $0x80] sm:$0xff]  ;;  %v4975_v2 = vadd.s32 16, %v4966_v63 }
  0x64   : > { %515 = vperm.xlu1 %4349, %v441_v3   ;;  %509 = vperm.xlu0 %4348, %v439_v4   ;;  %v457_v19 = vld [vmem:[%s7626_s2 + $0x98] sm:$0xff]  ;;  %v456_v20 = vld [vmem:[%s7626_s2 + $0x90] sm:$0xff]  ;;  %v459_v21 = vld [vmem:[%s7626_s2 + $0xa8] sm:$0xff]  ;;  %7696 = vst [vmem:[#allocation14_spill] sm:$0xff] %v4969_v0  ;;  %v4978_v3 = vadd.s32 24, %v4966_v63  ;;  %v4981_v4 = vadd.s32 32, %v4966_v63 }
  0x65   : > { %v458_v22 = vld [vmem:[%s7626_s2 + $0xa0] sm:$0xff]  ;;  %v461_v23 = vld [vmem:[%s7626_s2 + $0xb8] sm:$0xff]  ;;  %v460_v24 = vld [vmem:[%s7626_s2 + $0xb0] sm:$0xff] }
  0x66   : > { %v463_v25 = vld [vmem:[%s7626_s2 + $0xc8] sm:$0xff]  ;;  %v462_v26 = vld [vmem:[%s7626_s2 + $0xc0] sm:$0xff]  ;;  %v465_v27 = vld [vmem:[%s7626_s2 + $0xd8] sm:$0xff] }
  0x67   : > { %v464_v28 = vld [vmem:[%s7626_s2 + $0xd0] sm:$0xff]  ;;  %v467_v29 = vld [vmem:[%s7626_s2 + $0xe8] sm:$0xff]  ;;  %v466_v30 = vld [vmem:[%s7626_s2 + $0xe0] sm:$0xff] }
  0x68   : > { %521 = vperm.xlu1 %4349, %v443_v5   ;;  %518 = vperm.xlu0 %4348, %v442_v6   ;;  %v469_v31 = vld [vmem:[%s7626_s2 + $0xf8] sm:$0xff]  ;;  %v468_v32 = vld [vmem:[%s7626_s2 + $0xf0] sm:$0xff]  ;;  %v471_v33 = vld [vmem:[%s7626_s2 + $0x108] sm:$0xff] }
  0x69   : > { %v470_v34 = vld [vmem:[%s7626_s2 + $0x100] sm:$0xff]  ;;  %v473_v35 = vld [vmem:[%s7626_s2 + $0x118] sm:$0xff]  ;;  %v472_v36 = vld [vmem:[%s7626_s2 + $0x110] sm:$0xff] }
  0x6a   : > { %v475_v37 = vld [vmem:[%s7626_s2 + $0x128] sm:$0xff]  ;;  %v474_v38 = vld [vmem:[%s7626_s2 + $0x120] sm:$0xff]  ;;  %v477_v39 = vld [vmem:[%s7626_s2 + $0x138] sm:$0xff] }
  0x6b   : > { %v476_v40 = vld [vmem:[%s7626_s2 + $0x130] sm:$0xff]  ;;  %v479_v41 = vld [vmem:[%s7626_s2 + $0x148] sm:$0xff]  ;;  %v478_v42 = vld [vmem:[%s7626_s2 + $0x140] sm:$0xff] }
  0x6c   : > { %527 = vperm.xlu1 %4349, %v445_v7   ;;  %524 = vperm.xlu0 %4348, %v444_v8   ;;  %v481_v43 = vld [vmem:[%s7626_s2 + $0x158] sm:$0xff]  ;;  %v480_v44 = vld [vmem:[%s7626_s2 + $0x150] sm:$0xff]  ;;  %v483_v45 = vld [vmem:[%s7626_s2 + $0x168] sm:$0xff]  ;;  %v4990_v7 = vadd.s32 40, %v4966_v63  ;;  %v4993_v8 = vadd.s32 48, %v4966_v63 }
  0x6d   : > { %v482_v46 = vld [vmem:[%s7626_s2 + $0x160] sm:$0xff]  ;;  %v485_v47 = vld [vmem:[%s7626_s2 + $0x178] sm:$0xff]  ;;  %v484_v48 = vld [vmem:[%s7626_s2 + $0x170] sm:$0xff] }
  0x6e   : > { %v487_v49 = vld [vmem:[%s7626_s2 + $0x188] sm:$0xff]  ;;  %v486_v50 = vld [vmem:[%s7626_s2 + $0x180] sm:$0xff]  ;;  %v489_v51 = vld [vmem:[%s7626_s2 + $0x198] sm:$0xff] }
  0x6f   : > { %v488_v52 = vld [vmem:[%s7626_s2 + $0x190] sm:$0xff]  ;;  %v491_v53 = vld [vmem:[%s7626_s2 + $0x1a8] sm:$0xff]  ;;  %v490_v54 = vld [vmem:[%s7626_s2 + $0x1a0] sm:$0xff] }
  0x70   : > { %533 = vperm.xlu1 %4349, %v447_v9   ;;  %530 = vperm.xlu0 %4348, %v446_v10   ;;  %v493_v55 = vld [vmem:[%s7626_s2 + $0x1b8] sm:$0xff]  ;;  %v492_v56 = vld [vmem:[%s7626_s2 + $0x1b0] sm:$0xff]  ;;  %v495_v58 = vld [vmem:[%s7626_s2 + $0x1c8] sm:$0xff]  ;;  %v4996_v9 = vadd.s32 56, %v4966_v63  ;;  %v1245_v10 = vsub.s32 0, %v4966_v63 }
  0x71   : > { %v494_v59 = vld [vmem:[%s7626_s2 + $0x1c0] sm:$0xff]  ;;  %v497_v61 = vld [vmem:[%s7626_s2 + $0x1d8] sm:$0xff]  ;;  %v496_v62 = vld [vmem:[%s7626_s2 + $0x1d0] sm:$0xff] }
  0x72   : > { %v499_v5 = vld [vmem:[%s7626_s2 + $0x1e8] sm:$0xff]  ;;  %v498_v6 = vld [vmem:[%s7626_s2 + $0x1e0] sm:$0xff] }
  0x74   : > { %539 = vperm.xlu1 %4349, %v449_v11   ;;  %536 = vperm.xlu0 %4348, %v448_v12   ;;  %v1209_v11 = vld [vmem:[%s7627_s3] sm:$0xf]  ;;  %v5003_v12 = vadd.s32 64, %v4966_v63 }
  0x78   : > { %545 = vperm.xlu1 %4349, %v451_v13   ;;  %542 = vperm.xlu0 %4348, %v450_v14   ;;  %v1249_v13 = vsub.s32 1, %v4966_v63  ;;  %v1253_v14 = vsub.s32 2, %v4966_v63 }
  0x7c   : > { %551 = vperm.xlu1 %4349, %v453_v15   ;;  %548 = vperm.xlu0 %4348, %v452_v16   ;;  %v1257_v15 = vsub.s32 3, %v4966_v63  ;;  %v5009_v16 = vadd.s32 72, %v4966_v63 }
  0x80   : > { %557 = vperm.xlu1 %4349, %v455_v17   ;;  %554 = vperm.xlu0 %4348, %v454_v18   ;;  %v5012_v17 = vadd.s32 80, %v4966_v63  ;;  %v5015_v18 = vadd.s32 88, %v4966_v63 }
  0x84   : > { %563 = vperm.xlu1 %4349, %v457_v19   ;;  %560 = vperm.xlu0 %4348, %v456_v20   ;;  %v5018_v19 = vadd.s32 96, %v4966_v63  ;;  %v5021_v20 = vadd.s32 104, %v4966_v63 }
  0x88   : > { %569 = vperm.xlu1 %4349, %v459_v21   ;;  %566 = vperm.xlu0 %4348, %v458_v22   ;;  %v5024_v21 = vadd.s32 112, %v4966_v63  ;;  %v5027_v22 = vadd.s32 120, %v4966_v63 }
  0x8c   : > { %575 = vperm.xlu1 %4349, %v461_v23   ;;  %572 = vperm.xlu0 %4348, %v460_v24   ;;  %v5030_v23 = vadd.s32 128, %v4966_v63  ;;  %v501_v24 = vld [vmem:[%s7626_s2 + $0x1f8] sm:$0xff] }
  0x90   : > { %581 = vperm.xlu1 %4349, %v463_v25   ;;  %578 = vperm.xlu0 %4348, %v462_v26   ;;  %v500_v25 = vld [vmem:[%s7626_s2 + $0x1f0] sm:$0xff]  ;;  %v5039_v26 = vadd.s32 136, %v4966_v63 }
  0x94   : > { %587 = vperm.xlu1 %4349, %v465_v27   ;;  %584 = vperm.xlu0 %4348, %v464_v28   ;;  %v5042_v27 = vadd.s32 144, %v4966_v63  ;;  %v5045_v28 = vadd.s32 152, %v4966_v63 }
  0x98   : > { %593 = vperm.xlu1 %4349, %v467_v29   ;;  %590 = vperm.xlu0 %4348, %v466_v30   ;;  %v5047_v29 = vrot.slane %v1209_v11, %v1245_v10  ;;  %v5050_v30 = vadd.s32 160, %v4966_v63 }
  0x9a   : > { %vm1259_vm0 = vcmp.eq.s32.totalorder %v4966_v63, %v5047_v29  ;;  %vm1263_vm4 = vcmp.eq.s32.totalorder %v4972_v1, %v5047_v29  ;;  %vm1271_vm15 = vcmp.eq.s32.totalorder %v4978_v3, %v5047_v29 }
  0x9c   : > { %599 = vperm.xlu1 %4349, %v469_v31   ;;  %596 = vperm.xlu0 %4348, %v468_v32   ;;  %v5052_v31 = vrot.slane %v1209_v11, %v1249_v13  ;;  %v5054_v32 = vrot.slane %v1209_v11, %v1253_v14 }
  0x9e   : > { %vm1260_vm1 = vcmp.eq.s32.totalorder %v4966_v63, %v5052_v31  ;;  %vm1261_vm2 = vcmp.eq.s32.totalorder %v4966_v63, %v5054_v32  ;;  %vm1264_vm5 = vcmp.eq.s32.totalorder %v4972_v1, %v5052_v31  ;;  %vm1265_vm6 = vcmp.eq.s32.totalorder %v4972_v1, %v5054_v32 }
  0x9f   : > { %vm1269_vm14 = vcmp.eq.s32.totalorder %v4975_v2, %v5054_v32  ;;  %vm1272_vm9 = vcmp.eq.s32.totalorder %v4978_v3, %v5052_v31 }
  0xa0   : > { %605 = vperm.xlu1 %4349, %v471_v33   ;;  %602 = vperm.xlu0 %4348, %v470_v34   ;;  %v5056_v33 = vrot.slane %v1209_v11, %v1257_v15  ;;  %v5059_v34 = vadd.s32 168, %v4966_v63  ;;  %v380_v15 = vld [vmem:[#allocation4 + $0x30] sm:$0xff] }
  0xa1   : > { %412 = vst [vmem:[#allocation9 + $0x30] sm:$0xff] %v380_v15  ;;  %v391_v15 = vld [vmem:[#allocation4 + $0x88] sm:$0xff] }
  0xa2   : > { %vm1262_vm3 = vcmp.eq.s32.totalorder %v4966_v63, %v5056_v33  ;;  %vm1266_vm7 = vcmp.eq.s32.totalorder %v4972_v1, %v5056_v33  ;;  %vm1270_vm8 = vcmp.eq.s32.totalorder %v4975_v2, %v5056_v33  ;;  %v388_v1 = vld [vmem:[#allocation4 + $0x70] sm:$0xff]  ;;  %423 = vst [vmem:[#allocation9 + $0x88] sm:$0xff] %v391_v15 }
  0xa3   : > { %420 = vst [vmem:[#allocation9 + $0x70] sm:$0xff] %v388_v1 }
  0xa4   : > { %611 = vperm.xlu1 %4349, %v473_v35   ;;  %608 = vperm.xlu0 %4348, %v472_v36   ;;  %v5062_v35 = vadd.s32 176, %v4966_v63  ;;  %v5065_v36 = vadd.s32 184, %v4966_v63 }
  0xa8   : > { %617 = vperm.xlu1 %4349, %v475_v37   ;;  %614 = vperm.xlu0 %4348, %v474_v38   ;;  %v5068_v37 = vadd.s32 192, %v4966_v63  ;;  %v5071_v38 = vadd.s32 200, %v4966_v63 }
  0xac   : > { %623 = vperm.xlu1 %4349, %v477_v39   ;;  %620 = vperm.xlu0 %4348, %v476_v40   ;;  %v5074_v39 = vadd.s32 208, %v4966_v63  ;;  %v5077_v40 = vadd.s32 216, %v4966_v63 }
  0xb0   : > { %629 = vperm.xlu1 %4349, %v479_v41   ;;  %626 = vperm.xlu0 %4348, %v478_v42   ;;  %v5080_v41 = vadd.s32 224, %v4966_v63  ;;  %v5083_v42 = vadd.s32 232, %v4966_v63 }
  0xb4   : > { %635 = vperm.xlu1 %4349, %v481_v43   ;;  %632 = vperm.xlu0 %4348, %v480_v44   ;;  %v5086_v43 = vadd.s32 240, %v4966_v63  ;;  %v5089_v44 = vadd.s32 248, %v4966_v63  ;;  %v377_v63 = vld [vmem:[#allocation4 + $0x18] sm:$0xff] }
  0xb5   : > { %409 = vst [vmem:[#allocation9 + $0x18] sm:$0xff] %v377_v63  ;;  %v386_v63 = vld [vmem:[#allocation4 + $0x60] sm:$0xff] }
  0xb6   : > { %418 = vst [vmem:[#allocation9 + $0x60] sm:$0xff] %v386_v63 }
  0xb8   : > { %641 = vperm.xlu1 %4349, %v483_v45   ;;  %638 = vperm.xlu0 %4348, %v482_v46  }
  0xbc   : > { %647 = vperm.xlu1 %4349, %v485_v47   ;;  %644 = vperm.xlu0 %4348, %v484_v48   ;;  %v7642_v47 = vmov 0.0  }
  0xbd   : > { %v5127_v48 = vsel %vm1259_vm0, 1.0, %v7642_v47  ;;  %vm1273_vm0 = vcmp.eq.s32.totalorder %v4978_v3, %v5054_v32  ;;  %v5235_v63 = vsel %vm1269_vm14, 1.0, %v7642_v47  ;;  %v5247_v1 = vsel %vm1271_vm15, 1.0, %v7642_v47 }
  0xc0   : > { %653 = vperm.xlu1 %4349, %v487_v49   ;;  %650 = vperm.xlu0 %4348, %v486_v50   ;;  %v5133_v49 = vsel %vm1260_vm1, 1.0, %v7642_v47  ;;  %vm7698_vm1 = vcmp.eq.s32.totalorder %v4975_v2, %v5047_v29 }
  0xc4   : > { %659 = vperm.xlu1 %4349, %v489_v51   ;;  %656 = vperm.xlu0 %4348, %v488_v52   ;;  %v5140_v51 = vsel %vm1261_vm2, 1.0, %v7642_v47  ;;  %v5146_v52 = vsel %vm1262_vm3, 1.0, %v7642_v47 }
  0xc5   : > { %7697 = vst [vmem:[#allocation15_spill] sm:$0xff] %v5146_v52 }
  0xc8   : > { %665 = vperm.xlu1 %4349, %v491_v53   ;;  %662 = vperm.xlu0 %4348, %v490_v54   ;;  %v5152_v53 = vsel %vm1263_vm4, 1.0, %v7642_v47 }
  0xcc   : > { %671 = vperm.xlu1 %4349, %v493_v55   ;;  %668 = vperm.xlu0 %4348, %v492_v56  }
  0xd0   : > { %677 = vperm.xlu1 %4349, %v495_v58   ;;  %674 = vperm.xlu0 %4348, %v494_v59   ;;  %v374_v59 = vld [vmem:[#allocation4] sm:$0xff] }
  0xd1   : > { %406 = vst [vmem:[#allocation9] sm:$0xff] %v374_v59  ;;  %v383_v59 = vld [vmem:[#allocation4 + $0x48] sm:$0xff] }
  0xd2   : > { %415 = vst [vmem:[#allocation9 + $0x48] sm:$0xff] %v383_v59  ;;  %v394_v59 = vld [vmem:[#allocation4 + $0xa0] sm:$0xff] }
  0xd3   : > { %426 = vst [vmem:[#allocation9 + $0xa0] sm:$0xff] %v394_v59 }
  0xd4   : > { %683 = vperm.xlu1 %4349, %v497_v61   ;;  %680 = vperm.xlu0 %4348, %v496_v62   ;;  %v375_v61 = vld [vmem:[#allocation4 + $0x8] sm:$0xff]  ;;  %v376_v62 = vld [vmem:[#allocation4 + $0x10] sm:$0xff] }
  0xd5   : > { %407 = vst [vmem:[#allocation9 + $0x8] sm:$0xff] %v375_v61  ;;  %408 = vst [vmem:[#allocation9 + $0x10] sm:$0xff] %v376_v62  ;;  %v384_v61 = vld [vmem:[#allocation4 + $0x50] sm:$0xff] }
  0xd6   : > { %416 = vst [vmem:[#allocation9 + $0x50] sm:$0xff] %v384_v61  ;;  %v395_v61 = vld [vmem:[#allocation4 + $0xa8] sm:$0xff] }
  0xd7   : > { %427 = vst [vmem:[#allocation9 + $0xa8] sm:$0xff] %v395_v61 }
  0xd8   : > { %689 = vperm.xlu1 %4349, %v499_v5   ;;  %686 = vperm.xlu0 %4348, %v498_v6   ;;  %v378_v5 = vld [vmem:[#allocation4 + $0x20] sm:$0xff]  ;;  %v379_v6 = vld [vmem:[#allocation4 + $0x28] sm:$0xff] }
  0xd9   : > { %410 = vst [vmem:[#allocation9 + $0x20] sm:$0xff] %v378_v5  ;;  %411 = vst [vmem:[#allocation9 + $0x28] sm:$0xff] %v379_v6  ;;  %v387_v5 = vld [vmem:[#allocation4 + $0x68] sm:$0xff]  ;;  %v389_v6 = vld [vmem:[#allocation4 + $0x78] sm:$0xff] }
  0xda   : > { %419 = vst [vmem:[#allocation9 + $0x68] sm:$0xff] %v387_v5  ;;  %421 = vst [vmem:[#allocation9 + $0x78] sm:$0xff] %v389_v6  ;;  %v5241_v5 = vsel %vm1270_vm8, 1.0, %v7642_v47  ;;  %v5253_v6 = vsel %vm1272_vm9, 1.0, %v7642_v47  ;;  %vm1288_vm9 = vcmp.eq.s32.totalorder %v4996_v9, %v5052_v31 }
  0xdb   : > { %7700 = vst [vmem:[#allocation16_spill] sm:$0xff] %v5241_v5  ;;  %v405_v5 = vld [vmem:[#allocation4 + $0xf8] sm:$0xff] }
  0xdc   : > { %695 = vperm.xlu1 %4349, %v501_v24   ;;  %692 = vperm.xlu0 %4348, %v500_v25   ;;  %v381_v24 = vld [vmem:[#allocation4 + $0x38] sm:$0xff]  ;;  %437 = vst [vmem:[#allocation9 + $0xf8] sm:$0xff] %v405_v5 }
  0xdd   : > { %413 = vst [vmem:[#allocation9 + $0x38] sm:$0xff] %v381_v24  ;;  %v392_v24 = vld [vmem:[#allocation4 + $0x90] sm:$0xff] }
  0xde   : > { %424 = vst [vmem:[#allocation9 + $0x90] sm:$0xff] %v392_v24 }
  0xdf   : > { %v513_v45 = vpop.permute.xlu1 %512  ;;  %v507_v46 = vpop.permute.xlu0 %506 }
  0xe0   : > { %vm701_vm10 = vcmp.eq.s32.totalorder %v4958_v60, %v513_v45  ;;  %vm702_vm11 = vcmp.eq.s32.totalorder %v4969_v0, %v513_v45  ;;  %vm697_vm12 = vcmp.eq.s32.totalorder %v4958_v60, %v507_v46  ;;  %vm698_vm13 = vcmp.eq.s32.totalorder %v4969_v0, %v507_v46 }
  0xe1   : > { %v3702_v50 = vsel %vm701_vm10, 1.0, %v7642_v47  ;;  %v3703_v54 = vsel %vm702_vm11, 1.0, %v7642_v47  ;;  %v3698_v55 = vsel %vm697_vm12, 1.0, %v7642_v47  ;;  %v3699_v56 = vsel %vm698_vm13, 1.0, %v7642_v47 }
  0xe2   : > { %vm1275_vm11 = vcmp.eq.s32.totalorder %v4981_v4, %v5047_v29  ;;  %vm1276_vm12 = vcmp.eq.s32.totalorder %v4981_v4, %v5052_v31  ;;  %vm1277_vm13 = vcmp.eq.s32.totalorder %v4981_v4, %v5054_v32 }
  0xe3   : > { %v516_v57 = vpop.permute.xlu1 %515  ;;  %v510_v58 = vpop.permute.xlu0 %509 }
  0xe4   : > { %vm703_vm2 = vcmp.eq.s32.totalorder %v4958_v60, %v516_v57  ;;  %vm704_vm3 = vcmp.eq.s32.totalorder %v4969_v0, %v516_v57  ;;  %vm699_vm4 = vcmp.eq.s32.totalorder %v4958_v60, %v510_v58  ;;  %vm700_vm10 = vcmp.eq.s32.totalorder %v4969_v0, %v510_v58  ;;  %v382_v58 = vld [vmem:[#allocation4 + $0x40] sm:$0xff] }
  0xe5   : > { %v3704_v10 = vsel %vm703_vm2, 1.0, %v7642_v47  ;;  %v3705_v11 = vsel %vm704_vm3, 1.0, %v7642_v47  ;;  %v3700_v13 = vsel %vm699_vm4, 1.0, %v7642_v47  ;;  %v3701_v14 = vsel %vm700_vm10, 1.0, %v7642_v47  ;;  %414 = vst [vmem:[#allocation9 + $0x40] sm:$0xff] %v382_v58  ;;  %v393_v58 = vld [vmem:[#allocation4 + $0x98] sm:$0xff] }
  0xe6   : > { %v1083_v25 = vpack.c.bf16 %v3704_v10, %v3702_v50  ;;  %v1084_v45 = vpack.c.bf16 %v3705_v11, %v3703_v54  ;;  %v1081_v46 = vpack.c.bf16 %v3700_v13, %v3698_v55  ;;  %v1082_v57 = vpack.c.bf16 %v3701_v14, %v3699_v56  ;;  %v385_v56 = vld [vmem:[#allocation4 + $0x58] sm:$0xff]  ;;  %v390_v10 = vld [vmem:[#allocation4 + $0x80] sm:$0xff]  ;;  %425 = vst [vmem:[#allocation9 + $0x98] sm:$0xff] %v393_v58 }
  0xe7   : > { %v522_v62 = vpop.permute.xlu1 %521  ;;  %v519_v52 = vpop.permute.xlu0 %518  ;;  %v5185_v50 = vsel %vm1264_vm5, 1.0, %v7642_v47  ;;  %v5191_v54 = vsel %vm1265_vm6, 1.0, %v7642_v47  ;;  %v5197_v55 = vsel %vm1266_vm7, 1.0, %v7642_v47  ;;  %vm1281_vm7 = vcmp.eq.s32.totalorder %v4990_v7, %v5054_v32  ;;  %417 = vst [vmem:[#allocation9 + $0x58] sm:$0xff] %v385_v56  ;;  %422 = vst [vmem:[#allocation9 + $0x80] sm:$0xff] %v390_v10  ;;  %v396_v10 = vld [vmem:[#allocation4 + $0xb0] sm:$0xff] }
  0xe8   : > { %1147 = vst [vmem:[#allocation2 + $0x10] sm:$0xff] %v1083_v25  ;;  %1148 = vst [vmem:[#allocation2 + $0x18] sm:$0xff] %v1084_v45  ;;  %vm707_vm5 = vcmp.eq.s32.totalorder %v4958_v60, %v522_v62  ;;  %vm708_vm6 = vcmp.eq.s32.totalorder %v4969_v0, %v522_v62  ;;  %vm705_vm4 = vcmp.eq.s32.totalorder %v4958_v60, %v519_v52  ;;  %v402_v58 = vld [vmem:[#allocation4 + $0xe0] sm:$0xff] }
  0xe9   : > { %1145 = vst [vmem:[#allocation2] sm:$0xff] %v1081_v46  ;;  %1146 = vst [vmem:[#allocation2 + $0x8] sm:$0xff] %v1082_v57  ;;  %vm706_vm10 = vcmp.eq.s32.totalorder %v4969_v0, %v519_v52  ;;  %vm1282_vm3 = vcmp.eq.s32.totalorder %v4990_v7, %v5056_v33  ;;  %vm1283_vm2 = vcmp.eq.s32.totalorder %v4993_v8, %v5047_v29  ;;  %v3708_v52 = vsel %vm707_vm5, 1.0, %v7642_v47 }
  0xea   : > { %v3709_v11 = vsel %vm708_vm6, 1.0, %v7642_v47  ;;  %v3706_v13 = vsel %vm705_vm4, 1.0, %v7642_v47  ;;  %v3707_v14 = vsel %vm706_vm10, 1.0, %v7642_v47  ;;  %v5219_v46 = vsel %vm7698_vm1, 1.0, %v7642_v47  ;;  %428 = vst [vmem:[#allocation9 + $0xb0] sm:$0xff] %v396_v10  ;;  %v403_v10 = vld [vmem:[#allocation4 + $0xe8] sm:$0xff] }
  0xeb   : > { %v1085_v25 = vpack.c.bf16 %v3708_v52, %v3706_v13  ;;  %v1086_v45 = vpack.c.bf16 %v3709_v11, %v3707_v14  ;;  %vm7699_vm5 = vcmp.eq.s32.totalorder %v4975_v2, %v5052_v31  ;;  %v528_v62 = vpop.permute.xlu1 %527  ;;  %v525_v56 = vpop.permute.xlu0 %524  ;;  %vm1285_vm6 = vcmp.eq.s32.totalorder %v4993_v8, %v5054_v32  ;;  %v397_v52 = vld [vmem:[#allocation4 + $0xb8] sm:$0xff]  ;;  %v398_v2 = vld [vmem:[#allocation4 + $0xc0] sm:$0xff]  ;;  %v399_v11 = vld [vmem:[#allocation4 + $0xc8] sm:$0xff]  ;;  %434 = vst [vmem:[#allocation9 + $0xe0] sm:$0xff] %v402_v58 }
  0xec   : > { %v5225_v57 = vsel %vm7699_vm5, 1.0, %v7642_v47  ;;  %vm711_vm8 = vcmp.eq.s32.totalorder %v4958_v60, %v528_v62  ;;  %vm712_vm14 = vcmp.eq.s32.totalorder %v4969_v0, %v528_v62  ;;  %vm709_vm15 = vcmp.eq.s32.totalorder %v4958_v60, %v525_v56  ;;  %v400_v13 = vld [vmem:[#allocation4 + $0xd0] sm:$0xff]  ;;  %429 = vst [vmem:[#allocation9 + $0xb8] sm:$0xff] %v397_v52  ;;  %430 = vst [vmem:[#allocation9 + $0xc0] sm:$0xff] %v398_v2 }
  0xed   : > { %1149 = vst [vmem:[#allocation2 + $0x20] sm:$0xff] %v1085_v25  ;;  %1150 = vst [vmem:[#allocation2 + $0x28] sm:$0xff] %v1086_v45  ;;  %vm710_vm4 = vcmp.eq.s32.totalorder %v4969_v0, %v525_v56  ;;  %vm1287_vm10 = vcmp.eq.s32.totalorder %v4996_v9, %v5047_v29  ;;  %vm1289_vm5 = vcmp.eq.s32.totalorder %v4996_v9, %v5054_v32  ;;  %v3712_v14 = vsel %vm711_vm8, 1.0, %v7642_v47  ;;  %v401_v45 = vld [vmem:[#allocation4 + $0xd8] sm:$0xff]  ;;  %v404_v52 = vld [vmem:[#allocation4 + $0xf0] sm:$0xff] }
  0xee   : > { %vm1290_vm1 = vcmp.eq.s32.totalorder %v4996_v9, %v5056_v33  ;;  %v3713_v15 = vsel %vm712_vm14, 1.0, %v7642_v47  ;;  %v3710_v24 = vsel %vm709_vm15, 1.0, %v7642_v47  ;;  %v3711_v25 = vsel %vm710_vm4, 1.0, %v7642_v47  ;;  %431 = vst [vmem:[#allocation9 + $0xc8] sm:$0xff] %v399_v11  ;;  %432 = vst [vmem:[#allocation9 + $0xd0] sm:$0xff] %v400_v13 }
  0xef   : > { %v1087_v59 = vpack.c.bf16 %v3712_v14, %v3710_v24  ;;  %v1088_v61 = vpack.c.bf16 %v3713_v15, %v3711_v25  ;;  %v5275_v62 = vsel %vm1273_vm0, 1.0, %v7642_v47  ;;  %vm7701_vm8 = vcmp.eq.s32.totalorder %v4978_v3, %v5056_v33  ;;  %433 = vst [vmem:[#allocation9 + $0xd8] sm:$0xff] %v401_v45  ;;  %v534_v2 = vpop.permute.xlu1 %533  ;;  %v531_v11 = vpop.permute.xlu0 %530  ;;  %435 = vst [vmem:[#allocation9 + $0xe8] sm:$0xff] %v403_v10 }
  0xf0   : > { %v5281_v56 = vsel %vm7701_vm8, 1.0, %v7642_v47  ;;  %v5291_v3 = vsel %vm1275_vm11, 1.0, %v7642_v47  ;;  %v5297_v13 = vsel %vm1276_vm12, 1.0, %v7642_v47  ;;  %v5303_v14 = vsel %vm1277_vm13, 1.0, %v7642_v47  ;;  %436 = vst [vmem:[#allocation9 + $0xf0] sm:$0xff] %v404_v52 }
  0xf1   : > { %vm7702_vm15 = vcmp.eq.s32.totalorder %v4981_v4, %v5056_v33  ;;  %1151 = vst [vmem:[#allocation2 + $0x30] sm:$0xff] %v1087_v59  ;;  %1152 = vst [vmem:[#allocation2 + $0x38] sm:$0xff] %v1088_v61  ;;  %vm715_vm11 = vcmp.eq.s32.totalorder %v4958_v60, %v534_v2  ;;  %vm716_vm12 = vcmp.eq.s32.totalorder %v4969_v0, %v534_v2  ;;  %v5347_v2 = vsel %vm1281_vm7, 1.0, %v7642_v47 }
  0xf2   : > { %v5309_v15 = vsel %vm7702_vm15, 1.0, %v7642_v47  ;;  %vm713_vm4 = vcmp.eq.s32.totalorder %v4958_v60, %v531_v11  ;;  %vm714_vm13 = vcmp.eq.s32.totalorder %v4969_v0, %v531_v11  ;;  %vm1293_vm8 = vcmp.eq.s32.totalorder %v5003_v12, %v5054_v32 }
  0xf3   : > { %vm1295_vm0 = vcmp.eq.s32.totalorder %v5009_v16, %v5047_v29  ;;  %v3716_v4 = vsel %vm715_vm11, 1.0, %v7642_v47  ;;  %v3717_v5 = vsel %vm716_vm12, 1.0, %v7642_v47  ;;  %v3714_v24 = vsel %vm713_vm4, 1.0, %v7642_v47  ;;  %v540_v10 = vpop.permute.xlu1 %539  ;;  %v537_v52 = vpop.permute.xlu0 %536 }
  0xf4   : > { %v3715_v25 = vsel %vm714_vm13, 1.0, %v7642_v47  ;;  %v1089_v45 = vpack.c.bf16 %v3716_v4, %v3714_v24  ;;  %vm7703_vm15 = vcmp.eq.s32.totalorder %v4990_v7, %v5047_v29  ;;  %vm7704_vm14 = vcmp.eq.s32.totalorder %v4990_v7, %v5052_v31 }
  0xf5   : > { %v1090_v58 = vpack.c.bf16 %v3717_v5, %v3715_v25  ;;  %v5331_v59 = vsel %vm7703_vm15, 1.0, %v7642_v47  ;;  %v5337_v61 = vsel %vm7704_vm14, 1.0, %v7642_v47  ;;  %vm1297_vm11 = vcmp.eq.s32.totalorder %v5009_v16, %v5054_v32 }
  0xf6   : > { %v5353_v11 = vsel %vm1282_vm3, 1.0, %v7642_v47  ;;  %v5359_v4 = vsel %vm1283_vm2, 1.0, %v7642_v47  ;;  %vm7707_vm14 = vcmp.eq.s32.totalorder %v4993_v8, %v5052_v31  ;;  %1153 = vst [vmem:[#allocation2 + $0x40] sm:$0xff] %v1089_v45  ;;  %vm719_vm7 = vcmp.eq.s32.totalorder %v4958_v60, %v540_v10 }
  0xf7   : > { %7705 = vst [vmem:[#allocation17_spill] sm:$0xff] %v5353_v11  ;;  %7706 = vst [vmem:[#allocation18_spill] sm:$0xff] %v5359_v4  ;;  %v5365_v5 = vsel %vm7707_vm14, 1.0, %v7642_v47  ;;  %vm720_vm4 = vcmp.eq.s32.totalorder %v4969_v0, %v540_v10  ;;  %vm717_vm3 = vcmp.eq.s32.totalorder %v4958_v60, %v537_v52  ;;  %vm718_vm13 = vcmp.eq.s32.totalorder %v4969_v0, %v537_v52  ;;  %v546_v4 = vpop.permute.xlu1 %545  ;;  %v543_v11 = vpop.permute.xlu0 %542 }
  0xf8   : > { %7708 = vst [vmem:[#allocation19_spill] sm:$0xff] %v5365_v5  ;;  %1154 = vst [vmem:[#allocation2 + $0x48] sm:$0xff] %v1090_v58  ;;  %vm1299_vm2 = vcmp.eq.s32.totalorder %v5012_v17, %v5047_v29  ;;  %vm1300_vm15 = vcmp.eq.s32.totalorder %v5012_v17, %v5052_v31  ;;  %vm1301_vm14 = vcmp.eq.s32.totalorder %v5012_v17, %v5054_v32  ;;  %v3720_v7 = vsel %vm719_vm7, 1.0, %v7642_v47 }
  0xf9   : > { %v3721_v24 = vsel %vm720_vm4, 1.0, %v7642_v47  ;;  %v3718_v25 = vsel %vm717_vm3, 1.0, %v7642_v47  ;;  %v3719_v45 = vsel %vm718_vm13, 1.0, %v7642_v47  ;;  %v5387_v52 = vsel %vm1285_vm6, 1.0, %v7642_v47 }
  0xfa   : > { %v1091_v58 = vpack.c.bf16 %v3720_v7, %v3718_v25  ;;  %v1092_v10 = vpack.c.bf16 %v3721_v24, %v3719_v45  ;;  %7709 = vst [vmem:[#allocation20_spill] sm:$0xff] %v5387_v52  ;;  %vm7710_vm12 = vcmp.eq.s32.totalorder %v4993_v8, %v5056_v33  ;;  %vm1303_vm7 = vcmp.eq.s32.totalorder %v5015_v18, %v5047_v29 }
  0xfb   : > { %v5393_v5 = vsel %vm7710_vm12, 1.0, %v7642_v47  ;;  %vm1304_vm4 = vcmp.eq.s32.totalorder %v5015_v18, %v5052_v31  ;;  %v5403_v7 = vsel %vm1287_vm10, 1.0, %v7642_v47  ;;  %v5409_v8 = vsel %vm1288_vm9, 1.0, %v7642_v47  ;;  %v549_v52 = vpop.permute.xlu0 %548 }
  0xfc   : > { %7711 = vst [vmem:[#allocation21_spill] sm:$0xff] %v5393_v5  ;;  %v5415_v24 = vsel %vm1289_vm5, 1.0, %v7642_v47  ;;  %v5421_v25 = vsel %vm1290_vm1, 1.0, %v7642_v47  ;;  %1155 = vst [vmem:[#allocation2 + $0x50] sm:$0xff] %v1091_v58  ;;  %vm723_vm6 = vcmp.eq.s32.totalorder %v4958_v60, %v546_v4  ;;  %vm724_vm10 = vcmp.eq.s32.totalorder %v4969_v0, %v546_v4 }
  0xfd   : > { %7712 = vst [vmem:[#allocation22_spill] sm:$0xff] %v5415_v24  ;;  %7713 = vst [vmem:[#allocation23_spill] sm:$0xff] %v5421_v25  ;;  %vm721_vm9 = vcmp.eq.s32.totalorder %v4958_v60, %v543_v11  ;;  %vm722_vm12 = vcmp.eq.s32.totalorder %v4969_v0, %v543_v11  ;;  %vm1305_vm5 = vcmp.eq.s32.totalorder %v5015_v18, %v5054_v32  ;;  %v3724_v9 = vsel %vm723_vm6, 1.0, %v7642_v47  ;;  %v552_v24 = vpop.permute.xlu1 %551 }
  0xfe   : > { %1156 = vst [vmem:[#allocation2 + $0x58] sm:$0xff] %v1092_v10  ;;  %vm1307_vm1 = vcmp.eq.s32.totalorder %v5018_v19, %v5047_v29  ;;  %v3725_v4 = vsel %vm724_vm10, 1.0, %v7642_v47  ;;  %v3722_v45 = vsel %vm721_vm9, 1.0, %v7642_v47  ;;  %v3723_v11 = vsel %vm722_vm12, 1.0, %v7642_v47 }
  0xff   : > { %v1093_v58 = vpack.c.bf16 %v3724_v9, %v3722_v45  ;;  %v1094_v10 = vpack.c.bf16 %v3725_v4, %v3723_v11  ;;  %vm7714_vm3 = vcmp.eq.s32.totalorder %v5003_v12, %v5047_v29  ;;  %vm7715_vm13 = vcmp.eq.s32.totalorder %v5003_v12, %v5052_v31 }
 0x100   : > { %v5443_v25 = vsel %vm7714_vm3, 1.0, %v7642_v47  ;;  %v5449_v5 = vsel %vm7715_vm13, 1.0, %v7642_v47  ;;  %v5459_v9 = vsel %vm1293_vm8, 1.0, %v7642_v47  ;;  %vm7718_vm9 = vcmp.eq.s32.totalorder %v5003_v12, %v5056_v33 }
 0x101   : > { %7716 = vst [vmem:[#allocation24_spill] sm:$0xff] %v5449_v5  ;;  %7717 = vst [vmem:[#allocation25_spill] sm:$0xff] %v5459_v9  ;;  %v5465_v4 = vsel %vm7718_vm9, 1.0, %v7642_v47  ;;  %v5471_v45 = vsel %vm1295_vm0, 1.0, %v7642_v47  ;;  %vm7721_vm12 = vcmp.eq.s32.totalorder %v5009_v16, %v5052_v31  ;;  %vm727_vm8 = vcmp.eq.s32.totalorder %v4958_v60, %v552_v24  ;;  %v558_v5 = vpop.permute.xlu1 %557 }
 0x102   : > { %7719 = vst [vmem:[#allocation26_spill] sm:$0xff] %v5465_v4  ;;  %7720 = vst [vmem:[#allocation27_spill] sm:$0xff] %v5471_v45  ;;  %v5477_v11 = vsel %vm7721_vm12, 1.0, %v7642_v47  ;;  %vm728_vm3 = vcmp.eq.s32.totalorder %v4969_v0, %v552_v24  ;;  %vm725_vm13 = vcmp.eq.s32.totalorder %v4958_v60, %v549_v52  ;;  %vm726_vm9 = vcmp.eq.s32.totalorder %v4969_v0, %v549_v52  ;;  %v555_v45 = vpop.permute.xlu0 %554 }
 0x103   : > { %7722 = vst [vmem:[#allocation28_spill] sm:$0xff] %v5477_v11  ;;  %1157 = vst [vmem:[#allocation2 + $0x60] sm:$0xff] %v1093_v58  ;;  %vm1311_vm0 = vcmp.eq.s32.totalorder %v5021_v20, %v5047_v29  ;;  %vm1312_vm10 = vcmp.eq.s32.totalorder %v5021_v20, %v5052_v31  ;;  %vm1313_vm12 = vcmp.eq.s32.totalorder %v5021_v20, %v5054_v32  ;;  %v3728_v12 = vsel %vm727_vm8, 1.0, %v7642_v47 }
 0x104   : > { %1158 = vst [vmem:[#allocation2 + $0x68] sm:$0xff] %v1094_v10  ;;  %v3729_v24 = vsel %vm728_vm3, 1.0, %v7642_v47  ;;  %v3726_v58 = vsel %vm725_vm13, 1.0, %v7642_v47  ;;  %v3727_v52 = vsel %vm726_vm9, 1.0, %v7642_v47  ;;  %v5499_v9 = vsel %vm1297_vm11, 1.0, %v7642_v47 }
 0x105   : > { %v1095_v10 = vpack.c.bf16 %v3728_v12, %v3726_v58  ;;  %v1096_v4 = vpack.c.bf16 %v3729_v24, %v3727_v52  ;;  %vm7723_vm6 = vcmp.eq.s32.totalorder %v5009_v16, %v5056_v33  ;;  %vm1315_vm8 = vcmp.eq.s32.totalorder %v5024_v21, %v5047_v29 }
 0x106   : > { %v5505_v11 = vsel %vm7723_vm6, 1.0, %v7642_v47  ;;  %v5515_v12 = vsel %vm1299_vm2, 1.0, %v7642_v47  ;;  %v5521_v16 = vsel %vm1300_vm15, 1.0, %v7642_v47  ;;  %v5527_v24 = vsel %vm1301_vm14, 1.0, %v7642_v47 }
 0x107   : > { %7724 = vst [vmem:[#allocation29_spill] sm:$0xff] %v5515_v12  ;;  %7725 = vst [vmem:[#allocation30_spill] sm:$0xff] %v5521_v16  ;;  %vm7727_vm11 = vcmp.eq.s32.totalorder %v5012_v17, %v5056_v33  ;;  %vm731_vm2 = vcmp.eq.s32.totalorder %v4958_v60, %v558_v5  ;;  %vm732_vm6 = vcmp.eq.s32.totalorder %v4969_v0, %v558_v5  ;;  %v564_v16 = vpop.permute.xlu1 %563  ;;  %v561_v12 = vpop.permute.xlu0 %560 }
 0x108   : > { %7726 = vst [vmem:[#allocation31_spill] sm:$0xff] %v5527_v24  ;;  %v5533_v58 = vsel %vm7727_vm11, 1.0, %v7642_v47  ;;  %1159 = vst [vmem:[#allocation2 + $0x70] sm:$0xff] %v1095_v10  ;;  %vm729_vm15 = vcmp.eq.s32.totalorder %v4958_v60, %v555_v45  ;;  %vm730_vm13 = vcmp.eq.s32.totalorder %v4969_v0, %v555_v45  ;;  %vm1317_vm14 = vcmp.eq.s32.totalorder %v5024_v21, %v5054_v32 }
 0x109   : > { %7728 = vst [vmem:[#allocation32_spill] sm:$0xff] %v5533_v58  ;;  %1160 = vst [vmem:[#allocation2 + $0x78] sm:$0xff] %v1096_v4  ;;  %vm1318_vm9 = vcmp.eq.s32.totalorder %v5024_v21, %v5056_v33  ;;  %vm1319_vm11 = vcmp.eq.s32.totalorder %v5027_v22, %v5047_v29  ;;  %vm1320_vm3 = vcmp.eq.s32.totalorder %v5027_v22, %v5052_v31  ;;  %v3732_v17 = vsel %vm731_vm2, 1.0, %v7642_v47 }
 0x10a   : > { %v3733_v5 = vsel %vm732_vm6, 1.0, %v7642_v47  ;;  %v3730_v4 = vsel %vm729_vm15, 1.0, %v7642_v47  ;;  %v3731_v45 = vsel %vm730_vm13, 1.0, %v7642_v47  ;;  %v5555_v58 = vsel %vm1303_vm7, 1.0, %v7642_v47 }
 0x10b   : > { %v1097_v52 = vpack.c.bf16 %v3732_v17, %v3730_v4  ;;  %v1098_v10 = vpack.c.bf16 %v3733_v5, %v3731_v45  ;;  %v5561_v24 = vsel %vm1304_vm4, 1.0, %v7642_v47  ;;  %v5571_v17 = vsel %vm1305_vm5, 1.0, %v7642_v47 }
 0x10c   : > { %7729 = vst [vmem:[#allocation33_spill] sm:$0xff] %v5561_v24  ;;  %7730 = vst [vmem:[#allocation34_spill] sm:$0xff] %v5571_v17  ;;  %vm7731_vm7 = vcmp.eq.s32.totalorder %v5015_v18, %v5056_v33  ;;  %v5583_v4 = vsel %vm1307_vm1, 1.0, %v7642_v47  ;;  %vm7734_vm4 = vcmp.eq.s32.totalorder %v5018_v19, %v5052_v31  ;;  %vm735_vm5 = vcmp.eq.s32.totalorder %v4958_v60, %v564_v16  ;;  %v570_v17 = vpop.permute.xlu1 %569  ;;  %v567_v24 = vpop.permute.xlu0 %566 }
 0x10d   : > { %v5577_v5 = vsel %vm7731_vm7, 1.0, %v7642_v47  ;;  %7733 = vst [vmem:[#allocation36_spill] sm:$0xff] %v5583_v4  ;;  %v5589_v45 = vsel %vm7734_vm4, 1.0, %v7642_v47  ;;  %1161 = vst [vmem:[#allocation2 + $0x80] sm:$0xff] %v1097_v52  ;;  %vm736_vm15 = vcmp.eq.s32.totalorder %v4969_v0, %v564_v16  ;;  %vm733_vm13 = vcmp.eq.s32.totalorder %v4958_v60, %v561_v12 }
 0x10e   : > { %7732 = vst [vmem:[#allocation35_spill] sm:$0xff] %v5577_v5  ;;  %7735 = vst [vmem:[#allocation37_spill] sm:$0xff] %v5589_v45  ;;  %vm734_vm7 = vcmp.eq.s32.totalorder %v4969_v0, %v561_v12  ;;  %vm1323_vm1 = vcmp.eq.s32.totalorder %v5030_v23, %v5047_v29  ;;  %vm1325_vm4 = vcmp.eq.s32.totalorder %v5030_v23, %v5054_v32  ;;  %v3736_v18 = vsel %vm735_vm5, 1.0, %v7642_v47 }
 0x10f   : > { %1162 = vst [vmem:[#allocation2 + $0x88] sm:$0xff] %v1098_v10  ;;  %v3737_v16 = vsel %vm736_vm15, 1.0, %v7642_v47  ;;  %v3734_v52 = vsel %vm733_vm13, 1.0, %v7642_v47  ;;  %v3735_v12 = vsel %vm734_vm7, 1.0, %v7642_v47  ;;  %vm7736_vm6 = vcmp.eq.s32.totalorder %v5018_v19, %v5054_v32 }
 0x110   : > { %v1099_v10 = vpack.c.bf16 %v3736_v18, %v3734_v52  ;;  %v1100_v45 = vpack.c.bf16 %v3737_v16, %v3735_v12  ;;  %v5611_v4 = vsel %vm7736_vm6, 1.0, %v7642_v47  ;;  %vm7738_vm2 = vcmp.eq.s32.totalorder %v5018_v19, %v5056_v33 }
 0x111   : > { %7737 = vst [vmem:[#allocation38_spill] sm:$0xff] %v5611_v4  ;;  %v5617_v5 = vsel %vm7738_vm2, 1.0, %v7642_v47  ;;  %vm1327_vm5 = vcmp.eq.s32.totalorder %v5039_v26, %v5047_v29  ;;  %v5627_v18 = vsel %vm1311_vm0, 1.0, %v7642_v47  ;;  %v5633_v19 = vsel %vm1312_vm10, 1.0, %v7642_v47  ;;  %v573_v4 = vpop.permute.xlu0 %572 }
 0x112   : > { %7739 = vst [vmem:[#allocation39_spill] sm:$0xff] %v5617_v5  ;;  %v5639_v16 = vsel %vm1313_vm12, 1.0, %v7642_v47  ;;  %vm7741_vm2 = vcmp.eq.s32.totalorder %v5021_v20, %v5056_v33  ;;  %1163 = vst [vmem:[#allocation2 + $0x90] sm:$0xff] %v1099_v10  ;;  %vm739_vm0 = vcmp.eq.s32.totalorder %v4958_v60, %v570_v17  ;;  %vm740_vm6 = vcmp.eq.s32.totalorder %v4969_v0, %v570_v17 }
 0x113   : > { %7740 = vst [vmem:[#allocation40_spill] sm:$0xff] %v5639_v16  ;;  %v5645_v52 = vsel %vm7741_vm2, 1.0, %v7642_v47  ;;  %1164 = vst [vmem:[#allocation2 + $0x98] sm:$0xff] %v1100_v45  ;;  %vm737_vm10 = vcmp.eq.s32.totalorder %v4958_v60, %v567_v24  ;;  %vm738_vm13 = vcmp.eq.s32.totalorder %v4969_v0, %v567_v24  ;;  %vm1329_vm12 = vcmp.eq.s32.totalorder %v5039_v26, %v5054_v32  ;;  %v576_v16 = vpop.permute.xlu1 %575 }
 0x114   : > { %7742 = vst [vmem:[#allocation41_spill] sm:$0xff] %v5645_v52  ;;  %vm1330_vm7 = vcmp.eq.s32.totalorder %v5039_v26, %v5056_v33  ;;  %vm1331_vm2 = vcmp.eq.s32.totalorder %v5042_v27, %v5047_v29  ;;  %v3740_v20 = vsel %vm739_vm0, 1.0, %v7642_v47  ;;  %v3741_v17 = vsel %vm740_vm6, 1.0, %v7642_v47 }
 0x115   : > { %v3738_v45 = vsel %vm737_vm10, 1.0, %v7642_v47  ;;  %v3739_v24 = vsel %vm738_vm13, 1.0, %v7642_v47  ;;  %v5667_v52 = vsel %vm1315_vm8, 1.0, %v7642_v47  ;;  %vm7743_vm15 = vcmp.eq.s32.totalorder %v5024_v21, %v5052_v31 }
 0x116   : > { %v1101_v12 = vpack.c.bf16 %v3740_v20, %v3738_v45  ;;  %v1102_v10 = vpack.c.bf16 %v3741_v17, %v3739_v24  ;;  %v5673_v5 = vsel %vm7743_vm15, 1.0, %v7642_v47  ;;  %vm1333_vm0 = vcmp.eq.s32.totalorder %v5042_v27, %v5054_v32 }
 0x117   : > { %7744 = vst [vmem:[#allocation42_spill] sm:$0xff] %v5673_v5  ;;  %vm1334_vm6 = vcmp.eq.s32.totalorder %v5042_v27, %v5056_v33  ;;  %v5683_v20 = vsel %vm1317_vm14, 1.0, %v7642_v47  ;;  %v5689_v17 = vsel %vm1318_vm9, 1.0, %v7642_v47  ;;  %v5695_v45 = vsel %vm1319_vm11, 1.0, %v7642_v47  ;;  %v582_v5 = vpop.permute.xlu1 %581 }
 0x118   : > { %7745 = vst [vmem:[#allocation43_spill] sm:$0xff] %v5683_v20  ;;  %7746 = vst [vmem:[#allocation44_spill] sm:$0xff] %v5689_v17  ;;  %v5701_v24 = vsel %vm1320_vm3, 1.0, %v7642_v47  ;;  %vm743_vm8 = vcmp.eq.s32.totalorder %v4958_v60, %v576_v16  ;;  %vm744_vm14 = vcmp.eq.s32.totalorder %v4969_v0, %v576_v16  ;;  %vm741_vm9 = vcmp.eq.s32.totalorder %v4958_v60, %v573_v4 }
 0x119   : > { %7747 = vst [vmem:[#allocation45_spill] sm:$0xff] %v5695_v45  ;;  %7748 = vst [vmem:[#allocation46_spill] sm:$0xff] %v5701_v24  ;;  %vm742_vm15 = vcmp.eq.s32.totalorder %v4969_v0, %v573_v4  ;;  %vm1335_vm11 = vcmp.eq.s32.totalorder %v5045_v28, %v5047_v29  ;;  %vm1337_vm3 = vcmp.eq.s32.totalorder %v5045_v28, %v5054_v32  ;;  %v3744_v21 = vsel %vm743_vm8, 1.0, %v7642_v47  ;;  %v579_v45 = vpop.permute.xlu0 %578 }
 0x11a   : > { %1165 = vst [vmem:[#allocation2 + $0xa0] sm:$0xff] %v1101_v12  ;;  %1166 = vst [vmem:[#allocation2 + $0xa8] sm:$0xff] %v1102_v10  ;;  %v3745_v16 = vsel %vm744_vm14, 1.0, %v7642_v47  ;;  %v3742_v12 = vsel %vm741_vm9, 1.0, %v7642_v47  ;;  %v3743_v4 = vsel %vm742_vm15, 1.0, %v7642_v47  ;;  %vm7749_vm10 = vcmp.eq.s32.totalorder %v5027_v22, %v5054_v32 }
 0x11b   : > { %v1103_v10 = vpack.c.bf16 %v3744_v21, %v3742_v12  ;;  %v1104_v17 = vpack.c.bf16 %v3745_v16, %v3743_v4  ;;  %v5723_v20 = vsel %vm7749_vm10, 1.0, %v7642_v47  ;;  %vm7750_vm13 = vcmp.eq.s32.totalorder %v5027_v22, %v5056_v33 }
 0x11c   : > { %v5729_v24 = vsel %vm7750_vm13, 1.0, %v7642_v47  ;;  %v5739_v21 = vsel %vm1323_vm1, 1.0, %v7642_v47  ;;  %vm7752_vm9 = vcmp.eq.s32.totalorder %v5030_v23, %v5052_v31  ;;  %v5751_v16 = vsel %vm1325_vm4, 1.0, %v7642_v47 }
 0x11d   : > { %7751 = vst [vmem:[#allocation47_spill] sm:$0xff] %v5739_v21  ;;  %v5745_v22 = vsel %vm7752_vm9, 1.0, %v7642_v47  ;;  %7754 = vst [vmem:[#allocation49_spill] sm:$0xff] %v5751_v16  ;;  %vm7755_vm15 = vcmp.eq.s32.totalorder %v5030_v23, %v5056_v33  ;;  %vm747_vm1 = vcmp.eq.s32.totalorder %v4958_v60, %v582_v5  ;;  %vm748_vm10 = vcmp.eq.s32.totalorder %v4969_v0, %v582_v5  ;;  %v585_v21 = vpop.permute.xlu0 %584 }
 0x11e   : > { %7753 = vst [vmem:[#allocation48_spill] sm:$0xff] %v5745_v22  ;;  %v5757_v12 = vsel %vm7755_vm15, 1.0, %v7642_v47  ;;  %1167 = vst [vmem:[#allocation2 + $0xb0] sm:$0xff] %v1103_v10  ;;  %vm745_vm13 = vcmp.eq.s32.totalorder %v4958_v60, %v579_v45  ;;  %vm746_vm9 = vcmp.eq.s32.totalorder %v4969_v0, %v579_v45  ;;  %vm1341_vm4 = vcmp.eq.s32.totalorder %v5050_v30, %v5054_v32  ;;  %v588_v22 = vpop.permute.xlu1 %587 }
 0x11f   : > { %7756 = vst [vmem:[#allocation50_spill] sm:$0xff] %v5757_v12  ;;  %1168 = vst [vmem:[#allocation2 + $0xb8] sm:$0xff] %v1104_v17  ;;  %vm1342_vm14 = vcmp.eq.s32.totalorder %v5050_v30, %v5056_v33  ;;  %vm1343_vm15 = vcmp.eq.s32.totalorder %v5059_v34, %v5047_v29  ;;  %v3748_v23 = vsel %vm747_vm1, 1.0, %v7642_v47  ;;  %v3749_v5 = vsel %vm748_vm10, 1.0, %v7642_v47 }
 0x120   : > { %v3746_v17 = vsel %vm745_vm13, 1.0, %v7642_v47  ;;  %v3747_v45 = vsel %vm746_vm9, 1.0, %v7642_v47  ;;  %v5779_v12 = vsel %vm1327_vm5, 1.0, %v7642_v47  ;;  %vm7757_vm8 = vcmp.eq.s32.totalorder %v5039_v26, %v5052_v31 }
 0x121   : > { %v1105_v4 = vpack.c.bf16 %v3748_v23, %v3746_v17  ;;  %v1106_v10 = vpack.c.bf16 %v3749_v5, %v3747_v45  ;;  %v5785_v16 = vsel %vm7757_vm8, 1.0, %v7642_v47  ;;  %vm1345_vm1 = vcmp.eq.s32.totalorder %v5059_v34, %v5054_v32 }
 0x122   : > { %7758 = vst [vmem:[#allocation51_spill] sm:$0xff] %v5785_v16  ;;  %v5795_v23 = vsel %vm1329_vm12, 1.0, %v7642_v47  ;;  %v5801_v5 = vsel %vm1330_vm7, 1.0, %v7642_v47  ;;  %v5807_v17 = vsel %vm1331_vm2, 1.0, %v7642_v47  ;;  %vm7762_vm5 = vcmp.eq.s32.totalorder %v5042_v27, %v5052_v31  ;;  %v591_v16 = vpop.permute.xlu0 %590 }
 0x123   : > { %7759 = vst [vmem:[#allocation52_spill] sm:$0xff] %v5795_v23  ;;  %7760 = vst [vmem:[#allocation53_spill] sm:$0xff] %v5801_v5  ;;  %v5813_v45 = vsel %vm7762_vm5, 1.0, %v7642_v47  ;;  %vm751_vm12 = vcmp.eq.s32.totalorder %v4958_v60, %v588_v22  ;;  %vm752_vm8 = vcmp.eq.s32.totalorder %v4969_v0, %v588_v22  ;;  %vm749_vm7 = vcmp.eq.s32.totalorder %v4958_v60, %v585_v21  ;;  %v594_v23 = vpop.permute.xlu1 %593 }
 0x124   : > { %7761 = vst [vmem:[#allocation54_spill] sm:$0xff] %v5807_v17  ;;  %7763 = vst [vmem:[#allocation55_spill] sm:$0xff] %v5813_v45  ;;  %vm750_vm13 = vcmp.eq.s32.totalorder %v4969_v0, %v585_v21  ;;  %vm1347_vm2 = vcmp.eq.s32.totalorder %v5062_v35, %v5047_v29  ;;  %vm1348_vm9 = vcmp.eq.s32.totalorder %v5062_v35, %v5052_v31  ;;  %v3752_v26 = vsel %vm751_vm12, 1.0, %v7642_v47 }
 0x125   : > { %1169 = vst [vmem:[#allocation2 + $0xc0] sm:$0xff] %v1105_v4  ;;  %1170 = vst [vmem:[#allocation2 + $0xc8] sm:$0xff] %v1106_v10  ;;  %vm1349_vm5 = vcmp.eq.s32.totalorder %v5062_v35, %v5054_v32  ;;  %vm1350_vm10 = vcmp.eq.s32.totalorder %v5062_v35, %v5056_v33  ;;  %v3753_v22 = vsel %vm752_vm8, 1.0, %v7642_v47  ;;  %v3750_v4 = vsel %vm749_vm7, 1.0, %v7642_v47 }
 0x126   : > { %v3751_v21 = vsel %vm750_vm13, 1.0, %v7642_v47  ;;  %v1107_v10 = vpack.c.bf16 %v3752_v26, %v3750_v4  ;;  %v5835_v17 = vsel %vm1333_vm0, 1.0, %v7642_v47  ;;  %v5841_v5 = vsel %vm1334_vm6, 1.0, %v7642_v47 }
 0x127   : > { %v1108_v45 = vpack.c.bf16 %v3753_v22, %v3751_v21  ;;  %7764 = vst [vmem:[#allocation56_spill] sm:$0xff] %v5835_v17  ;;  %7765 = vst [vmem:[#allocation57_spill] sm:$0xff] %v5841_v5  ;;  %v5851_v26 = vsel %vm1335_vm11, 1.0, %v7642_v47  ;;  %vm7766_vm0 = vcmp.eq.s32.totalorder %v5045_v28, %v5052_v31  ;;  %v5863_v22 = vsel %vm1337_vm3, 1.0, %v7642_v47  ;;  %v597_v17 = vpop.permute.xlu0 %596 }
 0x128   : > { %v5857_v27 = vsel %vm7766_vm0, 1.0, %v7642_v47  ;;  %7767 = vst [vmem:[#allocation58_spill] sm:$0xff] %v5863_v22  ;;  %vm7768_vm6 = vcmp.eq.s32.totalorder %v5045_v28, %v5056_v33  ;;  %1171 = vst [vmem:[#allocation2 + $0xd0] sm:$0xff] %v1107_v10  ;;  %vm755_vm11 = vcmp.eq.s32.totalorder %v4958_v60, %v594_v23  ;;  %vm756_vm7 = vcmp.eq.s32.totalorder %v4969_v0, %v594_v23  ;;  %v600_v22 = vpop.permute.xlu1 %599 }
 0x129   : > { %v5869_v4 = vsel %vm7768_vm6, 1.0, %v7642_v47  ;;  %1172 = vst [vmem:[#allocation2 + $0xd8] sm:$0xff] %v1108_v45  ;;  %vm753_vm13 = vcmp.eq.s32.totalorder %v4958_v60, %v591_v16  ;;  %vm754_vm0 = vcmp.eq.s32.totalorder %v4969_v0, %v591_v16  ;;  %vm1353_vm3 = vcmp.eq.s32.totalorder %v5065_v36, %v5054_v32 }
 0x12a   : > { %7769 = vst [vmem:[#allocation59_spill] sm:$0xff] %v5869_v4  ;;  %vm1355_vm6 = vcmp.eq.s32.totalorder %v5068_v37, %v5047_v29  ;;  %v3756_v28 = vsel %vm755_vm11, 1.0, %v7642_v47  ;;  %v3757_v23 = vsel %vm756_vm7, 1.0, %v7642_v47  ;;  %v3754_v45 = vsel %vm753_vm13, 1.0, %v7642_v47 }
 0x12b   : > { %v3755_v16 = vsel %vm754_vm0, 1.0, %v7642_v47  ;;  %v1109_v21 = vpack.c.bf16 %v3756_v28, %v3754_v45  ;;  %vm7770_vm8 = vcmp.eq.s32.totalorder %v5050_v30, %v5047_v29  ;;  %vm7771_vm12 = vcmp.eq.s32.totalorder %v5050_v30, %v5052_v31 }
 0x12c   : > { %v1110_v10 = vpack.c.bf16 %v3757_v23, %v3755_v16  ;;  %v5891_v4 = vsel %vm7770_vm8, 1.0, %v7642_v47  ;;  %v5897_v5 = vsel %vm7771_vm12, 1.0, %v7642_v47  ;;  %vm1357_vm11 = vcmp.eq.s32.totalorder %v5068_v37, %v5054_v32 }
 0x12d   : > { %7772 = vst [vmem:[#allocation60_spill] sm:$0xff] %v5897_v5  ;;  %v5907_v28 = vsel %vm1341_vm4, 1.0, %v7642_v47  ;;  %v5913_v23 = vsel %vm1342_vm14, 1.0, %v7642_v47  ;;  %v5919_v45 = vsel %vm1343_vm15, 1.0, %v7642_v47  ;;  %vm7776_vm12 = vcmp.eq.s32.totalorder %v5059_v34, %v5052_v31  ;;  %1173 = vst [vmem:[#allocation2 + $0xe0] sm:$0xff] %v1109_v21  ;;  %v606_v5 = vpop.permute.xlu1 %605 }
 0x12e   : > { %7773 = vst [vmem:[#allocation61_spill] sm:$0xff] %v5907_v28  ;;  %7774 = vst [vmem:[#allocation62_spill] sm:$0xff] %v5913_v23  ;;  %v5925_v16 = vsel %vm7776_vm12, 1.0, %v7642_v47  ;;  %vm759_vm4 = vcmp.eq.s32.totalorder %v4958_v60, %v600_v22  ;;  %vm760_vm8 = vcmp.eq.s32.totalorder %v4969_v0, %v600_v22  ;;  %vm757_vm14 = vcmp.eq.s32.totalorder %v4958_v60, %v597_v17 }
 0x12f   : > { %7775 = vst [vmem:[#allocation63_spill] sm:$0xff] %v5919_v45  ;;  %7777 = vst [vmem:[#allocation64_spill] sm:$0xff] %v5925_v16  ;;  %vm758_vm13 = vcmp.eq.s32.totalorder %v4969_v0, %v597_v17  ;;  %vm1359_vm15 = vcmp.eq.s32.totalorder %v5071_v38, %v5047_v29  ;;  %vm1360_vm0 = vcmp.eq.s32.totalorder %v5071_v38, %v5052_v31  ;;  %v3760_v30 = vsel %vm759_vm4, 1.0, %v7642_v47  ;;  %v603_v45 = vpop.permute.xlu0 %602 }
 0x130   : > { %1174 = vst [vmem:[#allocation2 + $0xe8] sm:$0xff] %v1110_v10  ;;  %vm1361_vm12 = vcmp.eq.s32.totalorder %v5071_v38, %v5054_v32  ;;  %v3761_v22 = vsel %vm760_vm8, 1.0, %v7642_v47  ;;  %v3758_v21 = vsel %vm757_vm14, 1.0, %v7642_v47  ;;  %v3759_v17 = vsel %vm758_vm13, 1.0, %v7642_v47 }
 0x131   : > { %v1111_v10 = vpack.c.bf16 %v3760_v30, %v3758_v21  ;;  %v1112_v23 = vpack.c.bf16 %v3761_v22, %v3759_v17  ;;  %v5947_v28 = vsel %vm1345_vm1, 1.0, %v7642_v47  ;;  %vm7778_vm7 = vcmp.eq.s32.totalorder %v5059_v34, %v5056_v33 }
 0x132   : > { %v5953_v16 = vsel %vm7778_vm7, 1.0, %v7642_v47  ;;  %vm1363_vm4 = vcmp.eq.s32.totalorder %v5074_v39, %v5047_v29  ;;  %vm1364_vm8 = vcmp.eq.s32.totalorder %v5074_v39, %v5052_v31  ;;  %v5963_v30 = vsel %vm1347_vm2, 1.0, %v7642_v47 }
 0x133   : > { %7779 = vst [vmem:[#allocation65_spill] sm:$0xff] %v5963_v30  ;;  %v5969_v34 = vsel %vm1348_vm9, 1.0, %v7642_v47  ;;  %v5975_v22 = vsel %vm1349_vm5, 1.0, %v7642_v47  ;;  %v5981_v21 = vsel %vm1350_vm10, 1.0, %v7642_v47  ;;  %1175 = vst [vmem:[#allocation2 + $0xf0] sm:$0xff] %v1111_v10  ;;  %vm763_vm1 = vcmp.eq.s32.totalorder %v4958_v60, %v606_v5  ;;  %v609_v30 = vpop.permute.xlu0 %608 }
 0x134   : > { %7780 = vst [vmem:[#allocation66_spill] sm:$0xff] %v5969_v34  ;;  %7781 = vst [vmem:[#allocation67_spill] sm:$0xff] %v5975_v22  ;;  %vm764_vm2 = vcmp.eq.s32.totalorder %v4969_v0, %v606_v5  ;;  %vm761_vm9 = vcmp.eq.s32.totalorder %v4958_v60, %v603_v45  ;;  %vm762_vm7 = vcmp.eq.s32.totalorder %v4969_v0, %v603_v45  ;;  %v3764_v35 = vsel %vm763_vm1, 1.0, %v7642_v47  ;;  %v612_v34 = vpop.permute.xlu1 %611 }
 0x135   : > { %7782 = vst [vmem:[#allocation68_spill] sm:$0xff] %v5981_v21  ;;  %1176 = vst [vmem:[#allocation2 + $0xf8] sm:$0xff] %v1112_v23  ;;  %vm1365_vm5 = vcmp.eq.s32.totalorder %v5074_v39, %v5054_v32  ;;  %vm1367_vm10 = vcmp.eq.s32.totalorder %v5077_v40, %v5047_v29  ;;  %v3765_v5 = vsel %vm764_vm2, 1.0, %v7642_v47  ;;  %v3762_v23 = vsel %vm761_vm9, 1.0, %v7642_v47 }
 0x136   : > { %v3763_v45 = vsel %vm762_vm7, 1.0, %v7642_v47  ;;  %v1113_v17 = vpack.c.bf16 %v3764_v35, %v3762_v23  ;;  %vm7783_vm14 = vcmp.eq.s32.totalorder %v5065_v36, %v5047_v29  ;;  %vm7784_vm13 = vcmp.eq.s32.totalorder %v5065_v36, %v5052_v31 }
 0x137   : > { %v1114_v10 = vpack.c.bf16 %v3765_v5, %v3763_v45  ;;  %v6003_v21 = vsel %vm7783_vm14, 1.0, %v7642_v47  ;;  %v6009_v22 = vsel %vm7784_vm13, 1.0, %v7642_v47  ;;  %v6019_v35 = vsel %vm1353_vm3, 1.0, %v7642_v47 }
 0x138   : > { %7785 = vst [vmem:[#allocation69_spill] sm:$0xff] %v6009_v22  ;;  %7786 = vst [vmem:[#allocation70_spill] sm:$0xff] %v6019_v35  ;;  %vm7787_vm9 = vcmp.eq.s32.totalorder %v5065_v36, %v5056_v33  ;;  %v6031_v23 = vsel %vm1355_vm6, 1.0, %v7642_v47  ;;  %vm7790_vm7 = vcmp.eq.s32.totalorder %v5068_v37, %v5052_v31  ;;  %vm767_vm3 = vcmp.eq.s32.totalorder %v4958_v60, %v612_v34  ;;  %v618_v35 = vpop.permute.xlu1 %617  ;;  %v615_v22 = vpop.permute.xlu0 %614 }
 0x139   : > { %v6025_v5 = vsel %vm7787_vm9, 1.0, %v7642_v47  ;;  %7789 = vst [vmem:[#allocation72_spill] sm:$0xff] %v6031_v23  ;;  %v6037_v45 = vsel %vm7790_vm7, 1.0, %v7642_v47  ;;  %1177 = vst [vmem:[#allocation2 + $0x100] sm:$0xff] %v1113_v17  ;;  %vm768_vm14 = vcmp.eq.s32.totalorder %v4969_v0, %v612_v34  ;;  %vm765_vm13 = vcmp.eq.s32.totalorder %v4958_v60, %v609_v30 }
 0x13a   : > { %7788 = vst [vmem:[#allocation71_spill] sm:$0xff] %v6025_v5  ;;  %7791 = vst [vmem:[#allocation73_spill] sm:$0xff] %v6037_v45  ;;  %vm766_vm9 = vcmp.eq.s32.totalorder %v4969_v0, %v609_v30  ;;  %vm1371_vm6 = vcmp.eq.s32.totalorder %v5080_v41, %v5047_v29  ;;  %vm1372_vm2 = vcmp.eq.s32.totalorder %v5080_v41, %v5052_v31  ;;  %v3768_v36 = vsel %vm767_vm3, 1.0, %v7642_v47 }
 0x13b   : > { %1178 = vst [vmem:[#allocation2 + $0x108] sm:$0xff] %v1114_v10  ;;  %vm1373_vm7 = vcmp.eq.s32.totalorder %v5080_v41, %v5054_v32  ;;  %v3769_v34 = vsel %vm768_vm14, 1.0, %v7642_v47  ;;  %v3766_v17 = vsel %vm765_vm13, 1.0, %v7642_v47  ;;  %v3767_v30 = vsel %vm766_vm9, 1.0, %v7642_v47 }
 0x13c   : > { %v1115_v10 = vpack.c.bf16 %v3768_v36, %v3766_v17  ;;  %v1116_v45 = vpack.c.bf16 %v3769_v34, %v3767_v30  ;;  %v6059_v23 = vsel %vm1357_vm11, 1.0, %v7642_v47  ;;  %vm7792_vm1 = vcmp.eq.s32.totalorder %v5068_v37, %v5056_v33 }
 0x13d   : > { %v6065_v5 = vsel %vm7792_vm1, 1.0, %v7642_v47  ;;  %vm1375_vm3 = vcmp.eq.s32.totalorder %v5083_v42, %v5047_v29  ;;  %v6075_v36 = vsel %vm1359_vm15, 1.0, %v7642_v47  ;;  %v6081_v37 = vsel %vm1360_vm0, 1.0, %v7642_v47 }
 0x13e   : > { %7793 = vst [vmem:[#allocation74_spill] sm:$0xff] %v6065_v5  ;;  %v6087_v34 = vsel %vm1361_vm12, 1.0, %v7642_v47  ;;  %vm7795_vm11 = vcmp.eq.s32.totalorder %v5071_v38, %v5056_v33  ;;  %1179 = vst [vmem:[#allocation2 + $0x110] sm:$0xff] %v1115_v10  ;;  %vm771_vm15 = vcmp.eq.s32.totalorder %v4958_v60, %v618_v35  ;;  %vm772_vm1 = vcmp.eq.s32.totalorder %v4969_v0, %v618_v35 }
 0x13f   : > { %7794 = vst [vmem:[#allocation75_spill] sm:$0xff] %v6087_v34  ;;  %v6093_v17 = vsel %vm7795_vm11, 1.0, %v7642_v47  ;;  %1180 = vst [vmem:[#allocation2 + $0x118] sm:$0xff] %v1116_v45  ;;  %vm769_vm0 = vcmp.eq.s32.totalorder %v4958_v60, %v615_v22  ;;  %vm770_vm13 = vcmp.eq.s32.totalorder %v4969_v0, %v615_v22  ;;  %v3772_v38 = vsel %vm771_vm15, 1.0, %v7642_v47 }
 0x140   : > { %7796 = vst [vmem:[#allocation76_spill] sm:$0xff] %v6093_v17  ;;  %v3773_v35 = vsel %vm772_vm1, 1.0, %v7642_v47  ;;  %v3770_v45 = vsel %vm769_vm0, 1.0, %v7642_v47  ;;  %v3771_v22 = vsel %vm770_vm13, 1.0, %v7642_v47  ;;  %vm1381_vm12 = vcmp.eq.s32.totalorder %v5086_v43, %v5054_v32 }
 0x141   : > { %vm1382_vm9 = vcmp.eq.s32.totalorder %v5086_v43, %v5056_v33  ;;  %vm1383_vm11 = vcmp.eq.s32.totalorder %v5089_v44, %v5047_v29  ;;  %vm1384_vm14 = vcmp.eq.s32.totalorder %v5089_v44, %v5052_v31  ;;  %v1117_v30 = vpack.c.bf16 %v3772_v38, %v3770_v45  ;;  %v624_v38 = vpop.permute.xlu1 %623 }
 0x142   : > { %v1118_v10 = vpack.c.bf16 %v3773_v35, %v3771_v22  ;;  %vm1385_vm15 = vcmp.eq.s32.totalorder %v5089_v44, %v5054_v32  ;;  %vm1386_vm1 = vcmp.eq.s32.totalorder %v5089_v44, %v5056_v33  ;;  %v6127_v17 = vsel %vm1363_vm4, 1.0, %v7642_v47  ;;  %v621_v35 = vpop.permute.xlu0 %620 }
 0x143   : > { %7797 = vst [vmem:[#allocation77_spill] sm:$0xff] %v6127_v17  ;;  %v6133_v5 = vsel %vm1364_vm8, 1.0, %v7642_v47  ;;  %v6139_v45 = vsel %vm1365_vm5, 1.0, %v7642_v47  ;;  %vm7800_vm0 = vcmp.eq.s32.totalorder %v5074_v39, %v5056_v33  ;;  %v6151_v17 = vsel %vm1367_vm10, 1.0, %v7642_v47  ;;  %1181 = vst [vmem:[#allocation2 + $0x120] sm:$0xff] %v1117_v30 }
 0x144   : > { %7798 = vst [vmem:[#allocation78_spill] sm:$0xff] %v6133_v5  ;;  %7799 = vst [vmem:[#allocation79_spill] sm:$0xff] %v6139_v45  ;;  %v6145_v22 = vsel %vm7800_vm0, 1.0, %v7642_v47  ;;  %vm7803_vm4 = vcmp.eq.s32.totalorder %v5077_v40, %v5052_v31  ;;  %vm775_vm8 = vcmp.eq.s32.totalorder %v4958_v60, %v624_v38  ;;  %vm776_vm5 = vcmp.eq.s32.totalorder %v4969_v0, %v624_v38 }
 0x145   : > { %7801 = vst [vmem:[#allocation80_spill] sm:$0xff] %v6145_v22  ;;  %7802 = vst [vmem:[#allocation81_spill] sm:$0xff] %v6151_v17  ;;  %v6157_v5 = vsel %vm7803_vm4, 1.0, %v7642_v47  ;;  %vm773_vm13 = vcmp.eq.s32.totalorder %v4958_v60, %v621_v35  ;;  %vm774_vm0 = vcmp.eq.s32.totalorder %v4969_v0, %v621_v35  ;;  %v3776_v39 = vsel %vm775_vm8, 1.0, %v7642_v47  ;;  %v630_v38 = vpop.permute.xlu1 %629 }
 0x146   : > { %7804 = vst [vmem:[#allocation82_spill] sm:$0xff] %v6157_v5  ;;  %1182 = vst [vmem:[#allocation2 + $0x128] sm:$0xff] %v1118_v10  ;;  %v3777_v22 = vsel %vm776_vm5, 1.0, %v7642_v47  ;;  %v3774_v45 = vsel %vm773_vm13, 1.0, %v7642_v47  ;;  %v3775_v17 = vsel %vm774_vm0, 1.0, %v7642_v47  ;;  %vm7805_vm10 = vcmp.eq.s32.totalorder %v5077_v40, %v5054_v32  ;;  %v627_v35 = vpop.permute.xlu0 %626 }
 0x147   : > { %v1119_v34 = vpack.c.bf16 %v3776_v39, %v3774_v45  ;;  %v1120_v5 = vpack.c.bf16 %v3777_v22, %v3775_v17  ;;  %v6171_v30 = vsel %vm7805_vm10, 1.0, %v7642_v47  ;;  %vm7806_vm4 = vcmp.eq.s32.totalorder %v5077_v40, %v5056_v33 }
 0x148   : > { %v6177_v10 = vsel %vm7806_vm4, 1.0, %v7642_v47  ;;  %v6183_v45 = vsel %vm1371_vm6, 1.0, %v7642_v47  ;;  %v6189_v17 = vsel %vm1372_vm2, 1.0, %v7642_v47  ;;  %v6195_v40 = vsel %vm1373_vm7, 1.0, %v7642_v47 }
 0x149   : > { %7807 = vst [vmem:[#allocation83_spill] sm:$0xff] %v6183_v45  ;;  %7808 = vst [vmem:[#allocation84_spill] sm:$0xff] %v6189_v17  ;;  %vm7810_vm8 = vcmp.eq.s32.totalorder %v5080_v41, %v5056_v33  ;;  %vm779_vm6 = vcmp.eq.s32.totalorder %v4958_v60, %v630_v38  ;;  %vm780_vm5 = vcmp.eq.s32.totalorder %v4969_v0, %v630_v38 }
 0x14a   : > { %7809 = vst [vmem:[#allocation85_spill] sm:$0xff] %v6195_v40  ;;  %v6201_v22 = vsel %vm7810_vm8, 1.0, %v7642_v47  ;;  %1183 = vst [vmem:[#allocation2 + $0x130] sm:$0xff] %v1119_v34  ;;  %vm777_vm2 = vcmp.eq.s32.totalorder %v4958_v60, %v627_v35  ;;  %vm778_vm13 = vcmp.eq.s32.totalorder %v4969_v0, %v627_v35  ;;  %v3780_v39 = vsel %vm779_vm6, 1.0, %v7642_v47 }
 0x14b   : > { %7811 = vst [vmem:[#allocation86_spill] sm:$0xff] %v6201_v22  ;;  %1184 = vst [vmem:[#allocation2 + $0x138] sm:$0xff] %v1120_v5  ;;  %v3781_v40 = vsel %vm780_vm5, 1.0, %v7642_v47  ;;  %v3778_v17 = vsel %vm777_vm2, 1.0, %v7642_v47  ;;  %v3779_v41 = vsel %vm778_vm13, 1.0, %v7642_v47  ;;  %v6215_v5 = vsel %vm1375_vm3, 1.0, %v7642_v47 }
 0x14c   : > { %v1121_v45 = vpack.c.bf16 %v3780_v39, %v3778_v17  ;;  %v1122_v22 = vpack.c.bf16 %v3781_v40, %v3779_v41  ;;  %vm7812_vm7 = vcmp.eq.s32.totalorder %v5083_v42, %v5052_v31  ;;  %vm7813_vm0 = vcmp.eq.s32.totalorder %v5083_v42, %v5054_v32  ;;  %v6247_v39 = vpop.permute.xlu1 %635  ;;  %v6249_v41 = vpop.permute.xlu0 %632 }
 0x14d   : > { %v6221_v34 = vsel %vm7812_vm7, 1.0, %v7642_v47  ;;  %v6227_v38 = vsel %vm7813_vm0, 1.0, %v7642_v47  ;;  %vm7814_vm10 = vcmp.eq.s32.totalorder %v5083_v42, %v5056_v33  ;;  %vm7815_vm3 = vcmp.eq.s32.totalorder %v5086_v43, %v5047_v29  ;;  %7817 = vst [vmem:[#allocation87_spill] sm:$0xff] %v6247_v39  ;;  %7818 = vst [vmem:[#allocation88_spill] sm:$0xff] %v6249_v41  ;;  %v7820_v39 = vld [vmem:[#allocation15_spill] sm:$0xff] }
 0x14e   : > { %v6233_v35 = vsel %vm7814_vm10, 1.0, %v7642_v47  ;;  %v6239_v17 = vsel %vm7815_vm3, 1.0, %v7642_v47  ;;  %vm7816_vm4 = vcmp.eq.s32.totalorder %v5086_v43, %v5052_v31  ;;  %1185 = vst [vmem:[#allocation2 + $0x140] sm:$0xff] %v1121_v45  ;;  %1186 = vst [vmem:[#allocation2 + $0x148] sm:$0xff] %v1122_v22  ;;  %v6255_v42 = vsel %vm1381_vm12, 1.0, %v7642_v47 }
 0x14f   : > { %v6245_v40 = vsel %vm7816_vm4, 1.0, %v7642_v47  ;;  %v6261_v0 = vsel %vm1382_vm9, 1.0, %v7642_v47  ;;  %v6267_v60 = vsel %vm1383_vm11, 1.0, %v7642_v47  ;;  %v6273_v45 = vsel %vm1384_vm14, 1.0, %v7642_v47 }
 0x150   : > { %7819 = vst [vmem:[#allocation89_spill] sm:$0xff] %v6261_v0  ;;  %v6279_v22 = vsel %vm1385_vm15, 1.0, %v7642_v47  ;;  %v6285_v43 = vsel %vm1386_vm1, 1.0, %v7642_v47  ;;  %v1643_v29 = vpack.c.bf16 %v5152_v53, %v5127_v48  ;;  %v1644_v31 = vpack.c.bf16 %v5185_v50, %v5133_v49  ;;  %v7821_v47 = vld [vmem:[#allocation16_spill] sm:$0xff]  ;;  %v6307_v53 = vpop.permute.xlu1 %641  ;;  %v6309_v50 = vpop.permute.xlu0 %638 }
 0x151   : > { %v1645_v41 = vpack.c.bf16 %v5191_v54, %v5140_v51  ;;  %v1646_v32 = vpack.c.bf16 %v5197_v55, %v7820_v39  ;;  %v1647_v0 = vpack.c.bf16 %v5247_v1, %v5219_v46  ;;  %v1648_v33 = vpack.c.bf16 %v5253_v6, %v5225_v57  ;;  %v7822_v55 = vld [vmem:[#allocation17_spill] sm:$0xff]  ;;  %v7823_v57 = vld [vmem:[#allocation18_spill] sm:$0xff]  ;;  %v7825_v6 = vld [vmem:[#allocation20_spill] sm:$0xff] }
 0x152   : > { %v1649_v44 = vpack.c.bf16 %v5275_v62, %v5235_v63  ;;  %v1650_v48 = vpack.c.bf16 %v5281_v56, %v7821_v47  ;;  %v1651_v49 = vpack.c.bf16 %v5331_v59, %v5291_v3  ;;  %v1652_v51 = vpack.c.bf16 %v5337_v61, %v5297_v13  ;;  %1707 = vst [vmem:[#allocation3] sm:$0xff] %v1643_v29  ;;  %v7824_v63 = vld [vmem:[#allocation19_spill] sm:$0xff]  ;;  %v7826_v62 = vld [vmem:[#allocation22_spill] sm:$0xff]  ;;  %v7827_v3 = vld [vmem:[#allocation21_spill] sm:$0xff] }
 0x153   : > { %1708 = vst [vmem:[#allocation3 + $0x8] sm:$0xff] %v1644_v31  ;;  %v1653_v54 = vpack.c.bf16 %v5347_v2, %v5303_v14  ;;  %v1654_v46 = vpack.c.bf16 %v7822_v55, %v5309_v15  ;;  %v1655_v47 = vpack.c.bf16 %v5403_v7, %v7823_v57  ;;  %v1656_v1 = vpack.c.bf16 %v5409_v8, %v7824_v63  ;;  %v7828_v13 = vld [vmem:[#allocation23_spill] sm:$0xff]  ;;  %v7830_v15 = vld [vmem:[#allocation24_spill] sm:$0xff]  ;;  %v7832_v7 = vld [vmem:[#allocation25_spill] sm:$0xff] }
 0x154   : > { %1709 = vst [vmem:[#allocation3 + $0x10] sm:$0xff] %v1645_v41  ;;  %1710 = vst [vmem:[#allocation3 + $0x18] sm:$0xff] %v1646_v32  ;;  %v1657_v56 = vpack.c.bf16 %v7826_v62, %v7825_v6  ;;  %v1658_v59 = vpack.c.bf16 %v7828_v13, %v7827_v3  ;;  %v7829_v14 = vld [vmem:[#allocation27_spill] sm:$0xff]  ;;  %v7831_v2 = vld [vmem:[#allocation28_spill] sm:$0xff] }
 0x155   : > { %1711 = vst [vmem:[#allocation3 + $0x20] sm:$0xff] %v1647_v0  ;;  %1712 = vst [vmem:[#allocation3 + $0x28] sm:$0xff] %v1648_v33  ;;  %v1659_v61 = vpack.c.bf16 %v7829_v14, %v5443_v25  ;;  %v1660_v39 = vpack.c.bf16 %v7831_v2, %v7830_v15  ;;  %v1661_v0 = vpack.c.bf16 %v5499_v9, %v7832_v7  ;;  %v7833_v8 = vld [vmem:[#allocation26_spill] sm:$0xff]  ;;  %v7834_v29 = vld [vmem:[#allocation29_spill] sm:$0xff] }
 0x156   : > { %1713 = vst [vmem:[#allocation3 + $0x30] sm:$0xff] %v1649_v44  ;;  %1714 = vst [vmem:[#allocation3 + $0x38] sm:$0xff] %v1650_v48  ;;  %v1662_v41 = vpack.c.bf16 %v5505_v11, %v7833_v8  ;;  %v1663_v31 = vpack.c.bf16 %v5555_v58, %v7834_v29  ;;  %v7835_v32 = vld [vmem:[#allocation30_spill] sm:$0xff]  ;;  %v7836_v33 = vld [vmem:[#allocation33_spill] sm:$0xff]  ;;  %v6343_v58 = vpop.permute.xlu1 %647 }
 0x157   : > { %1715 = vst [vmem:[#allocation3 + $0x40] sm:$0xff] %v1651_v49  ;;  %1716 = vst [vmem:[#allocation3 + $0x48] sm:$0xff] %v1652_v51  ;;  %v1664_v55 = vpack.c.bf16 %v7836_v33, %v7835_v32  ;;  %v7837_v25 = vld [vmem:[#allocation31_spill] sm:$0xff]  ;;  %v7838_v44 = vld [vmem:[#allocation34_spill] sm:$0xff] }
 0x158   : > { %1717 = vst [vmem:[#allocation3 + $0x50] sm:$0xff] %v1653_v54  ;;  %1718 = vst [vmem:[#allocation3 + $0x58] sm:$0xff] %v1654_v46  ;;  %v1665_v48 = vpack.c.bf16 %v7838_v44, %v7837_v25  ;;  %v7839_v49 = vld [vmem:[#allocation32_spill] sm:$0xff]  ;;  %v7840_v51 = vld [vmem:[#allocation35_spill] sm:$0xff]  ;;  %v6345_v54 = vpop.permute.xlu0 %644 }
 0x159   : > { %1719 = vst [vmem:[#allocation3 + $0x60] sm:$0xff] %v1655_v47  ;;  %1720 = vst [vmem:[#allocation3 + $0x68] sm:$0xff] %v1656_v1  ;;  %v1666_v57 = vpack.c.bf16 %v7840_v51, %v7839_v49  ;;  %v7841_v9 = vld [vmem:[#allocation36_spill] sm:$0xff]  ;;  %v7842_v11 = vld [vmem:[#allocation37_spill] sm:$0xff] }
 0x15a   : > { %v1667_v63 = vpack.c.bf16 %v5627_v18, %v7841_v9  ;;  %v1668_v6 = vpack.c.bf16 %v5633_v19, %v7842_v11  ;;  %1721 = vst [vmem:[#allocation3 + $0x70] sm:$0xff] %v1657_v56  ;;  %1722 = vst [vmem:[#allocation3 + $0x78] sm:$0xff] %v1658_v59  ;;  %v7843_v46 = vld [vmem:[#allocation38_spill] sm:$0xff]  ;;  %v7844_v47 = vld [vmem:[#allocation40_spill] sm:$0xff] }
 0x15b   : > { %1723 = vst [vmem:[#allocation3 + $0x80] sm:$0xff] %v1659_v61  ;;  %1724 = vst [vmem:[#allocation3 + $0x88] sm:$0xff] %v1660_v39  ;;  %v1669_v1 = vpack.c.bf16 %v7844_v47, %v7843_v46  ;;  %v7845_v62 = vld [vmem:[#allocation39_spill] sm:$0xff]  ;;  %v7846_v3 = vld [vmem:[#allocation41_spill] sm:$0xff] }
 0x15c   : > { %v1670_v13 = vpack.c.bf16 %v7846_v3, %v7845_v62  ;;  %v7847_v14 = vld [vmem:[#allocation45_spill] sm:$0xff]  ;;  %v7848_v15 = vld [vmem:[#allocation42_spill] sm:$0xff]  ;;  %1725 = vst [vmem:[#allocation3 + $0x90] sm:$0xff] %v1661_v0  ;;  %1726 = vst [vmem:[#allocation3 + $0x98] sm:$0xff] %v1662_v41 }
 0x15d   : > { %v1671_v18 = vpack.c.bf16 %v7847_v14, %v5667_v52  ;;  %v7849_v2 = vld [vmem:[#allocation46_spill] sm:$0xff]  ;;  %1727 = vst [vmem:[#allocation3 + $0xa0] sm:$0xff] %v1663_v31  ;;  %1728 = vst [vmem:[#allocation3 + $0xa8] sm:$0xff] %v1664_v55  ;;  %v7850_v56 = vld [vmem:[#allocation43_spill] sm:$0xff] }
 0x15e   : > { %v1672_v19 = vpack.c.bf16 %v7849_v2, %v7848_v15  ;;  %v1673_v59 = vpack.c.bf16 %v5723_v20, %v7850_v56  ;;  %v7851_v61 = vld [vmem:[#allocation44_spill] sm:$0xff]  ;;  %v7852_v7 = vld [vmem:[#allocation47_spill] sm:$0xff]  ;;  %1729 = vst [vmem:[#allocation3 + $0xb0] sm:$0xff] %v1665_v48  ;;  %1730 = vst [vmem:[#allocation3 + $0xb8] sm:$0xff] %v1666_v57 }
 0x15f   : > { %v1674_v39 = vpack.c.bf16 %v5729_v24, %v7851_v61  ;;  %v1675_v8 = vpack.c.bf16 %v5779_v12, %v7852_v7  ;;  %v7853_v29 = vld [vmem:[#allocation48_spill] sm:$0xff]  ;;  %v7854_v32 = vld [vmem:[#allocation51_spill] sm:$0xff]  ;;  %1731 = vst [vmem:[#allocation3 + $0xc0] sm:$0xff] %v1667_v63  ;;  %1732 = vst [vmem:[#allocation3 + $0xc8] sm:$0xff] %v1668_v6 }
 0x160   : > { %v1676_v33 = vpack.c.bf16 %v7854_v32, %v7853_v29  ;;  %v7855_v52 = vld [vmem:[#allocation49_spill] sm:$0xff]  ;;  %v7856_v0 = vld [vmem:[#allocation52_spill] sm:$0xff]  ;;  %v7857_v31 = vld [vmem:[#allocation50_spill] sm:$0xff]  ;;  %1733 = vst [vmem:[#allocation3 + $0xd0] sm:$0xff] %v1669_v1 }
 0x161   : > { %v1677_v41 = vpack.c.bf16 %v7856_v0, %v7855_v52  ;;  %v7858_v55 = vld [vmem:[#allocation53_spill] sm:$0xff]  ;;  %v7859_v20 = vld [vmem:[#allocation54_spill] sm:$0xff]  ;;  %v7860_v24 = vld [vmem:[#allocation55_spill] sm:$0xff]  ;;  %1734 = vst [vmem:[#allocation3 + $0xd8] sm:$0xff] %v1670_v13 }
 0x162   : > { %v1678_v25 = vpack.c.bf16 %v7858_v55, %v7857_v31  ;;  %v1679_v44 = vpack.c.bf16 %v5851_v26, %v7859_v20  ;;  %v1680_v49 = vpack.c.bf16 %v5857_v27, %v7860_v24  ;;  %1735 = vst [vmem:[#allocation3 + $0xe0] sm:$0xff] %v1671_v18  ;;  %1736 = vst [vmem:[#allocation3 + $0xe8] sm:$0xff] %v1672_v19  ;;  %v7861_v12 = vld [vmem:[#allocation56_spill] sm:$0xff]  ;;  %v7862_v48 = vld [vmem:[#allocation58_spill] sm:$0xff]  ;;  %v6379_v26 = vpop.permute.xlu1 %653  ;;  %v6381_v27 = vpop.permute.xlu0 %650 }
 0x163   : > { %v1681_v51 = vpack.c.bf16 %v7862_v48, %v7861_v12  ;;  %v7863_v57 = vld [vmem:[#allocation57_spill] sm:$0xff]  ;;  %v7864_v9 = vld [vmem:[#allocation59_spill] sm:$0xff]  ;;  %v7866_v46 = vld [vmem:[#allocation60_spill] sm:$0xff]  ;;  %1737 = vst [vmem:[#allocation3 + $0xf0] sm:$0xff] %v1673_v59 }
 0x164   : > { %v1682_v63 = vpack.c.bf16 %v7864_v9, %v7863_v57  ;;  %v7865_v11 = vld [vmem:[#allocation63_spill] sm:$0xff]  ;;  %v7867_v47 = vld [vmem:[#allocation64_spill] sm:$0xff]  ;;  %1738 = vst [vmem:[#allocation3 + $0xf8] sm:$0xff] %v1674_v39  ;;  %1739 = vst [vmem:[#allocation3 + $0x100] sm:$0xff] %v1675_v8 }
 0x165   : > { %v1683_v6 = vpack.c.bf16 %v7865_v11, %v5891_v4  ;;  %v1684_v62 = vpack.c.bf16 %v7867_v47, %v7866_v46  ;;  %1740 = vst [vmem:[#allocation3 + $0x108] sm:$0xff] %v1676_v33  ;;  %v7868_v1 = vld [vmem:[#allocation61_spill] sm:$0xff]  ;;  %v7869_v13 = vld [vmem:[#allocation62_spill] sm:$0xff]  ;;  %1741 = vst [vmem:[#allocation3 + $0x110] sm:$0xff] %v1677_v41  ;;  %v1705_v46 = vpack.c.bf16 %v6279_v22, %v6255_v42 }
 0x166   : > { %v1685_v3 = vpack.c.bf16 %v5947_v28, %v7868_v1  ;;  %v1686_v14 = vpack.c.bf16 %v5953_v16, %v7869_v13  ;;  %v7870_v18 = vld [vmem:[#allocation65_spill] sm:$0xff]  ;;  %v7871_v15 = vld [vmem:[#allocation66_spill] sm:$0xff]  ;;  %1742 = vst [vmem:[#allocation3 + $0x118] sm:$0xff] %v1678_v25  ;;  %1743 = vst [vmem:[#allocation3 + $0x120] sm:$0xff] %v1679_v44  ;;  %v6415_v9 = vpop.permute.xlu1 %659 }
 0x167   : > { %v1687_v4 = vpack.c.bf16 %v6003_v21, %v7870_v18  ;;  %v7872_v2 = vld [vmem:[#allocation69_spill] sm:$0xff]  ;;  %1744 = vst [vmem:[#allocation3 + $0x128] sm:$0xff] %v1680_v49  ;;  %v7873_v56 = vld [vmem:[#allocation67_spill] sm:$0xff]  ;;  %v7874_v59 = vld [vmem:[#allocation70_spill] sm:$0xff] }
 0x168   : > { %v1688_v19 = vpack.c.bf16 %v7872_v2, %v7871_v15  ;;  %v1689_v61 = vpack.c.bf16 %v7874_v59, %v7873_v56  ;;  %v7875_v39 = vld [vmem:[#allocation68_spill] sm:$0xff]  ;;  %v7876_v7 = vld [vmem:[#allocation71_spill] sm:$0xff]  ;;  %v7878_v16 = vld [vmem:[#allocation73_spill] sm:$0xff]  ;;  %1745 = vst [vmem:[#allocation3 + $0x130] sm:$0xff] %v1681_v51 }
 0x169   : > { %v1690_v8 = vpack.c.bf16 %v7876_v7, %v7875_v39  ;;  %v7877_v28 = vld [vmem:[#allocation72_spill] sm:$0xff]  ;;  %v1692_v32 = vpack.c.bf16 %v6081_v37, %v7878_v16  ;;  %1746 = vst [vmem:[#allocation3 + $0x138] sm:$0xff] %v1682_v63  ;;  %1747 = vst [vmem:[#allocation3 + $0x140] sm:$0xff] %v1683_v6  ;;  %v7879_v21 = vld [vmem:[#allocation75_spill] sm:$0xff]  ;;  %v6417_v63 = vpop.permute.xlu0 %656 }
 0x16a   : > { %v1691_v29 = vpack.c.bf16 %v6075_v36, %v7877_v28  ;;  %1748 = vst [vmem:[#allocation3 + $0x148] sm:$0xff] %v1684_v62  ;;  %v1693_v33 = vpack.c.bf16 %v7879_v21, %v6059_v23  ;;  %v7880_v52 = vld [vmem:[#allocation74_spill] sm:$0xff]  ;;  %v7881_v0 = vld [vmem:[#allocation76_spill] sm:$0xff]  ;;  %v7882_v31 = vld [vmem:[#allocation77_spill] sm:$0xff]  ;;  %v666_v1 = vpop.permute.xlu1 %665 }
 0x16b   : > { %v1694_v41 = vpack.c.bf16 %v7881_v0, %v7880_v52  ;;  %v7883_v55 = vld [vmem:[#allocation81_spill] sm:$0xff]  ;;  %v7884_v20 = vld [vmem:[#allocation78_spill] sm:$0xff]  ;;  %1749 = vst [vmem:[#allocation3 + $0x150] sm:$0xff] %v1685_v3  ;;  %1750 = vst [vmem:[#allocation3 + $0x158] sm:$0xff] %v1686_v14 }
 0x16c   : > { %v1695_v25 = vpack.c.bf16 %v7883_v55, %v7882_v31  ;;  %v7885_v44 = vld [vmem:[#allocation82_spill] sm:$0xff]  ;;  %1751 = vst [vmem:[#allocation3 + $0x160] sm:$0xff] %v1687_v4  ;;  %1752 = vst [vmem:[#allocation3 + $0x168] sm:$0xff] %v1688_v19  ;;  %v7886_v36 = vld [vmem:[#allocation79_spill] sm:$0xff] }
 0x16d   : > { %v1696_v24 = vpack.c.bf16 %v7885_v44, %v7884_v20  ;;  %v1697_v37 = vpack.c.bf16 %v6171_v30, %v7886_v36  ;;  %v7887_v49 = vld [vmem:[#allocation80_spill] sm:$0xff]  ;;  %v7888_v23 = vld [vmem:[#allocation83_spill] sm:$0xff]  ;;  %1753 = vst [vmem:[#allocation3 + $0x170] sm:$0xff] %v1689_v61  ;;  %1754 = vst [vmem:[#allocation3 + $0x178] sm:$0xff] %v1690_v8  ;;  %v6447_v3 = vpop.permute.xlu0 %662 }
 0x16e   : > { %v1698_v12 = vpack.c.bf16 %v6177_v10, %v7887_v49  ;;  %v1699_v48 = vpack.c.bf16 %v6215_v5, %v7888_v23  ;;  %v7889_v51 = vld [vmem:[#allocation84_spill] sm:$0xff]  ;;  %1755 = vst [vmem:[#allocation3 + $0x180] sm:$0xff] %v1691_v29  ;;  %1756 = vst [vmem:[#allocation3 + $0x188] sm:$0xff] %v1692_v32  ;;  %v7890_v11 = vld [vmem:[#allocation85_spill] sm:$0xff]  ;;  %v1703_v5 = vpack.c.bf16 %v6267_v60, %v6239_v17  ;;  %v7896_v17 = vmov 0.0  }
 0x16f   : > { %v1700_v57 = vpack.c.bf16 %v6221_v34, %v7889_v51  ;;  %v1701_v30 = vpack.c.bf16 %v6227_v38, %v7890_v11  ;;  %v7891_v6 = vld [vmem:[#allocation86_spill] sm:$0xff]  ;;  %v1704_v34 = vpack.c.bf16 %v6273_v45, %v6245_v40  ;;  %1757 = vst [vmem:[#allocation3 + $0x190] sm:$0xff] %v1693_v33  ;;  %1758 = vst [vmem:[#allocation3 + $0x198] sm:$0xff] %v1694_v41  ;;  %v7892_v47 = vld [vmem:[#allocation89_spill] sm:$0xff] }
 0x170   : > { %v1702_v10 = vpack.c.bf16 %v6233_v35, %v7891_v6  ;;  %1759 = vst [vmem:[#allocation3 + $0x1a0] sm:$0xff] %v1695_v25  ;;  %1760 = vst [vmem:[#allocation3 + $0x1a8] sm:$0xff] %v1696_v24  ;;  %v1706_v62 = vpack.c.bf16 %v6285_v43, %v7892_v47  ;;  %v7893_v38 = vld [vmem:[#allocation87_spill] sm:$0xff]  ;;  %v7894_v35 = vld [vmem:[#allocation13_spill] sm:$0xff] }
 0x171   : > { %1761 = vst [vmem:[#allocation3 + $0x1b0] sm:$0xff] %v1697_v37  ;;  %1762 = vst [vmem:[#allocation3 + $0x1b8] sm:$0xff] %v1698_v12  ;;  %vm783_vm14 = vcmp.eq.s32.totalorder %v7894_v35, %v7893_v38  ;;  %v7895_v60 = vld [vmem:[#allocation14_spill] sm:$0xff]  ;;  %v7897_v45 = vld [vmem:[#allocation88_spill] sm:$0xff]  ;;  %vm787_vm15 = vcmp.eq.s32.totalorder %v7894_v35, %v6307_v53  ;;  %vm785_vm8 = vcmp.eq.s32.totalorder %v7894_v35, %v6309_v50 }
 0x172   : > { %1763 = vst [vmem:[#allocation3 + $0x1c0] sm:$0xff] %v1699_v48  ;;  %1764 = vst [vmem:[#allocation3 + $0x1c8] sm:$0xff] %v1700_v57  ;;  %vm784_vm12 = vcmp.eq.s32.totalorder %v7895_v60, %v7893_v38  ;;  %v3784_v40 = vsel %vm783_vm14, 1.0, %v7896_v17  ;;  %vm781_vm9 = vcmp.eq.s32.totalorder %v7894_v35, %v7897_v45  ;;  %vm782_vm11 = vcmp.eq.s32.totalorder %v7895_v60, %v7897_v45 }
 0x173   : > { %1765 = vst [vmem:[#allocation3 + $0x1d0] sm:$0xff] %v1701_v30  ;;  %1766 = vst [vmem:[#allocation3 + $0x1d8] sm:$0xff] %v1702_v10  ;;  %v3785_v42 = vsel %vm784_vm12, 1.0, %v7896_v17  ;;  %v3782_v22 = vsel %vm781_vm9, 1.0, %v7896_v17  ;;  %v3783_v43 = vsel %vm782_vm11, 1.0, %v7896_v17  ;;  %vm788_vm1 = vcmp.eq.s32.totalorder %v7895_v60, %v6307_v53 }
 0x174   : > { %1767 = vst [vmem:[#allocation3 + $0x1e0] sm:$0xff] %v1703_v5  ;;  %1768 = vst [vmem:[#allocation3 + $0x1e8] sm:$0xff] %v1704_v34  ;;  %v1123_v13 = vpack.c.bf16 %v3784_v40, %v3782_v22  ;;  %v1124_v14 = vpack.c.bf16 %v3785_v42, %v3783_v43  ;;  %v3788_v18 = vsel %vm787_vm15, 1.0, %v7896_v17  ;;  %v3789_v4 = vsel %vm788_vm1, 1.0, %v7896_v17 }
 0x175   : > { %1769 = vst [vmem:[#allocation3 + $0x1f0] sm:$0xff] %v1705_v46  ;;  %1770 = vst [vmem:[#allocation3 + $0x1f8] sm:$0xff] %v1706_v62  ;;  %vm786_vm6 = vcmp.eq.s32.totalorder %v7895_v60, %v6309_v50  ;;  %vm791_vm5 = vcmp.eq.s32.totalorder %v7894_v35, %v6343_v58  ;;  %vm792_vm2 = vcmp.eq.s32.totalorder %v7895_v60, %v6343_v58  ;;  %v3786_v53 = vsel %vm785_vm8, 1.0, %v7896_v17  ;;  %v672_v50 = vpop.permute.xlu1 %671  ;;  %v669_v58 = vpop.permute.xlu0 %668 }
 0x176   : > { %1187 = vst [vmem:[#allocation2 + $0x150] sm:$0xff] %v1123_v13  ;;  %1188 = vst [vmem:[#allocation2 + $0x158] sm:$0xff] %v1124_v14  ;;  %v3787_v15 = vsel %vm786_vm6, 1.0, %v7896_v17  ;;  %v3792_v2 = vsel %vm791_vm5, 1.0, %v7896_v17  ;;  %v3793_v19 = vsel %vm792_vm2, 1.0, %v7896_v17  ;;  %v1125_v56 = vpack.c.bf16 %v3788_v18, %v3786_v53 }
 0x177   : > { %v1126_v59 = vpack.c.bf16 %v3789_v4, %v3787_v15  ;;  %vm789_vm13 = vcmp.eq.s32.totalorder %v7894_v35, %v6345_v54  ;;  %vm790_vm7 = vcmp.eq.s32.totalorder %v7895_v60, %v6345_v54  ;;  %vm795_vm0 = vcmp.eq.s32.totalorder %v7894_v35, %v6379_v26 }
 0x178   : > { %v3790_v61 = vsel %vm789_vm13, 1.0, %v7896_v17  ;;  %v3791_v39 = vsel %vm790_vm7, 1.0, %v7896_v17  ;;  %vm796_vm10 = vcmp.eq.s32.totalorder %v7895_v60, %v6379_v26  ;;  %1189 = vst [vmem:[#allocation2 + $0x160] sm:$0xff] %v1125_v56  ;;  %v3796_v28 = vsel %vm795_vm0, 1.0, %v7896_v17 }
 0x179   : > { %1190 = vst [vmem:[#allocation2 + $0x168] sm:$0xff] %v1126_v59  ;;  %v1127_v7 = vpack.c.bf16 %v3792_v2, %v3790_v61  ;;  %v1128_v8 = vpack.c.bf16 %v3793_v19, %v3791_v39  ;;  %v3797_v54 = vsel %vm796_vm10, 1.0, %v7896_v17  ;;  %vm793_vm3 = vcmp.eq.s32.totalorder %v7894_v35, %v6381_v27  ;;  %v678_v21 = vpop.permute.xlu1 %677  ;;  %v675_v33 = vpop.permute.xlu0 %674 }
 0x17a   : > { %vm794_vm4 = vcmp.eq.s32.totalorder %v7895_v60, %v6381_v27  ;;  %vm799_vm14 = vcmp.eq.s32.totalorder %v7894_v35, %v6415_v9  ;;  %vm800_vm12 = vcmp.eq.s32.totalorder %v7895_v60, %v6415_v9  ;;  %v3794_v26 = vsel %vm793_vm3, 1.0, %v7896_v17 }
 0x17b   : > { %1191 = vst [vmem:[#allocation2 + $0x170] sm:$0xff] %v1127_v7  ;;  %1192 = vst [vmem:[#allocation2 + $0x178] sm:$0xff] %v1128_v8  ;;  %v3795_v29 = vsel %vm794_vm4, 1.0, %v7896_v17  ;;  %v3800_v16 = vsel %vm799_vm14, 1.0, %v7896_v17  ;;  %v3801_v32 = vsel %vm800_vm12, 1.0, %v7896_v17  ;;  %v1129_v52 = vpack.c.bf16 %v3796_v28, %v3794_v26 }
 0x17c   : > { %v1130_v27 = vpack.c.bf16 %v3797_v54, %v3795_v29  ;;  %vm797_vm9 = vcmp.eq.s32.totalorder %v7894_v35, %v6417_v63  ;;  %vm798_vm11 = vcmp.eq.s32.totalorder %v7895_v60, %v6417_v63  ;;  %vm803_vm15 = vcmp.eq.s32.totalorder %v7894_v35, %v666_v1 }
 0x17d   : > { %v3798_v0 = vsel %vm797_vm9, 1.0, %v7896_v17  ;;  %v3799_v41 = vsel %vm798_vm11, 1.0, %v7896_v17  ;;  %vm804_vm1 = vcmp.eq.s32.totalorder %v7895_v60, %v666_v1  ;;  %1193 = vst [vmem:[#allocation2 + $0x180] sm:$0xff] %v1129_v52  ;;  %v3804_v25 = vsel %vm803_vm15, 1.0, %v7896_v17  ;;  %v684_v44 = vpop.permute.xlu1 %683  ;;  %v681_v24 = vpop.permute.xlu0 %680 }
 0x17e   : > { %1194 = vst [vmem:[#allocation2 + $0x188] sm:$0xff] %v1130_v27  ;;  %v1131_v31 = vpack.c.bf16 %v3800_v16, %v3798_v0  ;;  %v1132_v55 = vpack.c.bf16 %v3801_v32, %v3799_v41  ;;  %v3805_v20 = vsel %vm804_vm1, 1.0, %v7896_v17  ;;  %vm801_vm8 = vcmp.eq.s32.totalorder %v7894_v35, %v6447_v3 }
 0x17f   : > { %vm802_vm6 = vcmp.eq.s32.totalorder %v7895_v60, %v6447_v3  ;;  %vm807_vm5 = vcmp.eq.s32.totalorder %v7894_v35, %v672_v50  ;;  %vm808_vm2 = vcmp.eq.s32.totalorder %v7895_v60, %v672_v50  ;;  %v3802_v36 = vsel %vm801_vm8, 1.0, %v7896_v17 }
 0x180   : > { %1195 = vst [vmem:[#allocation2 + $0x190] sm:$0xff] %v1131_v31  ;;  %1196 = vst [vmem:[#allocation2 + $0x198] sm:$0xff] %v1132_v55  ;;  %v3803_v37 = vsel %vm802_vm6, 1.0, %v7896_v17  ;;  %v3808_v49 = vsel %vm807_vm5, 1.0, %v7896_v17  ;;  %v3809_v12 = vsel %vm808_vm2, 1.0, %v7896_v17  ;;  %v1133_v23 = vpack.c.bf16 %v3804_v25, %v3802_v36 }
 0x181   : > { %v1134_v48 = vpack.c.bf16 %v3805_v20, %v3803_v37  ;;  %vm805_vm13 = vcmp.eq.s32.totalorder %v7894_v35, %v669_v58  ;;  %vm806_vm7 = vcmp.eq.s32.totalorder %v7895_v60, %v669_v58  ;;  %vm811_vm0 = vcmp.eq.s32.totalorder %v7894_v35, %v678_v21  ;;  %v690_v6 = vpop.permute.xlu1 %689  ;;  %v687_v10 = vpop.permute.xlu0 %686 }
 0x182   : > { %v3806_v51 = vsel %vm805_vm13, 1.0, %v7896_v17  ;;  %v3807_v57 = vsel %vm806_vm7, 1.0, %v7896_v17  ;;  %vm812_vm10 = vcmp.eq.s32.totalorder %v7895_v60, %v678_v21  ;;  %1197 = vst [vmem:[#allocation2 + $0x1a0] sm:$0xff] %v1133_v23  ;;  %v3812_v11 = vsel %vm811_vm0, 1.0, %v7896_v17 }
 0x183   : > { %1198 = vst [vmem:[#allocation2 + $0x1a8] sm:$0xff] %v1134_v48  ;;  %v1135_v9 = vpack.c.bf16 %v3808_v49, %v3806_v51  ;;  %v1136_v63 = vpack.c.bf16 %v3809_v12, %v3807_v57  ;;  %v3813_v30 = vsel %vm812_vm10, 1.0, %v7896_v17  ;;  %vm809_vm3 = vcmp.eq.s32.totalorder %v7894_v35, %v675_v33 }
 0x184   : > { %vm810_vm4 = vcmp.eq.s32.totalorder %v7895_v60, %v675_v33  ;;  %vm815_vm14 = vcmp.eq.s32.totalorder %v7894_v35, %v684_v44  ;;  %vm816_vm12 = vcmp.eq.s32.totalorder %v7895_v60, %v684_v44  ;;  %v3810_v5 = vsel %vm809_vm3, 1.0, %v7896_v17 }
 0x185   : > { %1199 = vst [vmem:[#allocation2 + $0x1b0] sm:$0xff] %v1135_v9  ;;  %1200 = vst [vmem:[#allocation2 + $0x1b8] sm:$0xff] %v1136_v63  ;;  %v3811_v34 = vsel %vm810_vm4, 1.0, %v7896_v17  ;;  %v3816_v46 = vsel %vm815_vm14, 1.0, %v7896_v17  ;;  %v3817_v47 = vsel %vm816_vm12, 1.0, %v7896_v17  ;;  %v1137_v62 = vpack.c.bf16 %v3812_v11, %v3810_v5  ;;  %v696_v45 = vpop.permute.xlu1 %695  ;;  %v693_v13 = vpop.permute.xlu0 %692 }
 0x186   : > { %v1138_v38 = vpack.c.bf16 %v3813_v30, %v3811_v34  ;;  %vm813_vm9 = vcmp.eq.s32.totalorder %v7894_v35, %v681_v24  ;;  %vm814_vm11 = vcmp.eq.s32.totalorder %v7895_v60, %v681_v24  ;;  %vm819_vm15 = vcmp.eq.s32.totalorder %v7894_v35, %v690_v6 }
 0x187   : > { %v3814_v40 = vsel %vm813_vm9, 1.0, %v7896_v17  ;;  %v3815_v42 = vsel %vm814_vm11, 1.0, %v7896_v17  ;;  %vm820_vm1 = vcmp.eq.s32.totalorder %v7895_v60, %v690_v6  ;;  %1201 = vst [vmem:[#allocation2 + $0x1c0] sm:$0xff] %v1137_v62  ;;  %v3820_v1 = vsel %vm819_vm15, 1.0, %v7896_v17 }
 0x188   : > { %1202 = vst [vmem:[#allocation2 + $0x1c8] sm:$0xff] %v1138_v38  ;;  %v1139_v22 = vpack.c.bf16 %v3816_v46, %v3814_v40  ;;  %v1140_v43 = vpack.c.bf16 %v3817_v47, %v3815_v42  ;;  %v3821_v3 = vsel %vm820_vm1, 1.0, %v7896_v17  ;;  %vm817_vm8 = vcmp.eq.s32.totalorder %v7894_v35, %v687_v10 }
 0x189   : > { %vm818_vm6 = vcmp.eq.s32.totalorder %v7895_v60, %v687_v10  ;;  %vm823_vm5 = vcmp.eq.s32.totalorder %v7894_v35, %v696_v45  ;;  %vm824_vm2 = vcmp.eq.s32.totalorder %v7895_v60, %v696_v45  ;;  %v3818_v14 = vsel %vm817_vm8, 1.0, %v7896_v17 }
 0x18a   : > { %1203 = vst [vmem:[#allocation2 + $0x1d0] sm:$0xff] %v1139_v22  ;;  %1204 = vst [vmem:[#allocation2 + $0x1d8] sm:$0xff] %v1140_v43  ;;  %v3819_v18 = vsel %vm818_vm6, 1.0, %v7896_v17  ;;  %v3824_v4 = vsel %vm823_vm5, 1.0, %v7896_v17  ;;  %v3825_v53 = vsel %vm824_vm2, 1.0, %v7896_v17  ;;  %v1141_v15 = vpack.c.bf16 %v3820_v1, %v3818_v14 }
 0x18b   : > { %v1142_v2 = vpack.c.bf16 %v3821_v3, %v3819_v18  ;;  %vm821_vm13 = vcmp.eq.s32.totalorder %v7894_v35, %v693_v13  ;;  %vm822_vm7 = vcmp.eq.s32.totalorder %v7895_v60, %v693_v13 }
 0x18c   : > { %v3822_v19 = vsel %vm821_vm13, 1.0, %v7896_v17  ;;  %v3823_v56 = vsel %vm822_vm7, 1.0, %v7896_v17  ;;  %1205 = vst [vmem:[#allocation2 + $0x1e0] sm:$0xff] %v1141_v15 }
 0x18d   : > { %1206 = vst [vmem:[#allocation2 + $0x1e8] sm:$0xff] %v1142_v2  ;;  %v1143_v59 = vpack.c.bf16 %v3824_v4, %v3822_v19  ;;  %v1144_v50 = vpack.c.bf16 %v3825_v53, %v3823_v56 }
 0x18f   : > { %1207 = vst [vmem:[#allocation2 + $0x1f0] sm:$0xff] %v1143_v59  ;;  %1208 = vst [vmem:[#allocation2 + $0x1f8] sm:$0xff] %v1144_v50 }
 0x190 PF: > { %v6543_v58 = vld [vmem:[#allocation9] sm:$0xff]  ;;  %v6545_v61 = vld [vmem:[#allocation9 + $0x10] sm:$0xff]  ;;  %v6549_v35 = vld [vmem:[#allocation9 + $0x8] sm:$0xff]  ;;  %s4591_s11 = smov [#allocation9]   ;;  %p4303_p10 = scmp.eq.s32.totalorder %s4658_s9, 2 }
 0x191   : > { %1803 = vadd.xlane.f32.xlu0 %v6543_v58  ;;  %1807 = vadd.xlane.f32.xlu1 %v6545_v61  ;;  %v6551_v60 = vld [vmem:[#allocation9 + $0x18] sm:$0xff]  ;;  %v6555_v17 = vld [vmem:[#allocation9 + $0x20] sm:$0xff]  ;;  %v6557_v39 = vld [vmem:[#allocation9 + $0x28] sm:$0xff] }
 0x192   : > { %v6561_v7 = vld [vmem:[#allocation9 + $0x30] sm:$0xff]  ;;  %v6563_v8 = vld [vmem:[#allocation9 + $0x38] sm:$0xff]  ;;  %v6565_v28 = vld [vmem:[#allocation9 + $0x40] sm:$0xff] }
 0x193   : > { %v6567_v54 = vld [vmem:[#allocation9 + $0x48] sm:$0xff]  ;;  %v6573_v26 = vld [vmem:[#allocation9 + $0x50] sm:$0xff]  ;;  %v6575_v29 = vld [vmem:[#allocation9 + $0x58] sm:$0xff] }
 0x194   : > { %v6579_v16 = vld [vmem:[#allocation9 + $0x60] sm:$0xff]  ;;  %v6581_v32 = vld [vmem:[#allocation9 + $0x68] sm:$0xff]  ;;  %v6585_v21 = vld [vmem:[#allocation9 + $0x70] sm:$0xff] }
 0x195   : > { %1805 = vadd.xlane.f32.xlu0 %v6549_v35  ;;  %1809 = vadd.xlane.f32.xlu1 %v6551_v60  ;;  %v6587_v33 = vld [vmem:[#allocation9 + $0x78] sm:$0xff]  ;;  %v6591_v52 = vld [vmem:[#allocation9 + $0x80] sm:$0xff]  ;;  %v6593_v27 = vld [vmem:[#allocation9 + $0x88] sm:$0xff] }
 0x196   : > { %v6597_v0 = vld [vmem:[#allocation9 + $0x90] sm:$0xff]  ;;  %v6599_v41 = vld [vmem:[#allocation9 + $0x98] sm:$0xff]  ;;  %v6603_v31 = vld [vmem:[#allocation9 + $0xa0] sm:$0xff] }
 0x197   : > { %v6605_v55 = vld [vmem:[#allocation9 + $0xa8] sm:$0xff]  ;;  %v6609_v25 = vld [vmem:[#allocation9 + $0xb0] sm:$0xff]  ;;  %v6611_v20 = vld [vmem:[#allocation9 + $0xb8] sm:$0xff] }
 0x198   : > { %v6615_v44 = vld [vmem:[#allocation9 + $0xc0] sm:$0xff]  ;;  %v6617_v24 = vld [vmem:[#allocation9 + $0xc8] sm:$0xff]  ;;  %v6621_v36 = vld [vmem:[#allocation9 + $0xd0] sm:$0xff] }
 0x199   : > { %1811 = vadd.xlane.f32.xlu0 %v6555_v17  ;;  %1813 = vadd.xlane.f32.xlu1 %v6557_v39  ;;  %v6623_v37 = vld [vmem:[#allocation9 + $0xd8] sm:$0xff]  ;;  %v6627_v49 = vld [vmem:[#allocation9 + $0xe0] sm:$0xff]  ;;  %v6629_v12 = vld [vmem:[#allocation9 + $0xe8] sm:$0xff] }
 0x19a   : > { %v6633_v23 = vld [vmem:[#allocation9 + $0xf0] sm:$0xff]  ;;  %v6635_v48 = vld [vmem:[#allocation9 + $0xf8] sm:$0xff] }
 0x19d   : > { %1815 = vadd.xlane.f32.xlu0 %v6561_v7  ;;  %1817 = vadd.xlane.f32.xlu1 %v6563_v8 }
 0x1a1   : > { %1819 = vadd.xlane.f32.xlu0 %v6565_v28  ;;  %1821 = vadd.xlane.f32.xlu1 %v6567_v54 }
 0x1a5   : > { %1823 = vadd.xlane.f32.xlu0 %v6573_v26  ;;  %1825 = vadd.xlane.f32.xlu1 %v6575_v29 }
 0x1a9   : > { %1827 = vadd.xlane.f32.xlu0 %v6579_v16  ;;  %1829 = vadd.xlane.f32.xlu1 %v6581_v32 }
 0x1ad   : > { %1831 = vadd.xlane.f32.xlu0 %v6585_v21  ;;  %1833 = vadd.xlane.f32.xlu1 %v6587_v33 }
 0x1b1   : > { %1835 = vadd.xlane.f32.xlu0 %v6591_v52  ;;  %1837 = vadd.xlane.f32.xlu1 %v6593_v27 }
 0x1b5   : > { %1839 = vadd.xlane.f32.xlu0 %v6597_v0  ;;  %1841 = vadd.xlane.f32.xlu1 %v6599_v41 }
 0x1b9   : > { %1843 = vadd.xlane.f32.xlu0 %v6603_v31  ;;  %1845 = vadd.xlane.f32.xlu1 %v6605_v55 }
 0x1bd   : > { %1847 = vadd.xlane.f32.xlu0 %v6609_v25  ;;  %1849 = vadd.xlane.f32.xlu1 %v6611_v20 }
 0x1c1   : > { %1851 = vadd.xlane.f32.xlu0 %v6615_v44  ;;  %1853 = vadd.xlane.f32.xlu1 %v6617_v24 }
 0x1c5   : > { %1855 = vadd.xlane.f32.xlu0 %v6621_v36  ;;  %1857 = vadd.xlane.f32.xlu1 %v6623_v37 }
 0x1c9   : > { %1859 = vadd.xlane.f32.xlu0 %v6627_v49  ;;  %1861 = vadd.xlane.f32.xlu1 %v6629_v12 }
 0x1cd   : > { %1863 = vadd.xlane.f32.xlu0 %v6633_v23  ;;  %1865 = vadd.xlane.f32.xlu1 %v6635_v48 }
 0x21e   : > { %v1804_v51 = vpop.xlane.xlu0 %1803  ;;  %v1808_v57 = vpop.xlane.xlu1 %1807 }
 0x21f   : > { %v1868_v9 = vmul.f32 0.0078125, %v1804_v51  ;;  %v1870_v63 = vmul.f32 0.0078125, %v1808_v57 }
 0x221   : > { %v6640_v11 = vsub.f32 %v6543_v58, %v1868_v9  ;;  %v6643_v30 = vsub.f32 %v6545_v61, %v1870_v63 }
 0x222   : > { %v1806_v6 = vpop.xlane.xlu0 %1805  ;;  %v1810_v10 = vpop.xlane.xlu1 %1809 }
 0x223   : > { %v1869_v5 = vmul.f32 0.0078125, %v1806_v6  ;;  %v1932_v34 = vmul.f32 %v6640_v11, %v6640_v11  ;;  %v1871_v46 = vmul.f32 0.0078125, %v1810_v10  ;;  %v1934_v38 = vmul.f32 %v6643_v30, %v6643_v30 }
 0x225   : > { %v6648_v47 = vsub.f32 %v6549_v35, %v1869_v5  ;;  %1964 = vadd.xlane.f32.xlu0 %v1932_v34  ;;  %v6651_v62 = vsub.f32 %v6551_v60, %v1871_v46 }
 0x226   : > { %v1812_v40 = vpop.xlane.xlu0 %1811  ;;  %v1814_v42 = vpop.xlane.xlu1 %1813 }
 0x227   : > { %v1872_v45 = vmul.f32 0.0078125, %v1812_v40  ;;  %v1933_v22 = vmul.f32 %v6648_v47, %v6648_v47  ;;  %v1873_v43 = vmul.f32 0.0078125, %v1814_v42  ;;  %v1935_v13 = vmul.f32 %v6651_v62, %v6651_v62 }
 0x229   : > { %v6658_v1 = vsub.f32 %v6555_v17, %v1872_v45  ;;  %1968 = vadd.xlane.f32.xlu0 %v1934_v38  ;;  %1966 = vadd.xlane.f32.xlu1 %v1933_v22  ;;  %v6661_v3 = vsub.f32 %v6557_v39, %v1873_v43 }
 0x22a   : > { %v1816_v14 = vpop.xlane.xlu0 %1815  ;;  %v1818_v18 = vpop.xlane.xlu1 %1817 }
 0x22b   : > { %v1874_v4 = vmul.f32 0.0078125, %v1816_v14  ;;  %v1936_v53 = vmul.f32 %v6658_v1, %v6658_v1  ;;  %v1875_v15 = vmul.f32 0.0078125, %v1818_v18  ;;  %v1937_v56 = vmul.f32 %v6661_v3, %v6661_v3 }
 0x22d   : > { %v6668_v2 = vsub.f32 %v6561_v7, %v1874_v4  ;;  %1970 = vadd.xlane.f32.xlu1 %v1935_v13  ;;  %1972 = vadd.xlane.f32.xlu0 %v1936_v53  ;;  %v6671_v19 = vsub.f32 %v6563_v8, %v1875_v15 }
 0x22e   : > { %v1820_v59 = vpop.xlane.xlu0 %1819  ;;  %v1822_v50 = vpop.xlane.xlu1 %1821 }
 0x22f   : > { %v1876_v58 = vmul.f32 0.0078125, %v1820_v59  ;;  %v1938_v61 = vmul.f32 %v6668_v2, %v6668_v2  ;;  %v1877_v35 = vmul.f32 0.0078125, %v1822_v50  ;;  %v1939_v39 = vmul.f32 %v6671_v19, %v6671_v19 }
 0x231   : > { %v6678_v60 = vsub.f32 %v6565_v28, %v1876_v58  ;;  %1974 = vadd.xlane.f32.xlu1 %v1937_v56  ;;  %1976 = vadd.xlane.f32.xlu0 %v1938_v61  ;;  %v6681_v17 = vsub.f32 %v6567_v54, %v1877_v35 }
 0x232   : > { %v1824_v7 = vpop.xlane.xlu0 %1823  ;;  %v1826_v8 = vpop.xlane.xlu1 %1825 }
 0x233   : > { %v1878_v51 = vmul.f32 0.0078125, %v1824_v7  ;;  %v1940_v57 = vmul.f32 %v6678_v60, %v6678_v60  ;;  %v1879_v9 = vmul.f32 0.0078125, %v1826_v8  ;;  %v1941_v54 = vmul.f32 %v6681_v17, %v6681_v17 }
 0x235   : > { %v6688_v63 = vsub.f32 %v6573_v26, %v1878_v51  ;;  %1978 = vadd.xlane.f32.xlu1 %v1939_v39  ;;  %1980 = vadd.xlane.f32.xlu0 %v1940_v57  ;;  %v6691_v28 = vsub.f32 %v6575_v29, %v1879_v9 }
 0x236   : > { %v1828_v6 = vpop.xlane.xlu0 %1827  ;;  %v1830_v10 = vpop.xlane.xlu1 %1829 }
 0x237   : > { %v1880_v5 = vmul.f32 0.0078125, %v1828_v6  ;;  %v1942_v34 = vmul.f32 %v6688_v63, %v6688_v63  ;;  %v1881_v46 = vmul.f32 0.0078125, %v1830_v10  ;;  %v1943_v29 = vmul.f32 %v6691_v28, %v6691_v28 }
 0x239   : > { %v6698_v38 = vsub.f32 %v6579_v16, %v1880_v5  ;;  %1982 = vadd.xlane.f32.xlu1 %v1941_v54  ;;  %1984 = vadd.xlane.f32.xlu0 %v1942_v34  ;;  %v6701_v26 = vsub.f32 %v6581_v32, %v1881_v46 }
 0x23a   : > { %v1832_v40 = vpop.xlane.xlu0 %1831  ;;  %v1834_v42 = vpop.xlane.xlu1 %1833 }
 0x23b   : > { %v1882_v45 = vmul.f32 0.0078125, %v1832_v40  ;;  %v1944_v22 = vmul.f32 %v6698_v38, %v6698_v38  ;;  %v1883_v43 = vmul.f32 0.0078125, %v1834_v42  ;;  %v1945_v32 = vmul.f32 %v6701_v26, %v6701_v26 }
 0x23d   : > { %v6708_v13 = vsub.f32 %v6585_v21, %v1882_v45  ;;  %1986 = vadd.xlane.f32.xlu1 %v1943_v29  ;;  %1988 = vadd.xlane.f32.xlu0 %v1944_v22  ;;  %v6711_v16 = vsub.f32 %v6587_v33, %v1883_v43 }
 0x23e   : > { %v1836_v14 = vpop.xlane.xlu0 %1835  ;;  %v1838_v18 = vpop.xlane.xlu1 %1837 }
 0x23f   : > { %v1884_v4 = vmul.f32 0.0078125, %v1836_v14  ;;  %v1946_v53 = vmul.f32 %v6708_v13, %v6708_v13  ;;  %v1885_v15 = vmul.f32 0.0078125, %v1838_v18  ;;  %v1947_v33 = vmul.f32 %v6711_v16, %v6711_v16 }
 0x241   : > { %v6718_v56 = vsub.f32 %v6591_v52, %v1884_v4  ;;  %1990 = vadd.xlane.f32.xlu1 %v1945_v32  ;;  %1992 = vadd.xlane.f32.xlu0 %v1946_v53  ;;  %v6721_v21 = vsub.f32 %v6593_v27, %v1885_v15  ;;  %v4590_v4 = vmov 0  }
 0x242   : > { %v1840_v59 = vpop.xlane.xlu0 %1839  ;;  %v1842_v50 = vpop.xlane.xlu1 %1841  ;;  %2410 = vmatprep.subr.bf16.mxu0 %v4590_v4 }
 0x243   : > { %v1886_v58 = vmul.f32 0.0078125, %v1840_v59  ;;  %v1948_v61 = vmul.f32 %v6718_v56, %v6718_v56  ;;  %v1887_v35 = vmul.f32 0.0078125, %v1842_v50  ;;  %v1949_v27 = vmul.f32 %v6721_v21, %v6721_v21 }
 0x245   : > { %v6728_v39 = vsub.f32 %v6597_v0, %v1886_v58  ;;  %1994 = vadd.xlane.f32.xlu1 %v1947_v33  ;;  %1996 = vadd.xlane.f32.xlu0 %v1948_v61  ;;  %v6731_v52 = vsub.f32 %v6599_v41, %v1887_v35 }
 0x246   : > { %v1844_v7 = vpop.xlane.xlu0 %1843  ;;  %v1846_v8 = vpop.xlane.xlu1 %1845 }
 0x247   : > { %v1888_v51 = vmul.f32 0.0078125, %v1844_v7  ;;  %v1950_v57 = vmul.f32 %v6728_v39, %v6728_v39  ;;  %v1889_v9 = vmul.f32 0.0078125, %v1846_v8  ;;  %v1951_v41 = vmul.f32 %v6731_v52, %v6731_v52 }
 0x249   : > { %v6738_v54 = vsub.f32 %v6603_v31, %v1888_v51  ;;  %1998 = vadd.xlane.f32.xlu1 %v1949_v27  ;;  %2000 = vadd.xlane.f32.xlu0 %v1950_v57  ;;  %v6741_v0 = vsub.f32 %v6605_v55, %v1889_v9 }
 0x24a   : > { %v1848_v6 = vpop.xlane.xlu0 %1847  ;;  %v1850_v10 = vpop.xlane.xlu1 %1849 }
 0x24b   : > { %v1890_v5 = vmul.f32 0.0078125, %v1848_v6  ;;  %v1952_v34 = vmul.f32 %v6738_v54, %v6738_v54  ;;  %v1891_v46 = vmul.f32 0.0078125, %v1850_v10  ;;  %v1953_v55 = vmul.f32 %v6741_v0, %v6741_v0 }
 0x24d   : > { %v6748_v29 = vsub.f32 %v6609_v25, %v1890_v5  ;;  %2002 = vadd.xlane.f32.xlu1 %v1951_v41  ;;  %2004 = vadd.xlane.f32.xlu0 %v1952_v34  ;;  %v6751_v31 = vsub.f32 %v6611_v20, %v1891_v46  ;;  %v2283_v34 = vld [vmem:[#allocation2 + $0x8] sm:$0xff] }
 0x24e   : > { %v1852_v40 = vpop.xlane.xlu0 %1851  ;;  %v1854_v42 = vpop.xlane.xlu1 %1853  ;;  %2442 = vmatprep.mubr.bf16.mxu0 %v2283_v34 }
 0x24f   : > { %v1892_v45 = vmul.f32 0.0078125, %v1852_v40  ;;  %v1954_v22 = vmul.f32 %v6748_v29, %v6748_v29  ;;  %v1893_v43 = vmul.f32 0.0078125, %v1854_v42  ;;  %v1955_v20 = vmul.f32 %v6751_v31, %v6751_v31 }
 0x251   : > { %v6758_v32 = vsub.f32 %v6615_v44, %v1892_v45  ;;  %2006 = vadd.xlane.f32.xlu1 %v1953_v55  ;;  %2008 = vadd.xlane.f32.xlu0 %v1954_v22  ;;  %v6761_v25 = vsub.f32 %v6617_v24, %v1893_v43 }
 0x252   : > { %v1856_v14 = vpop.xlane.xlu0 %1855  ;;  %v1858_v18 = vpop.xlane.xlu1 %1857 }
 0x253   : > { %v1894_v53 = vmul.f32 0.0078125, %v1856_v14  ;;  %v1956_v15 = vmul.f32 %v6758_v32, %v6758_v32  ;;  %v1895_v33 = vmul.f32 0.0078125, %v1858_v18  ;;  %v1957_v59 = vmul.f32 %v6761_v25, %v6761_v25 }
 0x255   : > { %v6769_v44 = vsub.f32 %v6621_v36, %v1894_v53  ;;  %2010 = vadd.xlane.f32.xlu1 %v1955_v20  ;;  %2012 = vadd.xlane.f32.xlu0 %v1956_v15  ;;  %v6772_v24 = vsub.f32 %v6623_v37, %v1895_v33 }
 0x256   : > { %v1860_v50 = vpop.xlane.xlu0 %1859  ;;  %v1862_v58 = vpop.xlane.xlu1 %1861 }
 0x257   : > { %v1896_v61 = vmul.f32 0.0078125, %v1860_v50  ;;  %v1958_v35 = vmul.f32 %v6769_v44, %v6769_v44  ;;  %v1897_v27 = vmul.f32 0.0078125, %v1862_v58  ;;  %v1959_v37 = vmul.f32 %v6772_v24, %v6772_v24 }
 0x259   : > { %v6779_v7 = vsub.f32 %v6627_v49, %v1896_v61  ;;  %2014 = vadd.xlane.f32.xlu1 %v1957_v59  ;;  %2016 = vadd.xlane.f32.xlu0 %v1958_v35  ;;  %v6782_v36 = vsub.f32 %v6629_v12, %v1897_v27 }
 0x25a   : > { %v1864_v8 = vpop.xlane.xlu0 %1863  ;;  %v1866_v51 = vpop.xlane.xlu1 %1865 }
 0x25b   : > { %v1898_v57 = vmul.f32 0.0078125, %v1864_v8  ;;  %v1960_v9 = vmul.f32 %v6779_v7, %v6779_v7  ;;  %v1899_v41 = vmul.f32 0.0078125, %v1866_v51  ;;  %v1961_v12 = vmul.f32 %v6782_v36, %v6782_v36  ;;  %v6805_v8 = vld [vmem:[%s362_s16] ss:$0 sm:$0xff] }
 0x25d   : > { %v6789_v6 = vsub.f32 %v6633_v23, %v1898_v57  ;;  %2018 = vadd.xlane.f32.xlu1 %v1959_v37  ;;  %2020 = vadd.xlane.f32.xlu0 %v1960_v9  ;;  %v6792_v49 = vsub.f32 %v6635_v48, %v1899_v41 }
 0x25f   : > { %v1962_v10 = vmul.f32 %v6789_v6, %v6789_v6  ;;  %v1963_v5 = vmul.f32 %v6792_v49, %v6792_v49 }
 0x261   : > { %2022 = vadd.xlane.f32.xlu1 %v1961_v12  ;;  %2024 = vadd.xlane.f32.xlu0 %v1962_v10  ;;  %v6813_v10 = vld [vmem:[%s365_s20] ss:$0 sm:$0xff] }
 0x265   : > { %2026 = vadd.xlane.f32.xlu1 %v1963_v5 }
 0x2b2   : > { %v1965_v23 = vpop.xlane.xlu0 %1964 }
 0x2b3   : > { %v2028_v46 = vmul.f32 0.0078125, %v1965_v23 }
 0x2b5   : > { %v2060_v55 = vadd.f32 1e-05, %v2028_v46 }
 0x2b6   : > { %v1967_v40 = vpop.xlane.xlu1 %1966  ;;  %v1969_v48 = vpop.xlane.xlu0 %1968 }
 0x2b7   : > { %4358 = vrsqrt.f32 %v2060_v55  ;;  %v2029_v42 = vmul.f32 0.0078125, %v1967_v40  ;;  %v2030_v45 = vmul.f32 0.0078125, %v1969_v48 }
 0x2b9   : > { %v2061_v22 = vadd.f32 1e-05, %v2029_v42  ;;  %v2062_v43 = vadd.f32 1e-05, %v2030_v45 }
 0x2ba   : > { %v1971_v20 = vpop.xlane.xlu1 %1970  ;;  %v1973_v14 = vpop.xlane.xlu0 %1972 }
 0x2bb   : > { %4360 = vrsqrt.f32 %v2061_v22  ;;  %v2031_v18 = vmul.f32 0.0078125, %v1971_v20  ;;  %v2032_v53 = vmul.f32 0.0078125, %v1973_v14 }
 0x2bc   : > { %4362 = vrsqrt.f32 %v2062_v43 }
 0x2bd   : > { %v2063_v15 = vadd.f32 1e-05, %v2031_v18  ;;  %v2064_v33 = vadd.f32 1e-05, %v2032_v53 }
 0x2be   : > { %v1975_v59 = vpop.xlane.xlu1 %1974  ;;  %v1977_v50 = vpop.xlane.xlu0 %1976 }
 0x2bf   : > { %4364 = vrsqrt.f32 %v2063_v15  ;;  %v2033_v58 = vmul.f32 0.0078125, %v1975_v59  ;;  %v2034_v61 = vmul.f32 0.0078125, %v1977_v50 }
 0x2c0   : > { %4366 = vrsqrt.f32 %v2064_v33 }
 0x2c1   : > { %v4359_v35 = vpop.eup %4358  ;;  %v2065_v27 = vadd.f32 1e-05, %v2033_v58  ;;  %v2066_v37 = vadd.f32 1e-05, %v2034_v61 }
 0x2c2   : > { %v1979_v51 = vpop.xlane.xlu1 %1978  ;;  %v1981_v57 = vpop.xlane.xlu0 %1980  ;;  %v2124_v9 = vmul.f32 %v4359_v35, %v6640_v11 }
 0x2c3   : > { %4368 = vrsqrt.f32 %v2065_v27  ;;  %v2035_v41 = vmul.f32 0.0078125, %v1979_v51  ;;  %v2036_v12 = vmul.f32 0.0078125, %v1981_v57 }
 0x2c4   : > { %4370 = vrsqrt.f32 %v2066_v37  ;;  %v2163_v5 = vmul.f32 %v6805_v8, %v2124_v9 }
 0x2c5   : > { %v4361_v34 = vpop.eup %4360  ;;  %v2067_v23 = vadd.f32 1e-05, %v2035_v41  ;;  %v2068_v46 = vadd.f32 1e-05, %v2036_v12 }
 0x2c6   : > { %v4363_v55 = vpop.eup %4362  ;;  %v1983_v40 = vpop.xlane.xlu1 %1982  ;;  %v2125_v11 = vmul.f32 %v4361_v34, %v6648_v47  ;;  %v6818_v42 = vadd.f32 %v6813_v10, %v2163_v5 }
 0x2c7   : > { %v1985_v48 = vpop.xlane.xlu0 %1984  ;;  %4372 = vrsqrt.f32 %v2067_v23  ;;  %v2037_v45 = vmul.f32 0.0078125, %v1983_v40  ;;  %v2126_v43 = vmul.f32 %v4363_v55, %v6643_v30 }
 0x2c8   : > { %v2038_v22 = vmul.f32 0.0078125, %v1985_v48  ;;  %4374 = vrsqrt.f32 %v2068_v46  ;;  %v2164_v20 = vmul.f32 %v6805_v8, %v2125_v11  ;;  %v7675_v58 = vmax.f32 %v6818_v42, 0.0 }
 0x2c9   : > { %v4365_v14 = vpop.eup %4364  ;;  %v2069_v18 = vadd.f32 1e-05, %v2037_v45  ;;  %v2165_v15 = vmul.f32 %v6805_v8, %v2126_v43 }
 0x2ca   : > { %v2070_v53 = vadd.f32 1e-05, %v2038_v22  ;;  %v4367_v33 = vpop.eup %4366  ;;  %v1987_v59 = vpop.xlane.xlu1 %1986  ;;  %v6824_v47 = vadd.f32 %v6813_v10, %v2164_v20  ;;  %v2127_v61 = vmul.f32 %v4365_v14, %v6651_v62 }
 0x2cb   : > { %v1989_v50 = vpop.xlane.xlu0 %1988  ;;  %4376 = vrsqrt.f32 %v2069_v18  ;;  %v2039_v30 = vmul.f32 0.0078125, %v1987_v59  ;;  %v6829_v27 = vadd.f32 %v6813_v10, %v2165_v15  ;;  %v2128_v57 = vmul.f32 %v4367_v33, %v6658_v1 }
 0x2cc   : > { %v2040_v35 = vmul.f32 0.0078125, %v1989_v50  ;;  %4378 = vrsqrt.f32 %v2070_v53  ;;  %v7674_v37 = vmax.f32 %v6824_v47, 0.0  ;;  %v2166_v51 = vmul.f32 %v6805_v8, %v2127_v61 }
 0x2cd   : > { %v4369_v9 = vpop.eup %4368  ;;  %v2071_v41 = vadd.f32 1e-05, %v2039_v30  ;;  %v7673_v5 = vmax.f32 %v6829_v27, 0.0  ;;  %v2167_v1 = vmul.f32 %v6805_v8, %v2128_v57 }
 0x2ce   : > { %v2072_v12 = vadd.f32 1e-05, %v2040_v35  ;;  %v4371_v34 = vpop.eup %4370  ;;  %v1991_v62 = vpop.xlane.xlu1 %1990  ;;  %v2266_v46 = vpack.c.bf16 %v7674_v37, %v7675_v58  ;;  %v6840_v55 = vadd.f32 %v6813_v10, %v2166_v51  ;;  %v2129_v40 = vmul.f32 %v4369_v9, %v6661_v3 }
 0x2cf   : > { %v1993_v23 = vpop.xlane.xlu0 %1992  ;;  %4380 = vrsqrt.f32 %v2071_v41  ;;  %v2041_v48 = vmul.f32 0.0078125, %v1991_v62  ;;  %v2130_v45 = vmul.f32 %v4371_v34, %v6668_v2  ;;  %v6848_v20 = vadd.f32 %v6813_v10, %v2167_v1 }
 0x2d0   : > { %v2042_v11 = vmul.f32 0.0078125, %v1993_v23  ;;  %4382 = vrsqrt.f32 %v2072_v12  ;;  %2411 = vmatpush1.bf16.msra.mxu0 %v2266_v46  ;;  %v7672_v22 = vmax.f32 %v6840_v55, 0.0  ;;  %v2168_v43 = vmul.f32 %v6805_v8, %v2129_v40 }
 0x2d1   : > { %v4373_v14 = vpop.eup %4372  ;;  %v2073_v18 = vadd.f32 1e-05, %v2041_v48  ;;  %2412 = vmatprep.subr.bf16.mxu0 %v4590_v4  ;;  %v2169_v3 = vmul.f32 %v6805_v8, %v2130_v45  ;;  %v7671_v61 = vmax.f32 %v6848_v20, 0.0 }
 0x2d2   : > { %v2074_v53 = vadd.f32 1e-05, %v2042_v11  ;;  %v4375_v15 = vpop.eup %4374  ;;  %v1995_v33 = vpop.xlane.xlu1 %1994  ;;  %v2267_v2 = vpack.c.bf16 %v7672_v22, %v7673_v5  ;;  %v6857_v50 = vadd.f32 %v6813_v10, %v2168_v43  ;;  %v2131_v30 = vmul.f32 %v4373_v14, %v6671_v19 }
 0x2d3   : > { %v1997_v59 = vpop.xlane.xlu0 %1996  ;;  %4384 = vrsqrt.f32 %v2073_v18  ;;  %v2043_v35 = vmul.f32 0.0078125, %v1995_v33  ;;  %v6862_v57 = vadd.f32 %v6813_v10, %v2169_v3  ;;  %v2132_v12 = vmul.f32 %v4375_v15, %v6678_v60 }
 0x2d4   : > { %v2044_v51 = vmul.f32 0.0078125, %v1997_v59  ;;  %4386 = vrsqrt.f32 %v2074_v53  ;;  %2413 = vmatpush1.bf16.msra.mxu0 %v2267_v2  ;;  %v7670_v9 = vmax.f32 %v6857_v50, 0.0  ;;  %v2170_v41 = vmul.f32 %v6805_v8, %v2131_v30 }
 0x2d5   : > { %v4377_v34 = vpop.eup %4376  ;;  %v2075_v62 = vadd.f32 1e-05, %v2043_v35  ;;  %2414 = vmatprep.subr.bf16.mxu0 %v4590_v4  ;;  %v7669_v19 = vmax.f32 %v6862_v57, 0.0  ;;  %v2171_v45 = vmul.f32 %v6805_v8, %v2132_v12 }
 0x2d6   : > { %v2076_v23 = vadd.f32 1e-05, %v2044_v51  ;;  %v4379_v46 = vpop.eup %4378  ;;  %v1999_v40 = vpop.xlane.xlu1 %1998  ;;  %v2268_v48 = vpack.c.bf16 %v7670_v9, %v7671_v61  ;;  %v6874_v11 = vadd.f32 %v6813_v10, %v2170_v41  ;;  %v2133_v60 = vmul.f32 %v4377_v34, %v6681_v17 }
 0x2d7   : > { %v2001_v1 = vpop.xlane.xlu0 %2000  ;;  %4388 = vrsqrt.f32 %v2075_v62  ;;  %v2045_v43 = vmul.f32 0.0078125, %v1999_v40  ;;  %v2134_v18 = vmul.f32 %v4379_v46, %v6688_v63  ;;  %v6882_v15 = vadd.f32 %v6813_v10, %v2171_v45 }
 0x2d8   : > { %v2046_v14 = vmul.f32 0.0078125, %v2001_v1  ;;  %4390 = vrsqrt.f32 %v2076_v23  ;;  %2415 = vmatpush1.bf16.msra.mxu0 %v2268_v48  ;;  %v7668_v53 = vmax.f32 %v6874_v11, 0.0  ;;  %v2172_v3 = vmul.f32 %v6805_v8, %v2133_v60 }
 0x2d9   : > { %v4381_v33 = vpop.eup %4380  ;;  %v2077_v59 = vadd.f32 1e-05, %v2045_v43  ;;  %2416 = vmatprep.subr.bf16.mxu0 %v4590_v4  ;;  %v2173_v17 = vmul.f32 %v6805_v8, %v2134_v18  ;;  %v7667_v12 = vmax.f32 %v6882_v15, 0.0 }
 0x2da   : > { %v2078_v2 = vadd.f32 1e-05, %v2046_v14  ;;  %v4383_v30 = vpop.eup %4382  ;;  %v2003_v35 = vpop.xlane.xlu1 %2002  ;;  %v2269_v63 = vpack.c.bf16 %v7668_v53, %v7669_v19  ;;  %v6891_v41 = vadd.f32 %v6813_v10, %v2172_v3  ;;  %v2135_v34 = vmul.f32 %v4381_v33, %v6691_v28  ;;  %v2365_v53 = vld [vmem:[%s7625_s1 + $0x98] sm:$0xff] }
 0x2db   : > { %v2005_v51 = vpop.xlane.xlu0 %2004  ;;  %4392 = vrsqrt.f32 %v2077_v59  ;;  %v2047_v62 = vmul.f32 0.0078125, %v2003_v35  ;;  %v6896_v46 = vadd.f32 %v6813_v10, %v2173_v17  ;;  %v2136_v48 = vmul.f32 %v4383_v30, %v6698_v38 }
 0x2dc   : > { %v2048_v23 = vmul.f32 0.0078125, %v2005_v51  ;;  %4394 = vrsqrt.f32 %v2078_v2  ;;  %2417 = vmatpush1.bf16.msra.mxu0 %v2269_v63  ;;  %v7666_v40 = vmax.f32 %v6891_v41, 0.0  ;;  %v2174_v1 = vmul.f32 %v6805_v8, %v2135_v34 }
 0x2dd   : > { %v4385_v60 = vpop.eup %4384  ;;  %v2079_v45 = vadd.f32 1e-05, %v2047_v62  ;;  %2418 = vmatprep.subr.bf16.mxu0 %v4590_v4  ;;  %v7647_v28 = vmax.f32 %v6896_v46, 0.0  ;;  %v2175_v2 = vmul.f32 %v6805_v8, %v2136_v48 }
 0x2de   : > { %v2080_v43 = vadd.f32 1e-05, %v2048_v23  ;;  %v4387_v14 = vpop.eup %4386  ;;  %v2007_v18 = vpop.xlane.xlu1 %2006  ;;  %v2270_v33 = vpack.c.bf16 %v7666_v40, %v7667_v12  ;;  %v6908_v59 = vadd.f32 %v6813_v10, %v2174_v1  ;;  %v2137_v38 = vmul.f32 %v4385_v60, %v6701_v26  ;;  %v2361_v40 = vld [vmem:[%s7625_s1 + $0x78] sm:$0xff]  ;;  %v2363_v12 = vld [vmem:[%s7625_s1 + $0x88] sm:$0xff] }
 0x2df   : > { %v2009_v3 = vpop.xlane.xlu0 %2008  ;;  %4396 = vrsqrt.f32 %v2079_v45  ;;  %v2049_v17 = vmul.f32 0.0078125, %v2007_v18  ;;  %v2138_v35 = vmul.f32 %v4387_v14, %v6708_v13  ;;  %v6916_v34 = vadd.f32 %v6813_v10, %v2175_v2 }
 0x2e0   : > { %v2050_v30 = vmul.f32 0.0078125, %v2009_v3  ;;  %4398 = vrsqrt.f32 %v2080_v43  ;;  %2419 = vmatpush1.bf16.msra.mxu0 %v2270_v33  ;;  %v7644_v51 = vmax.f32 %v6908_v59, 0.0  ;;  %v2176_v63 = vmul.f32 %v6805_v8, %v2137_v38 }
 0x2e1   : > { %v4389_v62 = vpop.eup %4388  ;;  %v2081_v23 = vadd.f32 1e-05, %v2049_v17  ;;  %2420 = vmatprep.subr.bf16.mxu0 %v4590_v4  ;;  %v2177_v26 = vmul.f32 %v6805_v8, %v2138_v35  ;;  %v7646_v14 = vmax.f32 %v6916_v34, 0.0 }
 0x2e2   : > { %v2082_v1 = vadd.f32 1e-05, %v2050_v30  ;;  %v4391_v48 = vpop.eup %4390  ;;  %v2011_v60 = vpop.xlane.xlu1 %2010  ;;  %v2271_v13 = vpack.c.bf16 %v7644_v51, %v7647_v28  ;;  %v6925_v43 = vadd.f32 %v6813_v10, %v2176_v63  ;;  %v2139_v18 = vmul.f32 %v4389_v62, %v6711_v16 }
 0x2e3   : > { %v2013_v45 = vpop.xlane.xlu0 %2012  ;;  %4400 = vrsqrt.f32 %v2081_v23  ;;  %v2051_v3 = vmul.f32 0.0078125, %v2011_v60  ;;  %v6930_v38 = vadd.f32 %v6813_v10, %v2177_v26  ;;  %v2140_v30 = vmul.f32 %v4391_v48, %v6718_v56 }
 0x2e4   : > { %v2052_v33 = vmul.f32 0.0078125, %v2013_v45  ;;  %4402 = vrsqrt.f32 %v2082_v1  ;;  %2421 = vmatpush1.bf16.msra.mxu0 %v2271_v13  ;;  %v7645_v2 = vmax.f32 %v6925_v43, 0.0  ;;  %v2178_v17 = vmul.f32 %v6805_v8, %v2139_v18 }
 0x2e5   : > { %v4393_v35 = vpop.eup %4392  ;;  %v2083_v63 = vadd.f32 1e-05, %v2051_v3  ;;  %2422 = vmatprep.subr.bf16.mxu0 %v4590_v4  ;;  %v7651_v16 = vmax.f32 %v6930_v38, 0.0  ;;  %v2179_v48 = vmul.f32 %v6805_v8, %v2140_v30 }
 0x2e6   : > { %v2084_v51 = vadd.f32 1e-05, %v2052_v33  ;;  %v4395_v62 = vpop.eup %4394  ;;  %v2015_v23 = vpop.xlane.xlu1 %2014  ;;  %v2272_v1 = vpack.c.bf16 %v7645_v2, %v7646_v14  ;;  %v6942_v26 = vadd.f32 %v6813_v10, %v2178_v17  ;;  %v2141_v56 = vmul.f32 %v4393_v35, %v6721_v21 }
 0x2e7   : > { %v2017_v60 = vpop.xlane.xlu0 %2016  ;;  %4404 = vrsqrt.f32 %v2083_v63  ;;  %v2053_v45 = vmul.f32 0.0078125, %v2015_v23  ;;  %v2142_v18 = vmul.f32 %v4395_v62, %v6728_v39  ;;  %v6950_v2 = vadd.f32 %v6813_v10, %v2179_v48 }
 0x2e8   : > { %v2054_v13 = vmul.f32 0.0078125, %v2017_v60  ;;  %4406 = vrsqrt.f32 %v2084_v51  ;;  %2423 = vmatpush1.bf16.msra.mxu0 %v2272_v1  ;;  %v7648_v3 = vmax.f32 %v6942_v26, 0.0  ;;  %v2180_v33 = vmul.f32 %v6805_v8, %v2141_v56 }
 0x2e9   : > { %v4397_v17 = vpop.eup %4396  ;;  %v2085_v14 = vadd.f32 1e-05, %v2053_v45  ;;  %2424 = vmatprep.subr.bf16.mxu0 %v4590_v4  ;;  %v2181_v21 = vmul.f32 %v6805_v8, %v2142_v18  ;;  %v7650_v62 = vmax.f32 %v6950_v2, 0.0 }
 0x2ea   : > { %v2086_v28 = vadd.f32 1e-05, %v2054_v13  ;;  %v4399_v30 = vpop.eup %4398  ;;  %v2019_v35 = vpop.xlane.xlu1 %2018  ;;  %v2273_v39 = vpack.c.bf16 %v7648_v3, %v7651_v16  ;;  %v6959_v51 = vadd.f32 %v6813_v10, %v2180_v33  ;;  %v2143_v23 = vmul.f32 %v4397_v17, %v6731_v52 }
 0x2eb   : > { %v2021_v63 = vpop.xlane.xlu0 %2020  ;;  %4408 = vrsqrt.f32 %v2085_v14  ;;  %v2055_v60 = vmul.f32 0.0078125, %v2019_v35  ;;  %v6964_v56 = vadd.f32 %v6813_v10, %v2181_v21  ;;  %v2144_v13 = vmul.f32 %v4399_v30, %v6738_v54 }
 0x2ec   : > { %v2056_v1 = vmul.f32 0.0078125, %v2021_v63  ;;  %4410 = vrsqrt.f32 %v2086_v28  ;;  %2425 = vmatpush1.bf16.msra.mxu0 %v2273_v39  ;;  %v7649_v48 = vmax.f32 %v6959_v51, 0.0  ;;  %v2182_v45 = vmul.f32 %v6805_v8, %v2143_v23 }
 0x2ed   : > { %v4401_v18 = vpop.eup %4400  ;;  %v2087_v33 = vadd.f32 1e-05, %v2055_v60  ;;  %2426 = vmatprep.subr.bf16.mxu0 %v4590_v4  ;;  %v7665_v52 = vmax.f32 %v6964_v56, 0.0  ;;  %v2183_v30 = vmul.f32 %v6805_v8, %v2144_v13 }
 0x2ee   : > { %v2088_v3 = vadd.f32 1e-05, %v2056_v1  ;;  %v4403_v14 = vpop.eup %4402  ;;  %v2023_v17 = vpop.xlane.xlu1 %2022  ;;  %v2274_v28 = vpack.c.bf16 %v7649_v48, %v7650_v62  ;;  %v6976_v21 = vadd.f32 %v6813_v10, %v2182_v45  ;;  %v2145_v54 = vmul.f32 %v4401_v18, %v6741_v0 }
 0x2ef   : > { %v2025_v35 = vpop.xlane.xlu0 %2024  ;;  %4412 = vrsqrt.f32 %v2087_v33  ;;  %v2057_v63 = vmul.f32 0.0078125, %v2023_v17  ;;  %v2146_v23 = vmul.f32 %v4403_v14, %v6748_v29  ;;  %v6984_v48 = vadd.f32 %v6813_v10, %v2183_v30 }
 0x2f0   : > { %v2058_v39 = vmul.f32 0.0078125, %v2025_v35  ;;  %4414 = vrsqrt.f32 %v2088_v3  ;;  %2427 = vmatpush1.bf16.msra.mxu0 %v2274_v28  ;;  %v7664_v60 = vmax.f32 %v6976_v21, 0.0  ;;  %v2184_v1 = vmul.f32 %v6805_v8, %v2145_v54 }
 0x2f1   : > { %v4405_v45 = vpop.eup %4404  ;;  %v2089_v62 = vadd.f32 1e-05, %v2057_v63  ;;  %2428 = vmatprep.subr.bf16.mxu0 %v4590_v4  ;;  %v2185_v0 = vmul.f32 %v6805_v8, %v2146_v23  ;;  %v7663_v17 = vmax.f32 %v6984_v48, 0.0 }
 0x2f2   : > { %v2090_v16 = vadd.f32 1e-05, %v2058_v39  ;;  %v4407_v13 = vpop.eup %4406  ;;  %v2027_v18 = vpop.xlane.xlu1 %2026  ;;  %v2275_v29 = vpack.c.bf16 %v7664_v60, %v7665_v52  ;;  %v6993_v3 = vadd.f32 %v6813_v10, %v2184_v1  ;;  %v2147_v33 = vmul.f32 %v4405_v45, %v6751_v31  ;;  %v2359_v52 = vld [vmem:[%s7625_s1 + $0x68] sm:$0xff] }
 0x2f3   : > { %4416 = vrsqrt.f32 %v2089_v62  ;;  %v2059_v14 = vmul.f32 0.0078125, %v2027_v18  ;;  %v2148_v35 = vmul.f32 %v4407_v13, %v6758_v32  ;;  %v7001_v30 = vadd.f32 %v6813_v10, %v2185_v0 }
 0x2f4   : > { %4418 = vrsqrt.f32 %v2090_v16  ;;  %2429 = vmatpush1.bf16.msra.mxu0 %v2275_v29  ;;  %v7662_v28 = vmax.f32 %v6993_v3, 0.0  ;;  %v2186_v54 = vmul.f32 %v6805_v8, %v2147_v33 }
 0x2f5   : > { %7898 = vst [vmem:[#allocation90_spill] sm:$0xff] %v7001_v30  ;;  %v4409_v63 = vpop.eup %4408  ;;  %v2091_v39 = vadd.f32 1e-05, %v2059_v14  ;;  %2430 = vmatprep.subr.bf16.mxu0 %v4590_v4  ;;  %v2187_v31 = vmul.f32 %v6805_v8, %v2148_v35  ;;  %v7661_v45 = vmax.f32 %v7001_v30, 0.0 }
 0x2f6   : > { %v4411_v62 = vpop.eup %4410  ;;  %v2276_v32 = vpack.c.bf16 %v7662_v28, %v7663_v17  ;;  %v7010_v16 = vadd.f32 %v6813_v10, %v2186_v54  ;;  %v2149_v23 = vmul.f32 %v4409_v63, %v6761_v25 }
 0x2f7   : > { %4420 = vrsqrt.f32 %v2091_v39  ;;  %v2150_v1 = vmul.f32 %v4411_v62, %v6769_v44  ;;  %v7018_v18 = vadd.f32 %v6813_v10, %v2187_v31 }
 0x2f8   : > { %7899 = vst [vmem:[#allocation91_spill] sm:$0xff] %v7010_v16  ;;  %2431 = vmatpush1.bf16.msra.mxu0 %v2276_v32  ;;  %v7660_v0 = vmax.f32 %v7010_v16, 0.0  ;;  %v2188_v13 = vmul.f32 %v6805_v8, %v2149_v23 }
 0x2f9   : > { %7900 = vst [vmem:[#allocation92_spill] sm:$0xff] %v7018_v18  ;;  %v4413_v29 = vpop.eup %4412  ;;  %2432 = vmatprep.subr.bf16.mxu0 %v4590_v4  ;;  %v2189_v33 = vmul.f32 %v6805_v8, %v2150_v1  ;;  %v7659_v63 = vmax.f32 %v7018_v18, 0.0 }
 0x2fa   : > { %v4415_v14 = vpop.eup %4414  ;;  %v2277_v25 = vpack.c.bf16 %v7660_v0, %v7661_v45  ;;  %v7027_v44 = vadd.f32 %v6813_v10, %v2188_v13  ;;  %v2151_v35 = vmul.f32 %v4413_v29, %v6772_v24  ;;  %v2341_v0 = vld [vmem:[#allocation2 + $0x1d8] sm:$0xff] }
 0x2fb   : > { %v2152_v54 = vmul.f32 %v4415_v14, %v6779_v7  ;;  %v7035_v62 = vadd.f32 %v6813_v10, %v2189_v33 }
 0x2fc   : > { %7901 = vst [vmem:[#allocation93_spill] sm:$0xff] %v7027_v44  ;;  %2433 = vmatpush1.bf16.msra.mxu0 %v2277_v25  ;;  %v7658_v39 = vmax.f32 %v7027_v44, 0.0  ;;  %v2190_v31 = vmul.f32 %v6805_v8, %v2151_v35 }
 0x2fd   : > { %7902 = vst [vmem:[#allocation94_spill] sm:$0xff] %v7035_v62  ;;  %v4417_v32 = vpop.eup %4416  ;;  %2434 = vmatprep.subr.bf16.mxu0 %v4590_v4  ;;  %v2191_v23 = vmul.f32 %v6805_v8, %v2152_v54  ;;  %v7657_v33 = vmax.f32 %v7035_v62, 0.0 }
 0x2fe   : > { %v4419_v1 = vpop.eup %4418  ;;  %v2278_v24 = vpack.c.bf16 %v7658_v39, %v7659_v63  ;;  %v7044_v7 = vadd.f32 %v6813_v10, %v2190_v31  ;;  %v2153_v13 = vmul.f32 %v4417_v32, %v6782_v36 }
 0x2ff   : > { %v2154_v29 = vmul.f32 %v4419_v1, %v6789_v6  ;;  %v7052_v35 = vadd.f32 %v6813_v10, %v2191_v23 }
 0x300   : > { %7903 = vst [vmem:[#allocation95_spill] sm:$0xff] %v7044_v7  ;;  %2435 = vmatpush1.bf16.msra.mxu0 %v2278_v24  ;;  %v7654_v14 = vmax.f32 %v7044_v7, 0.0  ;;  %v2192_v25 = vmul.f32 %v6805_v8, %v2153_v13 }
 0x301   : > { %7904 = vst [vmem:[#allocation96_spill] sm:$0xff] %v7052_v35  ;;  %v4421_v54 = vpop.eup %4420  ;;  %2436 = vmatprep.subr.bf16.mxu0 %v4590_v4  ;;  %v2193_v31 = vmul.f32 %v6805_v8, %v2154_v29  ;;  %v7653_v1 = vmax.f32 %v7052_v35, 0.0 }
 0x302   : > { %v2279_v36 = vpack.c.bf16 %v7654_v14, %v7657_v33  ;;  %v7061_v6 = vadd.f32 %v6813_v10, %v2192_v25  ;;  %v2155_v32 = vmul.f32 %v4421_v54, %v6792_v49  ;;  %v2293_v14 = vld [vmem:[#allocation2 + $0x58] sm:$0xff] }
 0x303   : > { %v7068_v13 = vadd.f32 %v6813_v10, %v2193_v31  ;;  %v2282_v31 = vld [vmem:[#allocation2] sm:$0xff] }
 0x304   : > { %7905 = vst [vmem:[#allocation97_spill] sm:$0xff] %v7061_v6  ;;  %2437 = vmatpush1.bf16.msra.mxu0 %v2279_v36  ;;  %v7652_v23 = vmax.f32 %v7061_v6, 0.0  ;;  %v2194_v24 = vmul.f32 %v6805_v8, %v2155_v32  ;;  %v2285_v36 = vld [vmem:[#allocation2 + $0x18] sm:$0xff]  ;;  %v2284_v32 = vld [vmem:[#allocation2 + $0x10] sm:$0xff] }
 0x305   : > { %7906 = vst [vmem:[#allocation98_spill] sm:$0xff] %v7068_v13  ;;  %2438 = vmatprep.subr.bf16.mxu0 %v4590_v4  ;;  %v7656_v49 = vmax.f32 %v7068_v13, 0.0  ;;  %v2398_v13 = vld [vmem:[%s7625_s1 + $0x1a0] sm:$0xff] }
 0x306   : > { %v2280_v29 = vpack.c.bf16 %v7652_v23, %v7653_v1  ;;  %v7076_v25 = vadd.f32 %v6813_v10, %v2194_v24  ;;  %v2287_v10 = vld [vmem:[#allocation2 + $0x28] sm:$0xff]  ;;  %v2286_v24 = vld [vmem:[#allocation2 + $0x20] sm:$0xff]  ;;  %v2288_v23 = vld [vmem:[#allocation2 + $0x30] sm:$0xff] }
 0x307   : > { %v2290_v1 = vld [vmem:[#allocation2 + $0x40] sm:$0xff] }
 0x308   : > { %7907 = vst [vmem:[#allocation99_spill] sm:$0xff] %v7076_v25  ;;  %2439 = vmatpush1.bf16.msra.mxu0 %v2280_v29  ;;  %v7655_v54 = vmax.f32 %v7076_v25, 0.0  ;;  %v2289_v29 = vld [vmem:[#allocation2 + $0x38] sm:$0xff] }
 0x309   : > { %2440 = vmatprep.subr.bf16.mxu0 %v4590_v4  ;;  %v2291_v4 = vld [vmem:[#allocation2 + $0x48] sm:$0xff] }
 0x30a   : > { %v2281_v8 = vpack.c.bf16 %v7655_v54, %v7656_v49  ;;  %v2295_v54 = vld [vmem:[#allocation2 + $0x68] sm:$0xff] }
 0x30b   : > { %v2339_v49 = vld [vmem:[#allocation2 + $0x1c8] sm:$0xff] }
 0x30c   : > { %2441 = vmatpush1.bf16.msra.mxu0 %v2281_v8  ;;  %v2292_v8 = vld [vmem:[#allocation2 + $0x50] sm:$0xff] }
 0x30f   : > { %2443 = vmatmul.mubr.bf16.vlgmr.msra.gmra.mrb[0].mxu0 %v2282_v31  ;;  %v2294_v31 = vld [vmem:[#allocation2 + $0x60] sm:$0xff] }
 0x310   : > { %2450 = vmatprep.mubr.bf16.mxu0 %v2285_v36  ;;  %v2297_v36 = vld [vmem:[#allocation2 + $0x78] sm:$0xff] }
 0x317   : > { %2451 = vmatmul.mubr.bf16.gmra.mrb[4].mxu0 %v2284_v32  ;;  %v2296_v32 = vld [vmem:[#allocation2 + $0x70] sm:$0xff] }
 0x318   : > { %2458 = vmatprep.mubr.bf16.mxu0 %v2287_v10  ;;  %v2299_v10 = vld [vmem:[#allocation2 + $0x88] sm:$0xff] }
 0x31f   : > { %2459 = vmatmul.mubr.bf16.gmra.mrb[8].mxu0 %v2286_v24  ;;  %v2298_v24 = vld [vmem:[#allocation2 + $0x80] sm:$0xff] }
 0x320   : > { %2466 = vmatprep.mubr.bf16.mxu0 %v2289_v29  ;;  %v2301_v29 = vld [vmem:[#allocation2 + $0x98] sm:$0xff] }
 0x327   : > { %2467 = vmatmul.mubr.bf16.gmra.mrb[12].mxu0 %v2288_v23  ;;  %v2300_v23 = vld [vmem:[#allocation2 + $0x90] sm:$0xff] }
 0x328   : > { %2474 = vmatprep.mubr.bf16.mxu0 %v2291_v4  ;;  %v2303_v4 = vld [vmem:[#allocation2 + $0xa8] sm:$0xff] }
 0x32f   : > { %2475 = vmatmul.mubr.bf16.gmra.mrb[16].mxu0 %v2290_v1  ;;  %v2305_v1 = vld [vmem:[#allocation2 + $0xb8] sm:$0xff] }
 0x330   : > { %2482 = vmatprep.mubr.bf16.mxu0 %v2293_v14  ;;  %v2302_v14 = vld [vmem:[#allocation2 + $0xa0] sm:$0xff] }
 0x337   : > { %2483 = vmatmul.mubr.bf16.gmra.mrb[20].mxu0 %v2292_v8  ;;  %v2307_v8 = vld [vmem:[#allocation2 + $0xc8] sm:$0xff] }
 0x338   : > { %2490 = vmatprep.mubr.bf16.mxu0 %v2295_v54  ;;  %v2304_v54 = vld [vmem:[#allocation2 + $0xb0] sm:$0xff] }
 0x33f   : > { %2491 = vmatmul.mubr.bf16.gmra.mrb[24].mxu0 %v2294_v31  ;;  %v2306_v31 = vld [vmem:[#allocation2 + $0xc0] sm:$0xff] }
 0x340   : > { %2498 = vmatprep.mubr.bf16.mxu0 %v2297_v36  ;;  %v2309_v36 = vld [vmem:[#allocation2 + $0xd8] sm:$0xff] }
 0x347   : > { %2499 = vmatmul.mubr.bf16.gmra.mrb[28].mxu0 %v2296_v32  ;;  %v2308_v32 = vld [vmem:[#allocation2 + $0xd0] sm:$0xff] }
 0x348   : > { %2506 = vmatprep.mubr.bf16.mxu0 %v2299_v10  ;;  %v2311_v10 = vld [vmem:[#allocation2 + $0xe8] sm:$0xff] }
 0x34f   : > { %2507 = vmatmul.mubr.bf16.gmra.mrb[32].mxu0 %v2298_v24  ;;  %v2310_v24 = vld [vmem:[#allocation2 + $0xe0] sm:$0xff] }
 0x350   : > { %2514 = vmatprep.mubr.bf16.mxu0 %v2301_v29  ;;  %v2313_v29 = vld [vmem:[#allocation2 + $0xf8] sm:$0xff] }
 0x357   : > { %2515 = vmatmul.mubr.bf16.gmra.mrb[36].mxu0 %v2300_v23  ;;  %v2312_v23 = vld [vmem:[#allocation2 + $0xf0] sm:$0xff] }
 0x358   : > { %2522 = vmatprep.mubr.bf16.mxu0 %v2303_v4  ;;  %v2315_v4 = vld [vmem:[#allocation2 + $0x108] sm:$0xff] }
 0x35f   : > { %2523 = vmatmul.mubr.bf16.gmra.mrb[40].mxu0 %v2302_v14  ;;  %v2314_v14 = vld [vmem:[#allocation2 + $0x100] sm:$0xff] }
 0x360   : > { %2530 = vmatprep.mubr.bf16.mxu0 %v2305_v1  ;;  %v2317_v1 = vld [vmem:[#allocation2 + $0x118] sm:$0xff] }
 0x367   : > { %2531 = vmatmul.mubr.bf16.gmra.mrb[44].mxu0 %v2304_v54  ;;  %v2316_v54 = vld [vmem:[#allocation2 + $0x110] sm:$0xff] }
 0x368   : > { %2538 = vmatprep.mubr.bf16.mxu0 %v2307_v8  ;;  %v2319_v8 = vld [vmem:[#allocation2 + $0x128] sm:$0xff] }
 0x36f   : > { %2539 = vmatmul.mubr.bf16.gmra.mrb[48].mxu0 %v2306_v31  ;;  %v2318_v31 = vld [vmem:[#allocation2 + $0x120] sm:$0xff] }
 0x370   : > { %2546 = vmatprep.mubr.bf16.mxu0 %v2309_v36  ;;  %v2321_v36 = vld [vmem:[#allocation2 + $0x138] sm:$0xff] }
 0x377   : > { %2547 = vmatmul.mubr.bf16.gmra.mrb[52].mxu0 %v2308_v32  ;;  %v2320_v32 = vld [vmem:[#allocation2 + $0x130] sm:$0xff] }
 0x378   : > { %2554 = vmatprep.mubr.bf16.mxu0 %v2311_v10  ;;  %v2323_v10 = vld [vmem:[#allocation2 + $0x148] sm:$0xff] }
 0x37f   : > { %2555 = vmatmul.mubr.bf16.gmra.mrb[56].mxu0 %v2310_v24  ;;  %v2322_v24 = vld [vmem:[#allocation2 + $0x140] sm:$0xff] }
 0x380   : > { %2562 = vmatprep.mubr.bf16.mxu0 %v2313_v29  ;;  %v2325_v29 = vld [vmem:[#allocation2 + $0x158] sm:$0xff] }
 0x387   : > { %2563 = vmatmul.mubr.bf16.gmra.mrb[60].mxu0 %v2312_v23  ;;  %v2324_v23 = vld [vmem:[#allocation2 + $0x150] sm:$0xff] }
 0x388   : > { %2570 = vmatprep.mubr.bf16.mxu0 %v2315_v4  ;;  %v2327_v4 = vld [vmem:[#allocation2 + $0x168] sm:$0xff] }
 0x38f   : > { %2571 = vmatmul.mubr.bf16.gmra.mrb[64].mxu0 %v2314_v14  ;;  %v2326_v14 = vld [vmem:[#allocation2 + $0x160] sm:$0xff] }
 0x390   : > { %2578 = vmatprep.mubr.bf16.mxu0 %v2317_v1  ;;  %v2329_v1 = vld [vmem:[#allocation2 + $0x178] sm:$0xff] }
 0x397   : > { %2579 = vmatmul.mubr.bf16.gmra.mrb[68].mxu0 %v2316_v54  ;;  %v2328_v54 = vld [vmem:[#allocation2 + $0x170] sm:$0xff] }
 0x398   : > { %2586 = vmatprep.mubr.bf16.mxu0 %v2319_v8  ;;  %v2331_v8 = vld [vmem:[#allocation2 + $0x188] sm:$0xff] }
 0x39f   : > { %2587 = vmatmul.mubr.bf16.gmra.mrb[72].mxu0 %v2318_v31  ;;  %v2330_v31 = vld [vmem:[#allocation2 + $0x180] sm:$0xff] }
 0x3a0   : > { %2594 = vmatprep.mubr.bf16.mxu0 %v2321_v36  ;;  %v2333_v36 = vld [vmem:[#allocation2 + $0x198] sm:$0xff] }
 0x3a7   : > { %2595 = vmatmul.mubr.bf16.gmra.mrb[76].mxu0 %v2320_v32  ;;  %v2332_v32 = vld [vmem:[#allocation2 + $0x190] sm:$0xff] }
 0x3a8   : > { %2602 = vmatprep.mubr.bf16.mxu0 %v2323_v10  ;;  %v2335_v10 = vld [vmem:[#allocation2 + $0x1a8] sm:$0xff] }
 0x3af   : > { %2603 = vmatmul.mubr.bf16.gmra.mrb[80].mxu0 %v2322_v24  ;;  %v2334_v24 = vld [vmem:[#allocation2 + $0x1a0] sm:$0xff] }
 0x3b0   : > { %2610 = vmatprep.mubr.bf16.mxu0 %v2325_v29  ;;  %v2337_v29 = vld [vmem:[#allocation2 + $0x1b8] sm:$0xff] }
 0x3b7   : > { %2611 = vmatmul.mubr.bf16.gmra.mrb[84].mxu0 %v2324_v23  ;;  %v2346_v23 = vld [vmem:[%s7625_s1] sm:$0xff] }
 0x3b8   : > { %2618 = vmatprep.mubr.bf16.mxu0 %v2327_v4 }
 0x3bf   : > { %2619 = vmatmul.mubr.bf16.gmra.mrb[88].mxu0 %v2326_v14  ;;  %v2347_v14 = vld [vmem:[%s7625_s1 + $0x8] sm:$0xff] }
 0x3c0   : > { %2626 = vmatprep.mubr.bf16.mxu0 %v2329_v1 }
 0x3c7   : > { %2627 = vmatmul.mubr.bf16.gmra.mrb[92].mxu0 %v2328_v54 }
 0x3c8   : > { %2634 = vmatprep.mubr.bf16.mxu0 %v2331_v8 }
 0x3cf   : > { %2635 = vmatmul.mubr.bf16.gmra.mrb[96].mxu0 %v2330_v31  ;;  %v2336_v31 = vld [vmem:[#allocation2 + $0x1b0] sm:$0xff] }
 0x3d0   : > { %2642 = vmatprep.mubr.bf16.mxu0 %v2333_v36 }
 0x3d7   : > { %2643 = vmatmul.mubr.bf16.gmra.mrb[100].mxu0 %v2332_v32 }
 0x3d8   : > { %2650 = vmatprep.mubr.bf16.mxu0 %v2335_v10 }
 0x3df   : > { %2651 = vmatmul.mubr.bf16.gmra.mrb[104].mxu0 %v2334_v24  ;;  %v2348_v24 = vld [vmem:[%s7625_s1 + $0x10] sm:$0xff] }
 0x3e0   : > { %2658 = vmatprep.mubr.bf16.mxu0 %v2337_v29 }
 0x3e2   : > { %v2444_v4 = vpop.f32.mrb[0].mxu0 }
 0x3e3   : > { %v2445_v1 = vadd.f32 %v2444_v4, %v2346_v23  ;;  %v2446_v54 = vpop.f32.mrb[1].mxu0  ;;  %v2349_v23 = vld [vmem:[%s7625_s1 + $0x18] sm:$0xff] }
 0x3e4   : > { %v2447_v8 = vpop.f32.mrb[2].mxu0 }
 0x3e5   : > { %v2699_v36 = vmax.f32 %v2445_v1, 0.0  ;;  %v2448_v32 = vadd.f32 %v2447_v8, %v2347_v14  ;;  %v2449_v10 = vpop.f32.mrb[3].mxu0  ;;  %v2338_v8 = vld [vmem:[#allocation2 + $0x1c0] sm:$0xff] }
 0x3e7   : > { %v2700_v33 = vmax.f32 %v2448_v32, 0.0  ;;  %2659 = vmatmul.mubr.bf16.gmra.mrb[108].mxu0 %v2336_v31  ;;  %v2763_v29 = vadd.f32 1e-07, %v2699_v36 }
 0x3e8   : > { %2666 = vmatprep.mubr.bf16.mxu0 %v2339_v49 }
 0x3e9   : > { %v2764_v39 = vadd.f32 1e-07, %v2700_v33  ;;  %v2350_v33 = vld [vmem:[%s7625_s1 + $0x20] sm:$0xff] }
 0x3ea   : > { %v2452_v63 = vpop.f32.mrb[4].mxu0 }
 0x3eb   : > { %v7097_v4 = vpack.c.bf16 %v2764_v39, %v2763_v29  ;;  %v2453_v1 = vadd.f32 %v2452_v63, %v2348_v24  ;;  %v2454_v14 = vpop.f32.mrb[5].mxu0  ;;  %v2351_v63 = vld [vmem:[%s7625_s1 + $0x28] sm:$0xff] }
 0x3ec   : > { %v2455_v54 = vpop.f32.mrb[6].mxu0 }
 0x3ed   : > { %v2701_v32 = vmax.f32 %v2453_v1, 0.0  ;;  %v2456_v31 = vadd.f32 %v2455_v54, %v2349_v23  ;;  %v2457_v10 = vpop.f32.mrb[7].mxu0  ;;  %v2340_v1 = vld [vmem:[#allocation2 + $0x1d0] sm:$0xff] }
 0x3ee   : > { %v2836_v10 = vld [vmem:[#allocation3 + $0x48] sm:$0xff] }
 0x3ef   : > { %v2702_v45 = vmax.f32 %v2456_v31, 0.0  ;;  %2667 = vmatmul.mubr.bf16.gmra.mrb[112].mxu0 %v2338_v8  ;;  %v2765_v49 = vadd.f32 1e-07, %v2701_v32  ;;  %v2343_v31 = vld [vmem:[#allocation2 + $0x1e8] sm:$0xff]  ;;  %2971 = vmatprep.mubr.bf16.mxu1 %v2836_v10 }
 0x3f0   : > { %2674 = vmatprep.mubr.bf16.mxu0 %v2341_v0 }
 0x3f1   : > { %v2766_v36 = vadd.f32 1e-07, %v2702_v45  ;;  %v2352_v45 = vld [vmem:[%s7625_s1 + $0x30] sm:$0xff] }
 0x3f2   : > { %v2460_v28 = vpop.f32.mrb[8].mxu0 }
 0x3f3   : > { %v7105_v39 = vpack.c.bf16 %v2766_v36, %v2765_v49  ;;  %v2461_v24 = vadd.f32 %v2460_v28, %v2350_v33  ;;  %v2462_v29 = vpop.f32.mrb[9].mxu0  ;;  %v2353_v28 = vld [vmem:[%s7625_s1 + $0x38] sm:$0xff] }
 0x3f4   : > { %v2463_v23 = vpop.f32.mrb[10].mxu0  ;;  %v2342_v29 = vld [vmem:[#allocation2 + $0x1e0] sm:$0xff] }
 0x3f5   : > { %v2703_v14 = vmax.f32 %v2461_v24, 0.0  ;;  %v2464_v54 = vadd.f32 %v2463_v23, %v2351_v63  ;;  %v2465_v8 = vpop.f32.mrb[11].mxu0 }
 0x3f6   : > { %v2345_v8 = vld [vmem:[#allocation2 + $0x1f8] sm:$0xff] }
 0x3f7   : > { %v2704_v17 = vmax.f32 %v2464_v54, 0.0  ;;  %2675 = vmatmul.mubr.bf16.gmra.mrb[116].mxu0 %v2340_v1  ;;  %v2767_v0 = vadd.f32 1e-07, %v2703_v14 }
 0x3f8   : > { %2682 = vmatprep.mubr.bf16.mxu0 %v2343_v31 }
 0x3f9   : > { %v2768_v32 = vadd.f32 1e-07, %v2704_v17  ;;  %v2354_v17 = vld [vmem:[%s7625_s1 + $0x40] sm:$0xff] }
 0x3fa   : > { %v2468_v49 = vpop.f32.mrb[12].mxu0 }
 0x3fb   : > { %v7113_v33 = vpack.c.bf16 %v2768_v32, %v2767_v0  ;;  %v2469_v36 = vadd.f32 %v2468_v49, %v2352_v45  ;;  %v2470_v63 = vpop.f32.mrb[13].mxu0  ;;  %v2355_v45 = vld [vmem:[%s7625_s1 + $0x48] sm:$0xff] }
 0x3fc   : > { %v2471_v24 = vpop.f32.mrb[14].mxu0 }
 0x3fd   : > { %v2705_v23 = vmax.f32 %v2469_v36, 0.0  ;;  %v2472_v1 = vadd.f32 %v2471_v24, %v2353_v28  ;;  %v2473_v54 = vpop.f32.mrb[15].mxu0  ;;  %v2344_v36 = vld [vmem:[#allocation2 + $0x1f0] sm:$0xff] }
 0x3ff   : > { %v2706_v10 = vmax.f32 %v2472_v1, 0.0  ;;  %2683 = vmatmul.mubr.bf16.gmra.mrb[120].mxu0 %v2342_v29  ;;  %v2769_v14 = vadd.f32 1e-07, %v2705_v23  ;;  %v2356_v23 = vld [vmem:[%s7625_s1 + $0x50] sm:$0xff] }
 0x400   : > { %2690 = vmatprep.mubr.bf16.mxu0 %v2345_v8 }
 0x401   : > { %v2770_v31 = vadd.f32 1e-07, %v2706_v10 }
 0x402   : > { %v2476_v60 = vpop.f32.mrb[16].mxu0 }
 0x403   : > { %v7121_v0 = vpack.c.bf16 %v2770_v31, %v2769_v14  ;;  %v2477_v32 = vadd.f32 %v2476_v60, %v2354_v17  ;;  %v2478_v49 = vpop.f32.mrb[17].mxu0  ;;  %v2357_v14 = vld [vmem:[%s7625_s1 + $0x58] sm:$0xff] }
 0x404   : > { %v2479_v28 = vpop.f32.mrb[18].mxu0 }
 0x405   : > { %v2707_v63 = vmax.f32 %v2477_v32, 0.0  ;;  %v2480_v24 = vadd.f32 %v2479_v28, %v2355_v45  ;;  %v2481_v29 = vpop.f32.mrb[19].mxu0 }
 0x407   : > { %v2708_v1 = vmax.f32 %v2480_v24, 0.0  ;;  %2691 = vmatmul.mubr.bf16.gmra.mrb[124].mxu0 %v2344_v36  ;;  %v2771_v54 = vadd.f32 1e-07, %v2707_v63  ;;  %v2358_v24 = vld [vmem:[%s7625_s1 + $0x60] sm:$0xff] }
 0x409   : > { %v2772_v8 = vadd.f32 1e-07, %v2708_v1 }
 0x40a   : > { %v2484_v10 = vpop.f32.mrb[20].mxu0 }
 0x40b   : > { %v7129_v60 = vpack.c.bf16 %v2772_v8, %v2771_v54  ;;  %v2485_v17 = vadd.f32 %v2484_v10, %v2356_v23  ;;  %v2486_v31 = vpop.f32.mrb[21].mxu0 }
 0x40c   : > { %v2487_v32 = vpop.f32.mrb[22].mxu0 }
 0x40d   : > { %v2709_v45 = vmax.f32 %v2485_v17, 0.0  ;;  %v2488_v49 = vadd.f32 %v2487_v32, %v2357_v14  ;;  %v2489_v28 = vpop.f32.mrb[23].mxu0 }
 0x40f   : > { %v2710_v36 = vmax.f32 %v2488_v49, 0.0  ;;  %v2773_v63 = vadd.f32 1e-07, %v2709_v45  ;;  %v2360_v49 = vld [vmem:[%s7625_s1 + $0x70] sm:$0xff] }
 0x411   : > { %v2774_v29 = vadd.f32 1e-07, %v2710_v36 }
 0x412   : > { %v2492_v1 = vpop.f32.mrb[24].mxu0 }
 0x413   : > { %v7137_v54 = vpack.c.bf16 %v2774_v29, %v2773_v63  ;;  %v2493_v23 = vadd.f32 %v2492_v1, %v2358_v24  ;;  %v2494_v8 = vpop.f32.mrb[25].mxu0 }
 0x414   : > { %v2495_v10 = vpop.f32.mrb[26].mxu0 }
 0x415   : > { %v2711_v17 = vmax.f32 %v2493_v23, 0.0  ;;  %v2496_v14 = vadd.f32 %v2495_v10, %v2359_v52  ;;  %v2497_v31 = vpop.f32.mrb[27].mxu0 }
 0x417   : > { %v2712_v32 = vmax.f32 %v2496_v14, 0.0  ;;  %v2775_v45 = vadd.f32 1e-07, %v2711_v17  ;;  %v2362_v14 = vld [vmem:[%s7625_s1 + $0x80] sm:$0xff] }
 0x419   : > { %v2776_v28 = vadd.f32 1e-07, %v2712_v32 }
 0x41a   : > { %v2500_v36 = vpop.f32.mrb[28].mxu0 }
 0x41b   : > { %v7145_v63 = vpack.c.bf16 %v2776_v28, %v2775_v45  ;;  %v2501_v24 = vadd.f32 %v2500_v36, %v2360_v49  ;;  %v2502_v29 = vpop.f32.mrb[29].mxu0 }
 0x41c   : > { %v2503_v1 = vpop.f32.mrb[30].mxu0 }
 0x41d   : > { %v2713_v23 = vmax.f32 %v2501_v24, 0.0  ;;  %v2504_v52 = vadd.f32 %v2503_v1, %v2361_v40  ;;  %v2505_v8 = vpop.f32.mrb[31].mxu0 }
 0x41f   : > { %v2714_v10 = vmax.f32 %v2504_v52, 0.0  ;;  %v2777_v17 = vadd.f32 1e-07, %v2713_v23  ;;  %v2364_v52 = vld [vmem:[%s7625_s1 + $0x90] sm:$0xff] }
 0x421   : > { %v2778_v31 = vadd.f32 1e-07, %v2714_v10 }
 0x422   : > { %v2508_v32 = vpop.f32.mrb[32].mxu0 }
 0x423   : > { %v7153_v45 = vpack.c.bf16 %v2778_v31, %v2777_v17  ;;  %v2509_v49 = vadd.f32 %v2508_v32, %v2362_v14  ;;  %v2510_v28 = vpop.f32.mrb[33].mxu0 }
 0x424   : > { %v2511_v36 = vpop.f32.mrb[34].mxu0 }
 0x425   : > { %v2715_v24 = vmax.f32 %v2509_v49, 0.0  ;;  %v2512_v40 = vadd.f32 %v2511_v36, %v2363_v12  ;;  %v2513_v29 = vpop.f32.mrb[35].mxu0 }
 0x427   : > { %v2716_v1 = vmax.f32 %v2512_v40, 0.0  ;;  %v2779_v23 = vadd.f32 1e-07, %v2715_v24  ;;  %v2366_v24 = vld [vmem:[%s7625_s1 + $0xa0] sm:$0xff] }
 0x429   : > { %v2780_v8 = vadd.f32 1e-07, %v2716_v1 }
 0x42a   : > { %v2516_v10 = vpop.f32.mrb[36].mxu0 }
 0x42b   : > { %v2899_v17 = vpack.c.bf16 %v2780_v8, %v2779_v23  ;;  %v2517_v31 = vadd.f32 %v2516_v10, %v2364_v52  ;;  %v2518_v14 = vpop.f32.mrb[37].mxu0  ;;  %v2367_v52 = vld [vmem:[%s7625_s1 + $0xa8] sm:$0xff] }
 0x42c   : > { %v2519_v32 = vpop.f32.mrb[38].mxu0 }
 0x42d   : > { %v2717_v28 = vmax.f32 %v2517_v31, 0.0  ;;  %v2520_v49 = vadd.f32 %v2519_v32, %v2365_v53  ;;  %v2521_v12 = vpop.f32.mrb[39].mxu0  ;;  %3970 = vmatprep.subr.bf16.mxu0 %v2899_v17  ;;  %4266 = vmatprep.subr.bf16.mxu1 %v2899_v17  ;;  %v2368_v32 = vld [vmem:[%s7625_s1 + $0xb0] sm:$0xff] }
 0x42e   : > { %3971 = vmatpush3.bf16.msra.mxu0 %v7097_v4  ;;  %4274 = vmatpush3.bf16.msra.mxu1 %v7097_v4 }
 0x42f   : > { %v2718_v36 = vmax.f32 %v2520_v49, 0.0  ;;  %v2781_v40 = vadd.f32 1e-07, %v2717_v28 }
 0x431   : > { %v2782_v29 = vadd.f32 1e-07, %v2718_v36  ;;  %v2369_v36 = vld [vmem:[%s7625_s1 + $0xb8] sm:$0xff] }
 0x432   : > { %v2524_v1 = vpop.f32.mrb[40].mxu0 }
 0x433   : > { %v2900_v53 = vpack.c.bf16 %v2782_v29, %v2781_v40  ;;  %v2525_v23 = vadd.f32 %v2524_v1, %v2366_v24  ;;  %v2526_v8 = vpop.f32.mrb[41].mxu0 }
 0x434   : > { %v2527_v10 = vpop.f32.mrb[42].mxu0  ;;  %v2370_v8 = vld [vmem:[%s7625_s1 + $0xc0] sm:$0xff] }
 0x435   : > { %v2719_v17 = vmax.f32 %v2525_v23, 0.0  ;;  %v2528_v31 = vadd.f32 %v2527_v10, %v2367_v52  ;;  %v2529_v14 = vpop.f32.mrb[43].mxu0  ;;  %3972 = vmatprep.subr.bf16.mxu0 %v2900_v53  ;;  %4267 = vmatprep.subr.bf16.mxu1 %v2900_v53 }
 0x436   : > { %3973 = vmatpush3.bf16.msra.mxu0 %v7105_v39  ;;  %4275 = vmatpush3.bf16.msra.mxu1 %v7105_v39  ;;  %v2371_v14 = vld [vmem:[%s7625_s1 + $0xc8] sm:$0xff] }
 0x437   : > { %v2720_v4 = vmax.f32 %v2528_v31, 0.0  ;;  %v2783_v28 = vadd.f32 1e-07, %v2719_v17 }
 0x439   : > { %v2784_v49 = vadd.f32 1e-07, %v2720_v4 }
 0x43a   : > { %v2532_v12 = vpop.f32.mrb[44].mxu0 }
 0x43b   : > { %v2901_v24 = vpack.c.bf16 %v2784_v49, %v2783_v28  ;;  %v2533_v40 = vadd.f32 %v2532_v12, %v2368_v32  ;;  %v2534_v29 = vpop.f32.mrb[45].mxu0 }
 0x43c   : > { %v2535_v1 = vpop.f32.mrb[46].mxu0 }
 0x43d   : > { %v2721_v52 = vmax.f32 %v2533_v40, 0.0  ;;  %v2536_v53 = vadd.f32 %v2535_v1, %v2369_v36  ;;  %v2537_v23 = vpop.f32.mrb[47].mxu0  ;;  %3974 = vmatprep.subr.bf16.mxu0 %v2901_v24  ;;  %4268 = vmatprep.subr.bf16.mxu1 %v2901_v24  ;;  %v2372_v40 = vld [vmem:[%s7625_s1 + $0xd0] sm:$0xff] }
 0x43e   : > { %3975 = vmatpush3.bf16.msra.mxu0 %v7113_v33  ;;  %4276 = vmatpush3.bf16.msra.mxu1 %v7113_v33 }
 0x43f   : > { %v2722_v39 = vmax.f32 %v2536_v53, 0.0  ;;  %v2785_v10 = vadd.f32 1e-07, %v2721_v52  ;;  %v2373_v53 = vld [vmem:[%s7625_s1 + $0xd8] sm:$0xff] }
 0x441   : > { %v2786_v17 = vadd.f32 1e-07, %v2722_v39 }
 0x442   : > { %v2540_v31 = vpop.f32.mrb[48].mxu0 }
 0x443   : > { %v2902_v4 = vpack.c.bf16 %v2786_v17, %v2785_v10  ;;  %v2541_v32 = vadd.f32 %v2540_v31, %v2370_v8  ;;  %v2542_v28 = vpop.f32.mrb[49].mxu0 }
 0x444   : > { %v2543_v49 = vpop.f32.mrb[50].mxu0 }
 0x445   : > { %v2723_v12 = vmax.f32 %v2541_v32, 0.0  ;;  %v2544_v36 = vadd.f32 %v2543_v49, %v2371_v14  ;;  %v2545_v24 = vpop.f32.mrb[51].mxu0  ;;  %3976 = vmatprep.subr.bf16.mxu0 %v2902_v4  ;;  %4269 = vmatprep.subr.bf16.mxu1 %v2902_v4  ;;  %v2374_v4 = vld [vmem:[%s7625_s1 + $0xe0] sm:$0xff] }
 0x446   : > { %3977 = vmatpush3.bf16.msra.mxu0 %v7121_v0  ;;  %4277 = vmatpush3.bf16.msra.mxu1 %v7121_v0 }
 0x447   : > { %v2724_v33 = vmax.f32 %v2544_v36, 0.0  ;;  %v2787_v29 = vadd.f32 1e-07, %v2723_v12  ;;  %v2375_v12 = vld [vmem:[%s7625_s1 + $0xe8] sm:$0xff] }
 0x449   : > { %v2788_v1 = vadd.f32 1e-07, %v2724_v33 }
 0x44a   : > { %v2548_v52 = vpop.f32.mrb[52].mxu0 }
 0x44b   : > { %v2903_v23 = vpack.c.bf16 %v2788_v1, %v2787_v29  ;;  %v2549_v39 = vadd.f32 %v2548_v52, %v2372_v40  ;;  %v2550_v8 = vpop.f32.mrb[53].mxu0 }
 0x44c   : > { %v2551_v10 = vpop.f32.mrb[54].mxu0 }
 0x44d   : > { %v2725_v17 = vmax.f32 %v2549_v39, 0.0  ;;  %v2552_v31 = vadd.f32 %v2551_v10, %v2373_v53  ;;  %v2553_v14 = vpop.f32.mrb[55].mxu0  ;;  %3978 = vmatprep.subr.bf16.mxu0 %v2903_v23  ;;  %4270 = vmatprep.subr.bf16.mxu1 %v2903_v23  ;;  %v2376_v53 = vld [vmem:[%s7625_s1 + $0xf0] sm:$0xff]  ;;  %v2377_v10 = vld [vmem:[%s7625_s1 + $0xf8] sm:$0xff] }
 0x44e   : > { %3979 = vmatpush3.bf16.msra.mxu0 %v7129_v60  ;;  %4278 = vmatpush3.bf16.msra.mxu1 %v7129_v60 }
 0x44f   : > { %v2726_v0 = vmax.f32 %v2552_v31, 0.0  ;;  %v2789_v32 = vadd.f32 1e-07, %v2725_v17 }
 0x451   : > { %v2790_v28 = vadd.f32 1e-07, %v2726_v0 }
 0x452   : > { %v2556_v49 = vpop.f32.mrb[56].mxu0 }
 0x453   : > { %v2904_v36 = vpack.c.bf16 %v2790_v28, %v2789_v32  ;;  %v2557_v24 = vadd.f32 %v2556_v49, %v2374_v4  ;;  %v2558_v33 = vpop.f32.mrb[57].mxu0  ;;  %v2378_v49 = vld [vmem:[%s7625_s1 + $0x100] sm:$0xff] }
 0x454   : > { %v2559_v40 = vpop.f32.mrb[58].mxu0  ;;  %v2379_v33 = vld [vmem:[%s7625_s1 + $0x108] sm:$0xff] }
 0x455   : > { %v2727_v29 = vmax.f32 %v2557_v24, 0.0  ;;  %v2560_v1 = vadd.f32 %v2559_v40, %v2375_v12  ;;  %v2561_v52 = vpop.f32.mrb[59].mxu0  ;;  %3980 = vmatprep.subr.bf16.mxu0 %v2904_v36  ;;  %4271 = vmatprep.subr.bf16.mxu1 %v2904_v36 }
 0x456   : > { %3981 = vmatpush3.bf16.msra.mxu0 %v7137_v54  ;;  %4279 = vmatpush3.bf16.msra.mxu1 %v7137_v54 }
 0x457   : > { %v2728_v60 = vmax.f32 %v2560_v1, 0.0  ;;  %v2791_v23 = vadd.f32 1e-07, %v2727_v29 }
 0x459   : > { %v2792_v39 = vadd.f32 1e-07, %v2728_v60 }
 0x45a   : > { %v2564_v8 = vpop.f32.mrb[60].mxu0 }
 0x45b   : > { %v2905_v17 = vpack.c.bf16 %v2792_v39, %v2791_v23  ;;  %v2565_v31 = vadd.f32 %v2564_v8, %v2376_v53  ;;  %v2566_v14 = vpop.f32.mrb[61].mxu0  ;;  %v2828_v39 = vld [vmem:[#allocation3 + $0x8] sm:$0xff]  ;;  %v2827_v8 = vld [vmem:[#allocation3] sm:$0xff] }
 0x45c   : > { %v2567_v0 = vpop.f32.mrb[62].mxu0  ;;  %2955 = vmatprep.mubr.bf16.mxu0 %v2828_v39  ;;  %v2383_v39 = vld [vmem:[%s7625_s1 + $0x128] sm:$0xff] }
 0x45d   : > { %v2729_v4 = vmax.f32 %v2565_v31, 0.0  ;;  %v2568_v32 = vadd.f32 %v2567_v0, %v2377_v10  ;;  %v2569_v28 = vpop.f32.mrb[63].mxu0  ;;  %3982 = vmatprep.subr.bf16.mxu0 %v2905_v17  ;;  %4272 = vmatprep.subr.bf16.mxu1 %v2905_v17  ;;  %v2840_v17 = vld [vmem:[#allocation3 + $0x68] sm:$0xff]  ;;  %v2380_v31 = vld [vmem:[%s7625_s1 + $0x110] sm:$0xff] }
 0x45e   : > { %3983 = vmatpush3.bf16.msra.mxu0 %v7145_v63  ;;  %4280 = vmatpush3.bf16.msra.mxu1 %v7145_v63  ;;  %v2835_v63 = vld [vmem:[#allocation3 + $0x40] sm:$0xff] }
 0x45f   : > { %v2730_v54 = vmax.f32 %v2568_v32, 0.0  ;;  %v2793_v12 = vadd.f32 1e-07, %v2729_v4  ;;  %v2832_v4 = vld [vmem:[#allocation3 + $0x28] sm:$0xff] }
 0x461   : > { %v2794_v36 = vadd.f32 1e-07, %v2730_v54 }
 0x462   : > { %v2572_v24 = vpop.f32.mrb[64].mxu0 }
 0x463   : > { %v2906_v40 = vpack.c.bf16 %v2794_v36, %v2793_v12  ;;  %v2573_v29 = vadd.f32 %v2572_v24, %v2378_v49  ;;  %v2574_v1 = vpop.f32.mrb[65].mxu0 }
 0x464   : > { %v2575_v52 = vpop.f32.mrb[66].mxu0 }
 0x465   : > { %v2731_v60 = vmax.f32 %v2573_v29, 0.0  ;;  %v2576_v53 = vadd.f32 %v2575_v52, %v2379_v33  ;;  %v2577_v23 = vpop.f32.mrb[67].mxu0  ;;  %3984 = vmatprep.subr.bf16.mxu0 %v2906_v40  ;;  %4273 = vmatprep.subr.bf16.mxu1 %v2906_v40  ;;  %v2839_v40 = vld [vmem:[#allocation3 + $0x60] sm:$0xff]  ;;  %v2844_v52 = vld [vmem:[#allocation3 + $0x88] sm:$0xff] }
 0x466   : > { %3985 = vmatpush3.bf16.msra.mxu0 %v7153_v45  ;;  %4281 = vmatpush3.bf16.msra.mxu1 %v7153_v45  ;;  %v2381_v45 = vld [vmem:[%s7625_s1 + $0x118] sm:$0xff]  ;;  %v2831_v29 = vld [vmem:[#allocation3 + $0x20] sm:$0xff] }
 0x467   : > { %v2732_v10 = vmax.f32 %v2576_v53, 0.0  ;;  %v7222_v14 = vadd.f32 1e-07, %v2731_v60  ;;  %v2382_v60 = vld [vmem:[%s7625_s1 + $0x120] sm:$0xff] }
 0x469   : > { %v7224_v0 = vadd.f32 1e-07, %v2732_v10  ;;  %2972 = vmatmul.mubr.bf16.vlgmr.msra.gmra.mrb[0].mxu1 %v2835_v63  ;;  %2956 = vmatmul.mubr.bf16.vlgmr.msra.gmra.mrb[128].mxu0 %v2827_v8 }
 0x46a   : > { %v2580_v32 = vpop.f32.mrb[68].mxu0  ;;  %2979 = vmatprep.mubr.bf16.mxu1 %v2840_v17  ;;  %2963 = vmatprep.mubr.bf16.mxu0 %v2832_v4 }
 0x46b   : > { %v2581_v54 = vadd.f32 %v2580_v32, %v2380_v31  ;;  %v2582_v49 = vpop.f32.mrb[69].mxu0 }
 0x46c   : > { %v2583_v12 = vpop.f32.mrb[70].mxu0 }
 0x46d   : > { %v2733_v36 = vmax.f32 %v2581_v54, 0.0  ;;  %v2584_v24 = vadd.f32 %v2583_v12, %v2381_v45  ;;  %v2585_v33 = vpop.f32.mrb[71].mxu0  ;;  %v2843_v54 = vld [vmem:[#allocation3 + $0x80] sm:$0xff]  ;;  %v2848_v12 = vld [vmem:[#allocation3 + $0xa8] sm:$0xff] }
 0x46f   : > { %v2734_v1 = vmax.f32 %v2584_v24, 0.0  ;;  %v7234_v53 = vadd.f32 1e-07, %v2733_v36  ;;  %v2384_v36 = vld [vmem:[%s7625_s1 + $0x130] sm:$0xff] }
 0x471   : > { %v7236_v23 = vadd.f32 1e-07, %v2734_v1  ;;  %2980 = vmatmul.mubr.bf16.gmra.mrb[4].mxu1 %v2839_v40  ;;  %2964 = vmatmul.mubr.bf16.gmra.mrb[132].mxu0 %v2831_v29  ;;  %v2385_v29 = vld [vmem:[%s7625_s1 + $0x138] sm:$0xff] }
 0x472   : > { %v2588_v63 = vpop.f32.mrb[72].mxu0  ;;  %2987 = vmatprep.mubr.bf16.mxu1 %v2844_v52 }
 0x473   : > { %v2589_v10 = vadd.f32 %v2588_v63, %v2382_v60  ;;  %v2590_v17 = vpop.f32.mrb[73].mxu0 }
 0x474   : > { %v2591_v31 = vpop.f32.mrb[74].mxu0 }
 0x475   : > { %v2735_v4 = vmax.f32 %v2589_v10, 0.0  ;;  %v2592_v32 = vadd.f32 %v2591_v31, %v2383_v39  ;;  %v2593_v45 = vpop.f32.mrb[75].mxu0  ;;  %v2847_v31 = vld [vmem:[#allocation3 + $0xa0] sm:$0xff] }
 0x476   : > { %v2386_v45 = vld [vmem:[%s7625_s1 + $0x140] sm:$0xff] }
 0x477   : > { %v2736_v49 = vmax.f32 %v2592_v32, 0.0  ;;  %v7246_v24 = vadd.f32 1e-07, %v2735_v4  ;;  %v2852_v32 = vld [vmem:[#allocation3 + $0xc8] sm:$0xff] }
 0x479   : > { %v7248_v33 = vadd.f32 1e-07, %v2736_v49  ;;  %2988 = vmatmul.mubr.bf16.gmra.mrb[8].mxu1 %v2843_v54 }
 0x47a   : > { %v2596_v40 = vpop.f32.mrb[76].mxu0  ;;  %2995 = vmatprep.mubr.bf16.mxu1 %v2848_v12 }
 0x47b   : > { %v2597_v52 = vadd.f32 %v2596_v40, %v2384_v36  ;;  %v2598_v60 = vpop.f32.mrb[77].mxu0  ;;  %v2387_v36 = vld [vmem:[%s7625_s1 + $0x148] sm:$0xff] }
 0x47c   : > { %v2599_v63 = vpop.f32.mrb[78].mxu0 }
 0x47d   : > { %v2737_v39 = vmax.f32 %v2597_v52, 0.0  ;;  %v2600_v10 = vadd.f32 %v2599_v63, %v2385_v29  ;;  %v2601_v17 = vpop.f32.mrb[79].mxu0 }
 0x47f   : > { %v2738_v4 = vmax.f32 %v2600_v10, 0.0  ;;  %v7258_v54 = vadd.f32 1e-07, %v2737_v39  ;;  %v2851_v39 = vld [vmem:[#allocation3 + $0xc0] sm:$0xff] }
 0x481   : > { %v7260_v49 = vadd.f32 1e-07, %v2738_v4  ;;  %2996 = vmatmul.mubr.bf16.gmra.mrb[12].mxu1 %v2847_v31  ;;  %v2856_v4 = vld [vmem:[#allocation3 + $0xe8] sm:$0xff]  ;;  %v2388_v31 = vld [vmem:[%s7625_s1 + $0x150] sm:$0xff] }
 0x482   : > { %v2604_v12 = vpop.f32.mrb[80].mxu0  ;;  %3003 = vmatprep.mubr.bf16.mxu1 %v2852_v32 }
 0x483   : > { %v2605_v29 = vadd.f32 %v2604_v12, %v2386_v45  ;;  %v2606_v52 = vpop.f32.mrb[81].mxu0  ;;  %v2389_v45 = vld [vmem:[%s7625_s1 + $0x158] sm:$0xff] }
 0x484   : > { %v2607_v60 = vpop.f32.mrb[82].mxu0 }
 0x485   : > { %v2739_v63 = vmax.f32 %v2605_v29, 0.0  ;;  %v2608_v10 = vadd.f32 %v2607_v60, %v2387_v36  ;;  %v2609_v17 = vpop.f32.mrb[83].mxu0 }
 0x487   : > { %v2740_v19 = vmax.f32 %v2608_v10, 0.0  ;;  %v7270_v9 = vadd.f32 1e-07, %v2739_v63  ;;  %v2855_v63 = vld [vmem:[#allocation3 + $0xe0] sm:$0xff] }
 0x489   : > { %v7272_v61 = vadd.f32 1e-07, %v2740_v19  ;;  %3004 = vmatmul.mubr.bf16.gmra.mrb[16].mxu1 %v2851_v39  ;;  %v2860_v19 = vld [vmem:[#allocation3 + $0x108] sm:$0xff]  ;;  %v2390_v39 = vld [vmem:[%s7625_s1 + $0x160] sm:$0xff] }
 0x48a   : > { %v2612_v32 = vpop.f32.mrb[84].mxu0  ;;  %3011 = vmatprep.mubr.bf16.mxu1 %v2856_v4 }
 0x48b   : > { %v2613_v36 = vadd.f32 %v2612_v32, %v2388_v31  ;;  %v2614_v29 = vpop.f32.mrb[85].mxu0  ;;  %v2391_v31 = vld [vmem:[%s7625_s1 + $0x168] sm:$0xff] }
 0x48c   : > { %v2615_v52 = vpop.f32.mrb[86].mxu0 }
 0x48d   : > { %v2741_v60 = vmax.f32 %v2613_v36, 0.0  ;;  %v2616_v10 = vadd.f32 %v2615_v52, %v2389_v45  ;;  %v2617_v17 = vpop.f32.mrb[87].mxu0 }
 0x48f   : > { %v2742_v22 = vmax.f32 %v2616_v10, 0.0  ;;  %v7282_v5 = vadd.f32 1e-07, %v2741_v60  ;;  %v2859_v60 = vld [vmem:[#allocation3 + $0x100] sm:$0xff] }
 0x491   : > { %v7284_v37 = vadd.f32 1e-07, %v2742_v22  ;;  %3012 = vmatmul.mubr.bf16.gmra.mrb[20].mxu1 %v2855_v63  ;;  %v2864_v22 = vld [vmem:[#allocation3 + $0x128] sm:$0xff]  ;;  %v2392_v63 = vld [vmem:[%s7625_s1 + $0x170] sm:$0xff] }
 0x492   : > { %v2620_v4 = vpop.f32.mrb[88].mxu0  ;;  %3019 = vmatprep.mubr.bf16.mxu1 %v2860_v19 }
 0x493   : > { %v2621_v45 = vadd.f32 %v2620_v4, %v2390_v39  ;;  %v2622_v36 = vpop.f32.mrb[89].mxu0  ;;  %v2393_v39 = vld [vmem:[%s7625_s1 + $0x178] sm:$0xff] }
 0x494   : > { %v2623_v29 = vpop.f32.mrb[90].mxu0 }
 0x495   : > { %v2743_v52 = vmax.f32 %v2621_v45, 0.0  ;;  %v2624_v10 = vadd.f32 %v2623_v29, %v2391_v31  ;;  %v2625_v17 = vpop.f32.mrb[91].mxu0 }
 0x497   : > { %v2744_v58 = vmax.f32 %v2624_v10, 0.0  ;;  %v7294_v12 = vadd.f32 1e-07, %v2743_v52  ;;  %v2863_v52 = vld [vmem:[#allocation3 + $0x120] sm:$0xff] }
 0x499   : > { %v7296_v40 = vadd.f32 1e-07, %v2744_v58  ;;  %3020 = vmatmul.mubr.bf16.gmra.mrb[24].mxu1 %v2859_v60  ;;  %v2868_v58 = vld [vmem:[#allocation3 + $0x148] sm:$0xff]  ;;  %v2394_v60 = vld [vmem:[%s7625_s1 + $0x180] sm:$0xff] }
 0x49a   : > { %v2628_v19 = vpop.f32.mrb[92].mxu0  ;;  %3027 = vmatprep.mubr.bf16.mxu1 %v2864_v22 }
 0x49b   : > { %v2629_v31 = vadd.f32 %v2628_v19, %v2392_v63  ;;  %v2630_v45 = vpop.f32.mrb[93].mxu0  ;;  %v2395_v63 = vld [vmem:[%s7625_s1 + $0x188] sm:$0xff]  ;;  %v7908_v19 = vpack.c.bf16 %v7224_v0, %v7222_v14 }
 0x49c   : > { %v2631_v36 = vpop.f32.mrb[94].mxu0 }
 0x49d   : > { %v2745_v29 = vmax.f32 %v2629_v31, 0.0  ;;  %v2632_v10 = vadd.f32 %v2631_v36, %v2393_v39  ;;  %v2633_v17 = vpop.f32.mrb[95].mxu0 }
 0x49f   : > { %v2746_v32 = vmax.f32 %v2632_v10, 0.0  ;;  %v7306_v1 = vadd.f32 1e-07, %v2745_v29  ;;  %v2867_v29 = vld [vmem:[#allocation3 + $0x140] sm:$0xff] }
 0x4a1   : > { %v7308_v8 = vadd.f32 1e-07, %v2746_v32  ;;  %3028 = vmatmul.mubr.bf16.gmra.mrb[28].mxu1 %v2863_v52  ;;  %v2872_v32 = vld [vmem:[#allocation3 + $0x168] sm:$0xff]  ;;  %v2396_v52 = vld [vmem:[%s7625_s1 + $0x190] sm:$0xff] }
 0x4a2   : > { %v2636_v22 = vpop.f32.mrb[96].mxu0  ;;  %3035 = vmatprep.mubr.bf16.mxu1 %v2868_v58 }
 0x4a3   : > { %v2637_v39 = vadd.f32 %v2636_v22, %v2394_v60  ;;  %v2638_v31 = vpop.f32.mrb[97].mxu0  ;;  %v2397_v60 = vld [vmem:[%s7625_s1 + $0x198] sm:$0xff] }
 0x4a4   : > { %v2639_v45 = vpop.f32.mrb[98].mxu0 }
 0x4a5   : > { %v2747_v36 = vmax.f32 %v2637_v39, 0.0  ;;  %v2640_v10 = vadd.f32 %v2639_v45, %v2395_v63  ;;  %v2641_v17 = vpop.f32.mrb[99].mxu0 }
 0x4a7   : > { %v2748_v4 = vmax.f32 %v2640_v10, 0.0  ;;  %v2811_v28 = vadd.f32 1e-07, %v2747_v36 }
 0x4a9   : > { %v2812_v25 = vadd.f32 1e-07, %v2748_v4  ;;  %3036 = vmatmul.mubr.bf16.gmra.mrb[32].mxu1 %v2867_v29  ;;  %v2871_v4 = vld [vmem:[#allocation3 + $0x160] sm:$0xff]  ;;  %v2876_v29 = vld [vmem:[#allocation3 + $0x188] sm:$0xff] }
 0x4aa   : > { %v2644_v58 = vpop.f32.mrb[100].mxu0  ;;  %3043 = vmatprep.mubr.bf16.mxu1 %v2872_v32 }
 0x4ab   : > { %v2915_v22 = vpack.c.bf16 %v2812_v25, %v2811_v28  ;;  %v2645_v39 = vadd.f32 %v2644_v58, %v2396_v52  ;;  %v2646_v63 = vpop.f32.mrb[101].mxu0  ;;  %v2399_v52 = vld [vmem:[%s7625_s1 + $0x1a8] sm:$0xff] }
 0x4ac   : > { %v2647_v31 = vpop.f32.mrb[102].mxu0  ;;  %v7909_v63 = vpack.c.bf16 %v7236_v23, %v7234_v53 }
 0x4ad   : > { %v2749_v45 = vmax.f32 %v2645_v39, 0.0  ;;  %v2648_v10 = vadd.f32 %v2647_v31, %v2397_v60  ;;  %4082 = vmatprep.subr.bf16.mxu1 %v2915_v22  ;;  %v2649_v17 = vpop.f32.mrb[103].mxu0  ;;  %v2875_v31 = vld [vmem:[#allocation3 + $0x180] sm:$0xff] }
 0x4ae   : > { %4083 = vmatpush3.bf16.msra.mxu1 %v7908_v19  ;;  %v2400_v17 = vld [vmem:[%s7625_s1 + $0x1b0] sm:$0xff] }
 0x4af   : > { %v2750_v36 = vmax.f32 %v2648_v10, 0.0  ;;  %v2813_v32 = vadd.f32 1e-07, %v2749_v45  ;;  %v2880_v10 = vld [vmem:[#allocation3 + $0x1a8] sm:$0xff] }
 0x4b1   : > { %v2814_v25 = vadd.f32 1e-07, %v2750_v36  ;;  %3044 = vmatmul.mubr.bf16.gmra.mrb[36].mxu1 %v2871_v4 }
 0x4b2   : > { %v2652_v28 = vpop.f32.mrb[104].mxu0  ;;  %3051 = vmatprep.mubr.bf16.mxu1 %v2876_v29  ;;  %v2401_v29 = vld [vmem:[%s7625_s1 + $0x1b8] sm:$0xff] }
 0x4b3   : > { %v2916_v58 = vpack.c.bf16 %v2814_v25, %v2813_v32  ;;  %v2653_v60 = vadd.f32 %v2652_v28, %v2398_v13  ;;  %v2654_v14 = vpop.f32.mrb[105].mxu0 }
 0x4b4   : > { %v2655_v0 = vpop.f32.mrb[106].mxu0  ;;  %v2879_v14 = vld [vmem:[#allocation3 + $0x1a0] sm:$0xff] }
 0x4b5   : > { %v2751_v19 = vmax.f32 %v2653_v60, 0.0  ;;  %v2656_v22 = vadd.f32 %v2655_v0, %v2399_v52  ;;  %4084 = vmatprep.subr.bf16.mxu1 %v2916_v58  ;;  %v2657_v39 = vpop.f32.mrb[107].mxu0  ;;  %v7910_v60 = vpack.c.bf16 %v7248_v33, %v7246_v24 }
 0x4b6   : > { %4085 = vmatpush3.bf16.msra.mxu1 %v7909_v63 }
 0x4b7   : > { %v2752_v45 = vmax.f32 %v2656_v22, 0.0  ;;  %v2815_v4 = vadd.f32 1e-07, %v2751_v19  ;;  %v2884_v19 = vld [vmem:[#allocation3 + $0x1c8] sm:$0xff]  ;;  %v2402_v22 = vld [vmem:[%s7625_s1 + $0x1c0] sm:$0xff] }
 0x4b9   : > { %v2816_v36 = vadd.f32 1e-07, %v2752_v45  ;;  %3052 = vmatmul.mubr.bf16.gmra.mrb[40].mxu1 %v2875_v31  ;;  %v2403_v45 = vld [vmem:[%s7625_s1 + $0x1c8] sm:$0xff] }
 0x4ba   : > { %v2660_v13 = vpop.f32.mrb[108].mxu0  ;;  %3059 = vmatprep.mubr.bf16.mxu1 %v2880_v10 }
 0x4bb   : > { %v2917_v32 = vpack.c.bf16 %v2816_v36, %v2815_v4  ;;  %v2661_v25 = vadd.f32 %v2660_v13, %v2400_v17  ;;  %v2662_v53 = vpop.f32.mrb[109].mxu0 }
 0x4bc   : > { %v2663_v23 = vpop.f32.mrb[110].mxu0  ;;  %v2888_v53 = vld [vmem:[#allocation3 + $0x1e8] sm:$0xff] }
 0x4bd   : > { %v2753_v28 = vmax.f32 %v2661_v25, 0.0  ;;  %v2664_v52 = vadd.f32 %v2663_v23, %v2401_v29  ;;  %4086 = vmatprep.subr.bf16.mxu1 %v2917_v32  ;;  %v2665_v58 = vpop.f32.mrb[111].mxu0  ;;  %v7911_v29 = vpack.c.bf16 %v7260_v49, %v7258_v54  ;;  %v2883_v32 = vld [vmem:[#allocation3 + $0x1c0] sm:$0xff]  ;;  %v2404_v23 = vld [vmem:[%s7625_s1 + $0x1d0] sm:$0xff] }
 0x4be   : > { %4087 = vmatpush3.bf16.msra.mxu1 %v7910_v60  ;;  %v2405_v60 = vld [vmem:[%s7625_s1 + $0x1d8] sm:$0xff] }
 0x4bf   : > { %v2754_v0 = vmax.f32 %v2664_v52, 0.0  ;;  %v2817_v39 = vadd.f32 1e-07, %v2753_v28 }
 0x4c1   : > { %v2818_v63 = vadd.f32 1e-07, %v2754_v0  ;;  %3060 = vmatmul.mubr.bf16.gmra.mrb[44].mxu1 %v2879_v14 }
 0x4c2   : > { %v2668_v31 = vpop.f32.mrb[112].mxu0  ;;  %3067 = vmatprep.mubr.bf16.mxu1 %v2884_v19 }
 0x4c3   : > { %v2918_v10 = vpack.c.bf16 %v2818_v63, %v2817_v39  ;;  %v2669_v17 = vadd.f32 %v2668_v31, %v2402_v22  ;;  %v2670_v24 = vpop.f32.mrb[113].mxu0  ;;  %v7912_v63 = vpack.c.bf16 %v7272_v61, %v7270_v9  ;;  %v2887_v31 = vld [vmem:[#allocation3 + $0x1e0] sm:$0xff] }
 0x4c4   : > { %v2671_v33 = vpop.f32.mrb[114].mxu0 }
 0x4c5   : > { %v2755_v4 = vmax.f32 %v2669_v17, 0.0  ;;  %v2672_v36 = vadd.f32 %v2671_v33, %v2403_v45  ;;  %4088 = vmatprep.subr.bf16.mxu1 %v2918_v10  ;;  %v2673_v13 = vpop.f32.mrb[115].mxu0  ;;  %v2830_v10 = vld [vmem:[#allocation3 + $0x18] sm:$0xff]  ;;  %v2406_v17 = vld [vmem:[%s7625_s1 + $0x1e0] sm:$0xff] }
 0x4c6   : > { %4089 = vmatpush3.bf16.msra.mxu1 %v7911_v29 }
 0x4c7   : > { %v2756_v25 = vmax.f32 %v2672_v36, 0.0  ;;  %v2819_v28 = vadd.f32 1e-07, %v2755_v4  ;;  %v2407_v36 = vld [vmem:[%s7625_s1 + $0x1e8] sm:$0xff] }
 0x4c9   : > { %v2820_v52 = vadd.f32 1e-07, %v2756_v25  ;;  %3068 = vmatmul.mubr.bf16.gmra.mrb[48].mxu1 %v2883_v32 }
 0x4ca   : > { %v2676_v58 = vpop.f32.mrb[116].mxu0  ;;  %3075 = vmatprep.mubr.bf16.mxu1 %v2888_v53 }
 0x4cb   : > { %v2919_v14 = vpack.c.bf16 %v2820_v52, %v2819_v28  ;;  %v2677_v0 = vadd.f32 %v2676_v58, %v2404_v23  ;;  %v2678_v54 = vpop.f32.mrb[117].mxu0  ;;  %v7913_v23 = vpack.c.bf16 %v7284_v37, %v7282_v5  ;;  %v2408_v52 = vld [vmem:[%s7625_s1 + $0x1f0] sm:$0xff]  ;;  %v7914_v5 = vpack.c.bf16 %v7296_v40, %v7294_v12  ;;  %v2842_v40 = vld [vmem:[#allocation3 + $0x78] sm:$0xff] }
 0x4cc   : > { %v2679_v49 = vpop.f32.mrb[118].mxu0  ;;  %v2841_v12 = vld [vmem:[#allocation3 + $0x70] sm:$0xff] }
 0x4cd   : > { %v2757_v19 = vmax.f32 %v2677_v0, 0.0  ;;  %v2680_v22 = vadd.f32 %v2679_v49, %v2405_v60  ;;  %4090 = vmatprep.subr.bf16.mxu1 %v2919_v14  ;;  %v2681_v39 = vpop.f32.mrb[119].mxu0  ;;  %v2409_v0 = vld [vmem:[%s7625_s1 + $0x1f8] sm:$0xff] }
 0x4ce   : > { %4091 = vmatpush3.bf16.msra.mxu1 %v7912_v63 }
 0x4cf   : > { %v2758_v45 = vmax.f32 %v2680_v22, 0.0  ;;  %v2821_v24 = vadd.f32 1e-07, %v2757_v19 }
 0x4d1   : > { %v2822_v33 = vadd.f32 1e-07, %v2758_v45  ;;  %3076 = vmatmul.mubr.bf16.gmra.mrb[52].mxu1 %v2887_v31 }
 0x4d2   : > { %v2684_v4 = vpop.f32.mrb[120].mxu0  ;;  %3116 = vmatprep.mubr.bf16.mxu1 %v2830_v10 }
 0x4d3   : > { %v2920_v13 = vpack.c.bf16 %v2822_v33, %v2821_v24  ;;  %v2685_v29 = vadd.f32 %v2684_v4, %v2406_v17  ;;  %v2686_v61 = vpop.f32.mrb[121].mxu0  ;;  %v7915_v24 = vpack.c.bf16 %v7308_v8, %v7306_v1  ;;  %v2829_v33 = vld [vmem:[#allocation3 + $0x10] sm:$0xff]  ;;  %v2834_v4 = vld [vmem:[#allocation3 + $0x38] sm:$0xff] }
 0x4d4   : > { %v2687_v9 = vpop.f32.mrb[122].mxu0  ;;  %v2846_v61 = vld [vmem:[#allocation3 + $0x98] sm:$0xff]  ;;  %v2845_v8 = vld [vmem:[#allocation3 + $0x90] sm:$0xff] }
 0x4d5   : > { %v2759_v32 = vmax.f32 %v2685_v29, 0.0  ;;  %v2688_v25 = vadd.f32 %v2687_v9, %v2407_v36  ;;  %4092 = vmatprep.subr.bf16.mxu1 %v2920_v13  ;;  %v2689_v53 = vpop.f32.mrb[123].mxu0  ;;  %v2833_v36 = vld [vmem:[#allocation3 + $0x30] sm:$0xff]  ;;  %v2838_v13 = vld [vmem:[#allocation3 + $0x58] sm:$0xff] }
 0x4d6   : > { %4093 = vmatpush3.bf16.msra.mxu1 %v7913_v23  ;;  %v2837_v29 = vld [vmem:[#allocation3 + $0x50] sm:$0xff]  ;;  %v2850_v1 = vld [vmem:[#allocation3 + $0xb8] sm:$0xff] }
 0x4d7   : > { %v2760_v28 = vmax.f32 %v2688_v25, 0.0  ;;  %v2823_v58 = vadd.f32 1e-07, %v2759_v32  ;;  %v2849_v9 = vld [vmem:[#allocation3 + $0xb0] sm:$0xff]  ;;  %v2854_v32 = vld [vmem:[#allocation3 + $0xd8] sm:$0xff]  ;;  %v4350_v25 = vld [vmem:[%s4760_s18] sm:$0xff]  }
 0x4d8   : > { %v2853_v53 = vld [vmem:[#allocation3 + $0xd0] sm:$0xff]  ;;  %v2858_v23 = vld [vmem:[#allocation3 + $0xf8] sm:$0xff] }
 0x4d9   : > { %v2824_v60 = vadd.f32 1e-07, %v2760_v28  ;;  %v4351_v28 = vld [vmem:[%s4760_s18 + $0x8] sm:$0xff]  }
 0x4da   : > { %v2692_v14 = vpop.f32.mrb[124].mxu0 }
 0x4db   : > { %v2921_v54 = vpack.c.bf16 %v2824_v60, %v2823_v58  ;;  %v2693_v49 = vadd.f32 %v2692_v14, %v2408_v52  ;;  %v2694_v19 = vpop.f32.mrb[125].mxu0  ;;  %v2857_v52 = vld [vmem:[#allocation3 + $0xf0] sm:$0xff]  ;;  %v2862_v58 = vld [vmem:[#allocation3 + $0x118] sm:$0xff] }
 0x4dc   : > { %v2695_v22 = vpop.f32.mrb[126].mxu0  ;;  %v4352_v60 = vld [vmem:[%s4760_s18 + $0x10] sm:$0xff]  }
 0x4dd   : > { %v2761_v39 = vmax.f32 %v2693_v49, 0.0  ;;  %v2696_v63 = vadd.f32 %v2695_v22, %v2409_v0  ;;  %4094 = vmatprep.subr.bf16.mxu1 %v2921_v54  ;;  %v2697_v37 = vpop.f32.mrb[127].mxu0  ;;  %v2861_v14 = vld [vmem:[#allocation3 + $0x110] sm:$0xff]  ;;  %v2866_v0 = vld [vmem:[#allocation3 + $0x138] sm:$0xff] }
 0x4de   : > { %4095 = vmatpush3.bf16.msra.mxu1 %v7914_v5  ;;  %v2865_v54 = vld [vmem:[#allocation3 + $0x130] sm:$0xff]  ;;  %v2870_v49 = vld [vmem:[#allocation3 + $0x158] sm:$0xff] }
 0x4df   : > { %v2762_v31 = vmax.f32 %v2696_v63, 0.0  ;;  %v2825_v45 = vadd.f32 1e-07, %v2761_v39  ;;  %v2869_v19 = vld [vmem:[#allocation3 + $0x150] sm:$0xff]  ;;  %v2874_v22 = vld [vmem:[#allocation3 + $0x178] sm:$0xff] }
 0x4e0   : > { %v4353_v37 = vld [vmem:[%s4760_s18 + $0x18] sm:$0xff]  }
 0x4e1   : > { %v2826_v10 = vadd.f32 1e-07, %v2762_v31 }
 0x4e3   : > { %v2922_v17 = vpack.c.bf16 %v2826_v10, %v2825_v45  ;;  %v2873_v45 = vld [vmem:[#allocation3 + $0x170] sm:$0xff] }
 0x4e5   : > { %4096 = vmatprep.subr.bf16.mxu1 %v2922_v17 }
 0x4e6   : > { %4097 = vmatpush3.bf16.msra.mxu1 %v7915_v24 }
 0x4e7   : > { %4218 = vmatprep.subr.bf16.mxu1 %v4350_v25 }
 0x4e9   : > { %3117 = vmatmul.mubr.bf16.vlgmr.msra.gmra.mrb[56].mxu1 %v2829_v33  ;;  %v2878_v33 = vld [vmem:[#allocation3 + $0x198] sm:$0xff] }
 0x4ea   : > { %3124 = vmatprep.mubr.bf16.mxu1 %v2834_v4  ;;  %4219 = vmatpush3.bf16.msra.mxu1 %v4350_v25  ;;  %v2877_v25 = vld [vmem:[#allocation3 + $0x190] sm:$0xff] }
 0x4eb   : > { %4220 = vmatprep.subr.bf16.mxu1 %v4351_v28 }
 0x4ee   : > { %4221 = vmatpush3.bf16.msra.mxu1 %v4351_v28 }
 0x4ef   : > { %4222 = vmatprep.subr.bf16.mxu1 %v4352_v60 }
 0x4f1   : > { %3125 = vmatmul.mubr.bf16.gmra.mrb[60].mxu1 %v2833_v36 }
 0x4f2   : > { %3132 = vmatprep.mubr.bf16.mxu1 %v2838_v13  ;;  %4223 = vmatpush3.bf16.msra.mxu1 %v4352_v60 }
 0x4f3   : > { %4224 = vmatprep.subr.bf16.mxu1 %v4353_v37 }
 0x4f6   : > { %4225 = vmatpush3.bf16.msra.mxu1 %v4353_v37 }
 0x4f9   : > { %3133 = vmatmul.mubr.bf16.gmra.mrb[64].mxu1 %v2837_v29  ;;  %v4354_v29 = vld [vmem:[%s4760_s18 + $0x20] sm:$0xff]  }
 0x4fa   : > { %3140 = vmatprep.mubr.bf16.mxu1 %v2842_v40  ;;  %4226 = vmatprep.subr.bf16.mxu1 %v4354_v29 }
 0x4fb   : > { %4227 = vmatpush3.bf16.msra.mxu1 %v4354_v29 }
 0x501   : > { %3141 = vmatmul.mubr.bf16.gmra.mrb[68].mxu1 %v2841_v12 }
 0x502   : > { %3148 = vmatprep.mubr.bf16.mxu1 %v2846_v61 }
 0x509   : > { %3149 = vmatmul.mubr.bf16.gmra.mrb[72].mxu1 %v2845_v8 }
 0x50a   : > { %3156 = vmatprep.mubr.bf16.mxu1 %v2850_v1  ;;  %v4355_v1 = vld [vmem:[%s4760_s18 + $0x28] sm:$0xff]  }
 0x50b   : > { %4228 = vmatprep.subr.bf16.mxu1 %v4355_v1 }
 0x50c   : > { %4229 = vmatpush3.bf16.msra.mxu1 %v4355_v1 }
 0x511   : > { %3157 = vmatmul.mubr.bf16.gmra.mrb[76].mxu1 %v2849_v9 }
 0x512   : > { %3164 = vmatprep.mubr.bf16.mxu1 %v2854_v32 }
 0x519   : > { %3165 = vmatmul.mubr.bf16.gmra.mrb[80].mxu1 %v2853_v53 }
 0x51a   : > { %3172 = vmatprep.mubr.bf16.mxu1 %v2858_v23 }
 0x521   : > { %3173 = vmatmul.mubr.bf16.gmra.mrb[84].mxu1 %v2857_v52  ;;  %v2882_v52 = vld [vmem:[#allocation3 + $0x1b8] sm:$0xff] }
 0x522   : > { %3180 = vmatprep.mubr.bf16.mxu1 %v2862_v58 }
 0x529   : > { %3181 = vmatmul.mubr.bf16.gmra.mrb[88].mxu1 %v2861_v14 }
 0x52a   : > { %3188 = vmatprep.mubr.bf16.mxu1 %v2866_v0  ;;  %v4356_v0 = vld [vmem:[%s4760_s18 + $0x30] sm:$0xff]  }
 0x52b   : > { %4230 = vmatprep.subr.bf16.mxu1 %v4356_v0 }
 0x52c   : > { %4231 = vmatpush3.bf16.msra.mxu1 %v4356_v0 }
 0x531   : > { %3189 = vmatmul.mubr.bf16.gmra.mrb[92].mxu1 %v2865_v54 }
 0x532   : > { %3196 = vmatprep.mubr.bf16.mxu1 %v2870_v49 }
 0x539   : > { %3197 = vmatmul.mubr.bf16.gmra.mrb[96].mxu1 %v2869_v19 }
 0x53a   : > { %3204 = vmatprep.mubr.bf16.mxu1 %v2874_v22  ;;  %v4357_v22 = vld [vmem:[%s4760_s18 + $0x38] sm:$0xff]  }
 0x53b   : > { %4232 = vmatprep.subr.bf16.mxu1 %v4357_v22 }
 0x53c   : > { %v3998_v39 = vpop.f32.mrb[0].mxu1  ;;  %v3986_v63 = vpop.f32.mrb[128].mxu0  ;;  %4233 = vmatpush3.bf16.msra.mxu1 %v4357_v22 }
 0x53d   : > { %v3999_v5 = vpop.f32.mrb[1].mxu1  ;;  %v3987_v31 = vpop.f32.mrb[129].mxu0 }
 0x53e   : > { %v7385_v10 = vadd.f32 %v3999_v5, %v3998_v39  ;;  %v4001_v17 = vpop.f32.mrb[2].mxu1  ;;  %v7387_v24 = vadd.f32 %v3987_v31, %v3986_v63  ;;  %v3989_v13 = vpop.f32.mrb[130].mxu0  ;;  %v2881_v63 = vld [vmem:[#allocation3 + $0x1b0] sm:$0xff]  ;;  %v2886_v31 = vld [vmem:[#allocation3 + $0x1d8] sm:$0xff] }
 0x53f   : > { %v4002_v4 = vpop.f32.mrb[3].mxu1  ;;  %v3990_v40 = vpop.f32.mrb[131].mxu0 }
 0x540   : > { %v7389_v36 = vadd.f32 %v4002_v4, %v4001_v17  ;;  %v7392_v12 = vadd.f32 %v3990_v40, %v3989_v13  ;;  %v2885_v13 = vld [vmem:[#allocation3 + $0x1d0] sm:$0xff] }
 0x541   : > { %3205 = vmatmul.mubr.bf16.gmra.mrb[100].mxu1 %v2873_v45 }
 0x542   : > { %3212 = vmatprep.mubr.bf16.mxu1 %v2878_v33 }
 0x544   : > { %v4004_v61 = vpop.f32.mrb[4].mxu1  ;;  %v3992_v8 = vpop.f32.mrb[132].mxu0 }
 0x545   : > { %v4005_v9 = vpop.f32.mrb[5].mxu1  ;;  %v3993_v32 = vpop.f32.mrb[133].mxu0 }
 0x546   : > { %v7395_v53 = vadd.f32 %v4005_v9, %v4004_v61  ;;  %v4007_v23 = vpop.f32.mrb[6].mxu1  ;;  %v7397_v28 = vadd.f32 %v3993_v32, %v3992_v8  ;;  %v3995_v14 = vpop.f32.mrb[134].mxu0  ;;  %v2890_v61 = vld [vmem:[#allocation3 + $0x1f8] sm:$0xff] }
 0x547   : > { %v4008_v58 = vpop.f32.mrb[7].mxu1  ;;  %v3996_v54 = vpop.f32.mrb[135].mxu0 }
 0x548   : > { %v7399_v60 = vadd.f32 %v4008_v58, %v4007_v23  ;;  %v7402_v49 = vadd.f32 %v3996_v54, %v3995_v14 }
 0x549   : > { %3213 = vmatmul.mubr.bf16.gmra.mrb[104].mxu1 %v2877_v25  ;;  %v2889_v25 = vld [vmem:[#allocation3 + $0x1f0] sm:$0xff] }
 0x54a   : > { %3220 = vmatprep.mubr.bf16.mxu1 %v2882_v52 }
 0x54c   : > { %v4010_v19 = vpop.f32.mrb[8].mxu1 }
 0x54d   : > { %v4011_v39 = vpop.f32.mrb[9].mxu1 }
 0x54e   : > { %v7405_v37 = vadd.f32 %v4011_v39, %v4010_v19  ;;  %v4013_v5 = vpop.f32.mrb[10].mxu1 }
 0x54f   : > { %v4014_v45 = vpop.f32.mrb[11].mxu1 }
 0x550   : > { %v7407_v17 = vadd.f32 %v4014_v45, %v4013_v5 }
 0x551   : > { %3221 = vmatmul.mubr.bf16.gmra.mrb[108].mxu1 %v2881_v63 }
 0x552   : > { %3228 = vmatprep.mubr.bf16.mxu1 %v2886_v31 }
 0x554   : > { %v4016_v33 = vpop.f32.mrb[12].mxu1 }
 0x555   : > { %v4017_v4 = vpop.f32.mrb[13].mxu1 }
 0x556   : > { %v7409_v29 = vadd.f32 %v4017_v4, %v4016_v33  ;;  %v4019_v40 = vpop.f32.mrb[14].mxu1 }
 0x557   : > { %v4020_v8 = vpop.f32.mrb[15].mxu1 }
 0x558   : > { %v7411_v1 = vadd.f32 %v4020_v8, %v4019_v40 }
 0x559   : > { %3229 = vmatmul.mubr.bf16.gmra.mrb[112].mxu1 %v2885_v13 }
 0x55a   : > { %3236 = vmatprep.mubr.bf16.mxu1 %v2890_v61 }
 0x55c   : > { %v4022_v9 = vpop.f32.mrb[16].mxu1 }
 0x55d   : > { %v4023_v32 = vpop.f32.mrb[17].mxu1 }
 0x55e   : > { %v7413_v23 = vadd.f32 %v4023_v32, %v4022_v9  ;;  %v4025_v52 = vpop.f32.mrb[18].mxu1 }
 0x55f   : > { %v4026_v58 = vpop.f32.mrb[19].mxu1 }
 0x560   : > { %v7415_v14 = vadd.f32 %v4026_v58, %v4025_v52 }
 0x561   : > { %3237 = vmatmul.mubr.bf16.gmra.mrb[116].mxu1 %v2889_v25 }
 0x564   : > { %v4028_v0 = vpop.f32.mrb[20].mxu1 }
 0x565   : > { %v4029_v54 = vpop.f32.mrb[21].mxu1 }
 0x566   : > { %v7417_v19 = vadd.f32 %v4029_v54, %v4028_v0  ;;  %v4031_v22 = vpop.f32.mrb[22].mxu1 }
 0x567   : > { %v4032_v39 = vpop.f32.mrb[23].mxu1 }
 0x568   : > { %v7419_v63 = vadd.f32 %v4032_v39, %v4031_v22 }
 0x56c   : > { %v4034_v5 = vpop.f32.mrb[24].mxu1 }
 0x56d   : > { %v4035_v31 = vpop.f32.mrb[25].mxu1 }
 0x56e   : > { %v7421_v45 = vadd.f32 %v4035_v31, %v4034_v5  ;;  %v4037_v33 = vpop.f32.mrb[26].mxu1 }
 0x56f   : > { %v4038_v4 = vpop.f32.mrb[27].mxu1 }
 0x570   : > { %v7423_v13 = vadd.f32 %v4038_v4, %v4037_v33 }
 0x574   : > { %v4040_v40 = vpop.f32.mrb[28].mxu1 }
 0x575   : > { %v4041_v61 = vpop.f32.mrb[29].mxu1 }
 0x576   : > { %v7425_v8 = vadd.f32 %v4041_v61, %v4040_v40  ;;  %v4043_v9 = vpop.f32.mrb[30].mxu1 }
 0x577   : > { %v4044_v32 = vpop.f32.mrb[31].mxu1 }
 0x578   : > { %v7427_v25 = vadd.f32 %v4044_v32, %v4043_v9 }
 0x57c   : > { %v4046_v52 = vpop.f32.mrb[32].mxu1 }
 0x57d   : > { %v4047_v58 = vpop.f32.mrb[33].mxu1 }
 0x57e   : > { %v7429_v0 = vadd.f32 %v4047_v58, %v4046_v52  ;;  %v4049_v54 = vpop.f32.mrb[34].mxu1 }
 0x57f   : > { %v4050_v22 = vpop.f32.mrb[35].mxu1 }
 0x580   : > { %v7431_v39 = vadd.f32 %v4050_v22, %v4049_v54 }
 0x584   : > { %v4052_v5 = vpop.f32.mrb[36].mxu1 }
 0x585   : > { %v4053_v31 = vpop.f32.mrb[37].mxu1 }
 0x586   : > { %v7433_v33 = vadd.f32 %v4053_v31, %v4052_v5  ;;  %v4055_v4 = vpop.f32.mrb[38].mxu1 }
 0x587   : > { %v4056_v6 = vpop.f32.mrb[39].mxu1 }
 0x588   : > { %v7435_v40 = vadd.f32 %v4056_v6, %v4055_v4 }
 0x58c   : > { %v4058_v61 = vpop.f32.mrb[40].mxu1 }
 0x58d   : > { %v4059_v35 = vpop.f32.mrb[41].mxu1 }
 0x58e   : > { %v7437_v9 = vadd.f32 %v4059_v35, %v4058_v61  ;;  %v4061_v32 = vpop.f32.mrb[42].mxu1 }
 0x58f   : > { %v4062_v7 = vpop.f32.mrb[43].mxu1 }
 0x590   : > { %7916 = vst [vmem:[#allocation100_spill] sm:$0xff] %v7437_v9  ;;  %v7439_v52 = vadd.f32 %v4062_v7, %v4061_v32 }
 0x592   : > { %7917 = vst [vmem:[#allocation101_spill] sm:$0xff] %v7439_v52 }
 0x594   : > { %v4064_v58 = vpop.f32.mrb[44].mxu1 }
 0x595   : > { %v4065_v62 = vpop.f32.mrb[45].mxu1 }
 0x596   : > { %v7441_v54 = vadd.f32 %v4065_v62, %v4064_v58  ;;  %v4067_v22 = vpop.f32.mrb[46].mxu1 }
 0x597   : > { %v4068_v44 = vpop.f32.mrb[47].mxu1 }
 0x598   : > { %7918 = vst [vmem:[#allocation102_spill] sm:$0xff] %v7441_v54  ;;  %v7443_v5 = vadd.f32 %v4068_v44, %v4067_v22 }
 0x59a   : > { %7919 = vst [vmem:[#allocation103_spill] sm:$0xff] %v7443_v5 }
 0x59c   : > { %v4070_v31 = vpop.f32.mrb[48].mxu1 }
 0x59d   : > { %v4071_v18 = vpop.f32.mrb[49].mxu1 }
 0x59e   : > { %v7445_v6 = vadd.f32 %v4071_v18, %v4070_v31  ;;  %v4073_v4 = vpop.f32.mrb[50].mxu1 }
 0x59f   : > { %v4074_v16 = vpop.f32.mrb[51].mxu1 }
 0x5a0   : > { %7920 = vst [vmem:[#allocation104_spill] sm:$0xff] %v7445_v6  ;;  %v7447_v35 = vadd.f32 %v4074_v16, %v4073_v4  ;;  %v7924_v16 = vmax.f32 %v6818_v42, 0.0  ;;  %v7927_v42 = vmax.f32 %v6840_v55, 0.0 }
 0x5a2   : > { %7921 = vst [vmem:[#allocation105_spill] sm:$0xff] %v7447_v35 }
 0x5a4   : > { %v4076_v61 = vpop.f32.mrb[52].mxu1 }
 0x5a5   : > { %v4077_v9 = vpop.f32.mrb[53].mxu1 }
 0x5a6   : > { %v7449_v7 = vadd.f32 %v4077_v9, %v4076_v61  ;;  %v4079_v32 = vpop.f32.mrb[54].mxu1  ;;  %v7925_v9 = vmax.f32 %v6824_v47, 0.0 }
 0x5a7   : > { %v4080_v52 = vpop.f32.mrb[55].mxu1 }
 0x5a8   : > { %7922 = vst [vmem:[#allocation106_spill] sm:$0xff] %v7449_v7  ;;  %v7451_v62 = vadd.f32 %v4080_v52, %v4079_v32 }
 0x5aa   : > { %7923 = vst [vmem:[#allocation107_spill] sm:$0xff] %v7451_v62 }
 0x5bc   : > { %v4098_v58 = vpop.f32.mrb[56].mxu1 }
 0x5bd   : > { %v4099_v54 = vpop.f32.mrb[57].mxu1 }
 0x5be   : > { %v4100_v44 = vadd.f32 %v4099_v54, %v4098_v58  ;;  %v4101_v22 = vpop.f32.mrb[58].mxu1 }
 0x5bf   : > { %v4102_v5 = vpop.f32.mrb[59].mxu1 }
 0x5c0   : > { %v3119_v18 = vadd.f32 %v4100_v44, %v7387_v24  ;;  %v4103_v31 = vadd.f32 %v4102_v5, %v4101_v22 }
 0x5c2   : > { %v3122_v6 = vadd.f32 %v4103_v31, %v7392_v12  ;;  %v3245_v4 = vadd.f32 %v3119_v18, %v7924_v16  ;;  %v7926_v12 = vmax.f32 %v6829_v27, 0.0  ;;  %v7929_v27 = vmax.f32 %v6857_v50, 0.0 }
 0x5c4   : > { %v3246_v61 = vadd.f32 %v3122_v6, %v7925_v9  ;;  %v4104_v7 = vpop.f32.mrb[60].mxu1 }
 0x5c5   : > { %v4105_v35 = vpop.f32.mrb[61].mxu1 }
 0x5c6   : > { %v4106_v52 = vadd.f32 %v4105_v35, %v4104_v7  ;;  %v4107_v32 = vpop.f32.mrb[62].mxu1  ;;  %v3277_v62 = vpack.c.bf16 %v3246_v61, %v3245_v4 }
 0x5c7   : > { %v4108_v30 = vpop.f32.mrb[63].mxu1 }
 0x5c8   : > { %v3127_v54 = vadd.f32 %v4106_v52, %v7397_v28  ;;  %v4109_v58 = vadd.f32 %v4108_v30, %v4107_v32  ;;  %4234 = vmatprep.mubr.bf16.mxu1 %v3277_v62  ;;  %v7928_v28 = vmax.f32 %v6848_v20, 0.0  ;;  %v7931_v20 = vmax.f32 %v6874_v11, 0.0 }
 0x5ca   : > { %v3130_v24 = vadd.f32 %v4109_v58, %v7402_v49  ;;  %v3247_v5 = vadd.f32 %v3127_v54, %v7926_v12 }
 0x5cc   : > { %v3248_v44 = vadd.f32 %v3130_v24, %v7927_v42  ;;  %v4110_v47 = vpop.f32.mrb[64].mxu1 }
 0x5cd   : > { %v4111_v6 = vpop.f32.mrb[65].mxu1 }
 0x5ce   : > { %v3278_v22 = vpack.c.bf16 %v3248_v44, %v3247_v5  ;;  %v4112_v18 = vadd.f32 %v4111_v6, %v4110_v47  ;;  %v4113_v35 = vpop.f32.mrb[66].mxu1 }
 0x5cf   : > { %v4114_v7 = vpop.f32.mrb[67].mxu1 }
 0x5d0   : > { %v3135_v31 = vadd.f32 %v4112_v18, %v7385_v10  ;;  %v4115_v16 = vadd.f32 %v4114_v7, %v4113_v35  ;;  %4235 = vmatmul.mubr.bf16.vlgmr.msra.gmra.mrb[120].mxu1 %v3278_v22 }
 0x5d2   : > { %v3138_v30 = vadd.f32 %v4115_v16, %v7389_v36  ;;  %v3249_v49 = vadd.f32 %v3135_v31, %v7928_v28  ;;  %v7930_v36 = vmax.f32 %v6862_v57, 0.0  ;;  %v7933_v57 = vmax.f32 %v6891_v41, 0.0 }
 0x5d4   : > { %v3250_v62 = vadd.f32 %v3138_v30, %v7929_v27  ;;  %v4116_v55 = vpop.f32.mrb[68].mxu1 }
 0x5d5   : > { %v4117_v4 = vpop.f32.mrb[69].mxu1 }
 0x5d6   : > { %v4118_v9 = vadd.f32 %v4117_v4, %v4116_v55  ;;  %v4119_v61 = vpop.f32.mrb[70].mxu1  ;;  %v3279_v52 = vpack.c.bf16 %v3250_v62, %v3249_v49 }
 0x5d7   : > { %v4120_v32 = vpop.f32.mrb[71].mxu1 }
 0x5d8   : > { %v3143_v54 = vadd.f32 %v4118_v9, %v7395_v53  ;;  %v4121_v58 = vadd.f32 %v4120_v32, %v4119_v61  ;;  %4238 = vmatprep.mubr.bf16.mxu1 %v3279_v52 }
 0x5da   : > { %v3146_v10 = vadd.f32 %v4121_v58, %v7399_v60  ;;  %v3251_v24 = vadd.f32 %v3143_v54, %v7930_v36  ;;  %v7932_v60 = vmax.f32 %v6882_v15, 0.0  ;;  %v7935_v15 = vmax.f32 %v6908_v59, 0.0 }
 0x5dc   : > { %v3252_v12 = vadd.f32 %v3146_v10, %v7931_v20  ;;  %v4122_v50 = vpop.f32.mrb[72].mxu1 }
 0x5dd   : > { %v4123_v5 = vpop.f32.mrb[73].mxu1 }
 0x5de   : > { %v4124_v42 = vadd.f32 %v4123_v5, %v4122_v50  ;;  %v4125_v44 = vpop.f32.mrb[74].mxu1  ;;  %v3280_v47 = vpack.c.bf16 %v3252_v12, %v3251_v24 }
 0x5df   : > { %v4126_v6 = vpop.f32.mrb[75].mxu1 }
 0x5e0   : > { %v3151_v22 = vadd.f32 %v4124_v42, %v7405_v37  ;;  %v4127_v18 = vadd.f32 %v4126_v6, %v4125_v44  ;;  %4239 = vmatmul.mubr.bf16.gmra.mrb[124].mxu1 %v3280_v47 }
 0x5e2   : > { %v3154_v53 = vadd.f32 %v4127_v18, %v7407_v17  ;;  %v3253_v35 = vadd.f32 %v3151_v22, %v7932_v60  ;;  %v7934_v17 = vmax.f32 %v6896_v46, 0.0  ;;  %v7937_v46 = vmax.f32 %v6925_v43, 0.0 }
 0x5e4   : > { %v3254_v7 = vadd.f32 %v3154_v53, %v7933_v57  ;;  %v4128_v11 = vpop.f32.mrb[76].mxu1 }
 0x5e5   : > { %v4129_v31 = vpop.f32.mrb[77].mxu1 }
 0x5e6   : > { %v4130_v16 = vadd.f32 %v4129_v31, %v4128_v11  ;;  %v4131_v30 = vpop.f32.mrb[78].mxu1  ;;  %v3281_v28 = vpack.c.bf16 %v3254_v7, %v3253_v35 }
 0x5e7   : > { %v4132_v49 = vpop.f32.mrb[79].mxu1 }
 0x5e8   : > { %v3159_v27 = vadd.f32 %v4130_v16, %v7409_v29  ;;  %v4133_v62 = vadd.f32 %v4132_v49, %v4131_v30  ;;  %4242 = vmatprep.mubr.bf16.mxu1 %v3281_v28 }
 0x5ea   : > { %v3162_v37 = vadd.f32 %v4133_v62, %v7411_v1  ;;  %v3255_v55 = vadd.f32 %v3159_v27, %v7934_v17  ;;  %v7936_v1 = vmax.f32 %v6916_v34, 0.0  ;;  %v7939_v34 = vmax.f32 %v6942_v26, 0.0 }
 0x5ec   : > { %v3256_v4 = vadd.f32 %v3162_v37, %v7935_v15  ;;  %v4134_v41 = vpop.f32.mrb[80].mxu1 }
 0x5ed   : > { %v4135_v9 = vpop.f32.mrb[81].mxu1 }
 0x5ee   : > { %v4136_v61 = vadd.f32 %v4135_v9, %v4134_v41  ;;  %v4137_v52 = vpop.f32.mrb[82].mxu1  ;;  %v3282_v32 = vpack.c.bf16 %v3256_v4, %v3255_v55 }
 0x5ef   : > { %v4138_v54 = vpop.f32.mrb[83].mxu1 }
 0x5f0   : > { %v3167_v58 = vadd.f32 %v4136_v61, %v7413_v23  ;;  %v4139_v10 = vadd.f32 %v4138_v54, %v4137_v52  ;;  %4243 = vmatmul.mubr.bf16.gmra.mrb[128].mxu1 %v3282_v32 }
 0x5f2   : > { %v3170_v29 = vadd.f32 %v4139_v10, %v7415_v14  ;;  %v3257_v36 = vadd.f32 %v3167_v58, %v7936_v1  ;;  %v7938_v14 = vmax.f32 %v6930_v38, 0.0  ;;  %v7941_v38 = vmax.f32 %v6959_v51, 0.0 }
 0x5f4   : > { %v3258_v24 = vadd.f32 %v3170_v29, %v7937_v46  ;;  %v4140_v59 = vpop.f32.mrb[84].mxu1 }
 0x5f5   : > { %v4141_v20 = vpop.f32.mrb[85].mxu1 }
 0x5f6   : > { %v4142_v12 = vadd.f32 %v4141_v20, %v4140_v59  ;;  %v4143_v50 = vpop.f32.mrb[86].mxu1  ;;  %v3283_v5 = vpack.c.bf16 %v3258_v24, %v3257_v36 }
 0x5f7   : > { %v4144_v42 = vpop.f32.mrb[87].mxu1 }
 0x5f8   : > { %v3175_v44 = vadd.f32 %v4142_v12, %v7417_v19  ;;  %v4145_v47 = vadd.f32 %v4144_v42, %v4143_v50  ;;  %4246 = vmatprep.mubr.bf16.mxu1 %v3283_v5  ;;  %v7946_v12 = vld [vmem:[#allocation90_spill] sm:$0xff] }
 0x5fa   : > { %v3178_v23 = vadd.f32 %v4145_v47, %v7419_v63  ;;  %v3259_v6 = vadd.f32 %v3175_v44, %v7938_v14  ;;  %v7940_v63 = vmax.f32 %v6950_v2, 0.0  ;;  %v7943_v2 = vmax.f32 %v6976_v21, 0.0 }
 0x5fc   : > { %v3260_v22 = vadd.f32 %v3178_v23, %v7939_v34  ;;  %v4146_v43 = vpop.f32.mrb[88].mxu1  ;;  %v7950_v34 = vld [vmem:[#allocation100_spill] sm:$0xff] }
 0x5fd   : > { %v4147_v18 = vpop.f32.mrb[89].mxu1 }
 0x5fe   : > { %v4148_v53 = vadd.f32 %v4147_v18, %v4146_v43  ;;  %v4149_v60 = vpop.f32.mrb[90].mxu1  ;;  %v3284_v35 = vpack.c.bf16 %v3260_v22, %v3259_v6 }
 0x5ff   : > { %v4150_v57 = vpop.f32.mrb[91].mxu1 }
 0x600   : > { %v3183_v7 = vadd.f32 %v4148_v53, %v7421_v45  ;;  %v4151_v11 = vadd.f32 %v4150_v57, %v4149_v60  ;;  %4247 = vmatmul.mubr.bf16.gmra.mrb[132].mxu1 %v3284_v35  ;;  %v7952_v53 = vld [vmem:[#allocation92_spill] sm:$0xff]  ;;  %v7954_v35 = vld [vmem:[#allocation93_spill] sm:$0xff] }
 0x601   : > { %v7955_v57 = vmax.f32 %v7954_v35, 0.0 }
 0x602   : > { %v3186_v19 = vadd.f32 %v4151_v11, %v7423_v13  ;;  %v3261_v31 = vadd.f32 %v3183_v7, %v7940_v63  ;;  %v7942_v13 = vmax.f32 %v6964_v56, 0.0  ;;  %v7945_v56 = vmax.f32 %v6993_v3, 0.0 }
 0x604   : > { %v3262_v16 = vadd.f32 %v3186_v19, %v7941_v38  ;;  %v4152_v26 = vpop.f32.mrb[92].mxu1 }
 0x605   : > { %v4153_v30 = vpop.f32.mrb[93].mxu1 }
 0x606   : > { %v4154_v28 = vadd.f32 %v4153_v30, %v4152_v26  ;;  %v4155_v49 = vpop.f32.mrb[94].mxu1  ;;  %v3285_v27 = vpack.c.bf16 %v3262_v16, %v3261_v31  ;;  %v7956_v26 = vld [vmem:[#allocation102_spill] sm:$0xff] }
 0x607   : > { %v4156_v62 = vpop.f32.mrb[95].mxu1 }
 0x608   : > { %v3191_v37 = vadd.f32 %v4154_v28, %v7425_v8  ;;  %v4157_v17 = vadd.f32 %v4156_v62, %v4155_v49  ;;  %4250 = vmatprep.mubr.bf16.mxu1 %v3285_v27  ;;  %v7957_v49 = vld [vmem:[#allocation103_spill] sm:$0xff]  ;;  %v7958_v62 = vld [vmem:[#allocation94_spill] sm:$0xff] }
 0x60a   : > { %v3194_v45 = vadd.f32 %v4157_v17, %v7427_v25  ;;  %v3263_v55 = vadd.f32 %v3191_v37, %v7942_v13  ;;  %v7944_v25 = vmax.f32 %v6984_v48, 0.0  ;;  %v7948_v48 = vld [vmem:[#allocation91_spill] sm:$0xff]  ;;  %v7959_v37 = vmax.f32 %v7958_v62, 0.0 }
 0x60b   : > { %v7949_v5 = vmax.f32 %v7948_v48, 0.0 }
 0x60c   : > { %v3264_v15 = vadd.f32 %v3194_v45, %v7943_v2  ;;  %v4158_v51 = vpop.f32.mrb[96].mxu1  ;;  %v7960_v45 = vld [vmem:[#allocation95_spill] sm:$0xff] }
 0x60d   : > { %v4159_v4 = vpop.f32.mrb[97].mxu1  ;;  %v7961_v13 = vmax.f32 %v7960_v45, 0.0  ;;  %v4427_v45 = vld [vmem:[#allocation9 + $0x20] sm:$0xff] }
 0x60e   : > { %v4160_v41 = vadd.f32 %v4159_v4, %v4158_v51  ;;  %v4161_v9 = vpop.f32.mrb[98].mxu1  ;;  %v3286_v61 = vpack.c.bf16 %v3264_v15, %v3263_v55 }
 0x60f   : > { %v4162_v52 = vpop.f32.mrb[99].mxu1 }
 0x610   : > { %v3199_v32 = vadd.f32 %v4160_v41, %v7429_v0  ;;  %v4163_v54 = vadd.f32 %v4162_v52, %v4161_v9  ;;  %4251 = vmatmul.mubr.bf16.gmra.mrb[136].mxu1 %v3286_v61  ;;  %v7962_v61 = vld [vmem:[#allocation104_spill] sm:$0xff] }
 0x612   : > { %v3202_v8 = vadd.f32 %v4163_v54, %v7431_v39  ;;  %v3265_v58 = vadd.f32 %v3199_v32, %v7944_v25  ;;  %v7947_v39 = vmax.f32 %v7946_v12, 0.0  ;;  %v7963_v54 = vld [vmem:[#allocation105_spill] sm:$0xff]  ;;  %v7964_v25 = vld [vmem:[#allocation96_spill] sm:$0xff] }
 0x614   : > { %v3266_v10 = vadd.f32 %v3202_v8, %v7945_v56  ;;  %v4164_v21 = vpop.f32.mrb[100].mxu1 }
 0x615   : > { %v4165_v29 = vpop.f32.mrb[101].mxu1 }
 0x616   : > { %v4166_v1 = vadd.f32 %v4165_v29, %v4164_v21  ;;  %v4167_v36 = vpop.f32.mrb[102].mxu1  ;;  %v3287_v46 = vpack.c.bf16 %v3266_v10, %v3265_v58  ;;  %v7965_v58 = vmax.f32 %v7964_v25, 0.0  ;;  %v7966_v10 = vld [vmem:[#allocation97_spill] sm:$0xff] }
 0x617   : > { %v4168_v24 = vpop.f32.mrb[103].mxu1  ;;  %v7967_v21 = vmax.f32 %v7966_v10, 0.0 }
 0x618   : > { %v3207_v59 = vadd.f32 %v4166_v1, %v7433_v33  ;;  %v4169_v20 = vadd.f32 %v4168_v24, %v4167_v36  ;;  %4254 = vmatprep.mubr.bf16.mxu1 %v3287_v46  ;;  %v7951_v33 = vld [vmem:[#allocation101_spill] sm:$0xff] }
 0x61a   : > { %v3210_v0 = vadd.f32 %v4169_v20, %v7435_v40  ;;  %v3267_v50 = vadd.f32 %v3207_v59, %v7947_v39  ;;  %v7953_v40 = vmax.f32 %v7952_v53, 0.0  ;;  %v4422_v53 = vld [vmem:[#allocation9 + $0x10] sm:$0xff] }
 0x61c   : > { %v3268_v42 = vadd.f32 %v3210_v0, %v7949_v5  ;;  %v4170_v3 = vpop.f32.mrb[104].mxu1  ;;  %v7968_v0 = vld [vmem:[#allocation106_spill] sm:$0xff] }
 0x61d   : > { %v4171_v44 = vpop.f32.mrb[105].mxu1  ;;  %v7970_v5 = vld [vmem:[#allocation98_spill] sm:$0xff] }
 0x61e   : > { %v4172_v47 = vadd.f32 %v4171_v44, %v4170_v3  ;;  %v4173_v23 = vpop.f32.mrb[106].mxu1  ;;  %v3288_v14 = vpack.c.bf16 %v3268_v42, %v3267_v50  ;;  %v7969_v50 = vld [vmem:[#allocation107_spill] sm:$0xff]  ;;  %v7971_v42 = vmax.f32 %v7970_v5, 0.0 }
 0x61f   : > { %v4174_v6 = vpop.f32.mrb[107].mxu1  ;;  %v7972_v44 = vld [vmem:[#allocation99_spill] sm:$0xff] }
 0x620   : > { %v3215_v22 = vadd.f32 %v4172_v47, %v7950_v34  ;;  %v4175_v43 = vadd.f32 %v4174_v6, %v4173_v23  ;;  %4255 = vmatmul.mubr.bf16.gmra.mrb[140].mxu1 %v3288_v14  ;;  %v7973_v47 = vmax.f32 %v7972_v44, 0.0  ;;  %v7554_v6 = vld [vmem:[%s368_s10] ss:$0 sm:$0xff]  ;;  %s3595_s10 = sshll.u32 %s4591_s11, 4  ;;  %s3596_s10 = int_to_ptr.vmem [resolvable:$true] %s3595_s10 }
 0x621   : > { %s4512_s26 = scalar_lea.vmem %s3596_s10, 4096  ;;  %p4519_p8 = scmp.lt.s32.totalorder %s3596_s10, %s3596_s10 }
 0x622   : > { %v3218_v18 = vadd.f32 %v4175_v43, %v7951_v33  ;;  %v3269_v60 = vadd.f32 %v3215_v22, %v7953_v40  ;;  %p4513_p1 = scmp.ne.s32.totalorder %s3596_s10, %s4512_s26  ;;  %p4520_p12 = scmp.lt.s32.totalorder %s4512_s26, %s4512_s26 }
 0x624   : > { %v3270_v7 = vadd.f32 %v3218_v18, %v7955_v57  ;;  %v4176_v11 = vpop.f32.mrb[108].mxu1  ;;  %v4423_v57 = vld [vmem:[#allocation9] sm:$0xff]  ;;  %p4514_p4 = pnand %p4513_p1, %p4303_p10  ;;  %p4521_p0 = por %p4520_p12, %p4519_p8 }
 0x625   : > { %v4177_v19 = vpop.f32.mrb[109].mxu1 }
 0x626   : > { %v4178_v63 = vadd.f32 %v4177_v19, %v4176_v11  ;;  %v4179_v31 = vpop.f32.mrb[110].mxu1  ;;  %v3289_v38 = vpack.c.bf16 %v3270_v7, %v3269_v60  ;;  %v4424_v19 = vld [vmem:[#allocation9 + $0x18] sm:$0xff]  ;;  %p4515_p5 = pneg %p4514_p4 }
 0x627   : > { %v4180_v16 = vpop.f32.mrb[111].mxu1 }
 0x628   : > { %v3223_v30 = vadd.f32 %v4178_v63, %v7956_v26  ;;  %v4181_v28 = vadd.f32 %v4180_v16, %v4179_v31  ;;  %4258 = vmatprep.mubr.bf16.mxu1 %v3289_v38  ;;  %v4425_v31 = vld [vmem:[#allocation9 + $0x8] sm:$0xff]  ;;  %p4522_p2 = pnand %p4521_p0, %p4515_p5 }
 0x62a   : > { %v3226_v27 = vadd.f32 %v4181_v28, %v7957_v49  ;;  %v3271_v17 = vadd.f32 %v3223_v30, %v7959_v37 }
 0x62c   : > { %v3272_v55 = vadd.f32 %v3226_v27, %v7961_v13  ;;  %v4182_v2 = vpop.f32.mrb[112].mxu1  ;;  %v4426_v27 = vld [vmem:[#allocation9 + $0x30] sm:$0xff] }
 0x62d   : > { %v4183_v15 = vpop.f32.mrb[113].mxu1 }
 0x62e   : > { %v4184_v51 = vadd.f32 %v4183_v15, %v4182_v2  ;;  %v4185_v4 = vpop.f32.mrb[114].mxu1  ;;  %v3290_v41 = vpack.c.bf16 %v3272_v55, %v3271_v17  ;;  %v4428_v2 = vld [vmem:[#allocation9 + $0x38] sm:$0xff] }
 0x62f   : > { %v4186_v9 = vpop.f32.mrb[115].mxu1 }
 0x630   : > { %v3231_v52 = vadd.f32 %v4184_v51, %v7962_v61  ;;  %v4187_v32 = vadd.f32 %v4186_v9, %v4185_v4  ;;  %4259 = vmatmul.mubr.bf16.gmra.mrb[144].mxu1 %v3290_v41  ;;  %v4429_v51 = vld [vmem:[#allocation9 + $0x28] sm:$0xff] }
 0x632   : > { %v3234_v8 = vadd.f32 %v4187_v32, %v7963_v54  ;;  %v3273_v56 = vadd.f32 %v3231_v52, %v7965_v58  ;;  %v4430_v54 = vld [vmem:[#allocation9 + $0x50] sm:$0xff] }
 0x634   : > { %v3274_v29 = vadd.f32 %v3234_v8, %v7967_v21  ;;  %v4188_v1 = vpop.f32.mrb[116].mxu1 }
 0x635   : > { %v4189_v36 = vpop.f32.mrb[117].mxu1 }
 0x636   : > { %v4190_v46 = vadd.f32 %v4189_v36, %v4188_v1  ;;  %v4191_v24 = vpop.f32.mrb[118].mxu1  ;;  %v3291_v59 = vpack.c.bf16 %v3274_v29, %v3273_v56  ;;  %v4431_v56 = vld [vmem:[#allocation9 + $0x40] sm:$0xff]  ;;  %v4432_v29 = vld [vmem:[#allocation9 + $0x58] sm:$0xff]  ;;  %v4433_v36 = vld [vmem:[#allocation9 + $0x48] sm:$0xff] }
 0x637   : > { %v4192_v20 = vpop.f32.mrb[119].mxu1 }
 0x638   : > { %v3239_v12 = vadd.f32 %v4190_v46, %v7968_v0  ;;  %v4193_v39 = vadd.f32 %v4192_v20, %v4191_v24  ;;  %4262 = vmatprep.mubr.bf16.mxu1 %v3291_v59 }
 0x63a   : > { %v3242_v48 = vadd.f32 %v4193_v39, %v7969_v50  ;;  %v3275_v3 = vadd.f32 %v3239_v12, %v7971_v42  ;;  %v4434_v39 = vld [vmem:[#allocation9 + $0x70] sm:$0xff]  ;;  %v4435_v42 = vld [vmem:[#allocation9 + $0x60] sm:$0xff] }
 0x63c   : > { %v3276_v23 = vadd.f32 %v3242_v48, %v7973_v47  ;;  %v4436_v47 = vld [vmem:[#allocation9 + $0x78] sm:$0xff] }
 0x63e   : > { %v3292_v14 = vpack.c.bf16 %v3276_v23, %v3275_v3 }
 0x640   : > { %4263 = vmatmul.mubr.bf16.gmra.mrb[148].mxu1 %v3292_v14  ;;  %v4437_v14 = vld [vmem:[#allocation9 + $0x68] sm:$0xff] }
 0x6a3   : > { %v4236_v34 = vpop.f32.mrb[120].mxu1 }
 0x6a4   : > { %v3407_v22 = vadd.f32 %v4236_v34, %v7554_v6  ;;  %v3398_v43 = vpop.f32.mrb[121].mxu1 }
 0x6a5   : > { %v3399_v33 = vadd.f32 %v7554_v6, %v3398_v43  ;;  %v4237_v18 = vpop.f32.mrb[122].mxu1 }
 0x6a6   : > { %v3527_v40 = vadd.f32 %v4422_v53, %v3407_v22  ;;  %v3410_v60 = vadd.f32 %v4237_v18, %v7554_v6  ;;  %v3401_v35 = vpop.f32.mrb[123].mxu1 }
 0x6a7   : > { %v3525_v7 = vadd.f32 %v4423_v57, %v3399_v33  ;;  %v3402_v11 = vadd.f32 %v7554_v6, %v3401_v35 }
 0x6a8   : > { %3559 = vst [vmem:[#allocation9 + $0x10] sm:$0xff] %v3527_v40  ;;  %v3528_v63 = vadd.f32 %v4424_v19, %v3410_v60  ;;  %v4438_v40 = vld [vmem:[#allocation9 + $0x90] sm:$0xff] }
 0x6a9   : > { %3557 = vst [vmem:[#allocation9] sm:$0xff] %v3525_v7  ;;  %v3526_v38 = vadd.f32 %v4425_v31, %v3402_v11  ;;  %v4439_v7 = vld [vmem:[#allocation9 + $0x80] sm:$0xff] }
 0x6aa   : > { %3560 = vst [vmem:[#allocation9 + $0x18] sm:$0xff] %v3528_v63  ;;  %v4440_v63 = vld [vmem:[#allocation9 + $0x98] sm:$0xff] }
 0x6ab   : > { %3558 = vst [vmem:[#allocation9 + $0x8] sm:$0xff] %v3526_v38  ;;  %v4441_v38 = vld [vmem:[#allocation9 + $0x88] sm:$0xff] }
 0x6b3   : > { %v4240_v16 = vpop.f32.mrb[124].mxu1 }
 0x6b4   : > { %v3423_v26 = vadd.f32 %v4240_v16, %v7554_v6  ;;  %v3414_v30 = vpop.f32.mrb[125].mxu1 }
 0x6b5   : > { %v3415_v28 = vadd.f32 %v7554_v6, %v3414_v30  ;;  %v4241_v49 = vpop.f32.mrb[126].mxu1 }
 0x6b6   : > { %v3531_v62 = vadd.f32 %v4426_v27, %v3423_v26  ;;  %v3426_v37 = vadd.f32 %v4241_v49, %v7554_v6  ;;  %v3417_v17 = vpop.f32.mrb[127].mxu1 }
 0x6b7   : > { %v3529_v13 = vadd.f32 %v4427_v45, %v3415_v28  ;;  %v3418_v55 = vadd.f32 %v7554_v6, %v3417_v17 }
 0x6b8   : > { %3563 = vst [vmem:[#allocation9 + $0x30] sm:$0xff] %v3531_v62  ;;  %v3532_v15 = vadd.f32 %v4428_v2, %v3426_v37  ;;  %v4442_v62 = vld [vmem:[#allocation9 + $0xb0] sm:$0xff] }
 0x6b9   : > { %3561 = vst [vmem:[#allocation9 + $0x20] sm:$0xff] %v3529_v13  ;;  %v3530_v4 = vadd.f32 %v4429_v51, %v3418_v55  ;;  %v4443_v13 = vld [vmem:[#allocation9 + $0xa0] sm:$0xff] }
 0x6ba   : > { %3564 = vst [vmem:[#allocation9 + $0x38] sm:$0xff] %v3532_v15  ;;  %v4444_v15 = vld [vmem:[#allocation9 + $0xb8] sm:$0xff] }
 0x6bb   : > { %3562 = vst [vmem:[#allocation9 + $0x28] sm:$0xff] %v3530_v4  ;;  %v4445_v4 = vld [vmem:[#allocation9 + $0xa8] sm:$0xff] }
 0x6c3   : > { %v4244_v41 = vpop.f32.mrb[128].mxu1 }
 0x6c4   : > { %v3439_v9 = vadd.f32 %v4244_v41, %v7554_v6  ;;  %v3430_v61 = vpop.f32.mrb[129].mxu1 }
 0x6c5   : > { %v3431_v52 = vadd.f32 %v7554_v6, %v3430_v61  ;;  %v4245_v32 = vpop.f32.mrb[130].mxu1 }
 0x6c6   : > { %v3535_v8 = vadd.f32 %v4430_v54, %v3439_v9  ;;  %v3442_v25 = vadd.f32 %v4245_v32, %v7554_v6  ;;  %v3433_v58 = vpop.f32.mrb[131].mxu1 }
 0x6c7   : > { %v3533_v10 = vadd.f32 %v4431_v56, %v3431_v52  ;;  %v3434_v21 = vadd.f32 %v7554_v6, %v3433_v58 }
 0x6c8   : > { %3567 = vst [vmem:[#allocation9 + $0x50] sm:$0xff] %v3535_v8  ;;  %v3536_v1 = vadd.f32 %v4432_v29, %v3442_v25  ;;  %v4446_v8 = vld [vmem:[#allocation9 + $0xd0] sm:$0xff] }
 0x6c9   : > { %3565 = vst [vmem:[#allocation9 + $0x40] sm:$0xff] %v3533_v10  ;;  %v3534_v46 = vadd.f32 %v4433_v36, %v3434_v21  ;;  %v4447_v10 = vld [vmem:[#allocation9 + $0xc0] sm:$0xff] }
 0x6ca   : > { %3568 = vst [vmem:[#allocation9 + $0x58] sm:$0xff] %v3536_v1  ;;  %v4448_v1 = vld [vmem:[#allocation9 + $0xd8] sm:$0xff] }
 0x6cb   : > { %3566 = vst [vmem:[#allocation9 + $0x48] sm:$0xff] %v3534_v46  ;;  %v4449_v46 = vld [vmem:[#allocation9 + $0xc8] sm:$0xff] }
 0x6d3   : > { %v4248_v24 = vpop.f32.mrb[132].mxu1 }
 0x6d4   : > { %v3455_v59 = vadd.f32 %v4248_v24, %v7554_v6  ;;  %v3446_v20 = vpop.f32.mrb[133].mxu1 }
 0x6d5   : > { %v3447_v0 = vadd.f32 %v7554_v6, %v3446_v20  ;;  %v4249_v12 = vpop.f32.mrb[134].mxu1 }
 0x6d6   : > { %v3539_v50 = vadd.f32 %v4434_v39, %v3455_v59  ;;  %v3458_v48 = vadd.f32 %v4249_v12, %v7554_v6  ;;  %v3449_v5 = vpop.f32.mrb[135].mxu1 }
 0x6d7   : > { %v3537_v3 = vadd.f32 %v4435_v42, %v3447_v0  ;;  %v3450_v44 = vadd.f32 %v7554_v6, %v3449_v5 }
 0x6d8   : > { %3571 = vst [vmem:[#allocation9 + $0x70] sm:$0xff] %v3539_v50  ;;  %v3540_v23 = vadd.f32 %v4436_v47, %v3458_v48  ;;  %v4450_v50 = vld [vmem:[#allocation9 + $0xf0] sm:$0xff] }
 0x6d9   : > { %3569 = vst [vmem:[#allocation9 + $0x60] sm:$0xff] %v3537_v3  ;;  %v3538_v34 = vadd.f32 %v4437_v14, %v3450_v44  ;;  %v4451_v3 = vld [vmem:[#allocation9 + $0xe0] sm:$0xff] }
 0x6da   : > { %3572 = vst [vmem:[#allocation9 + $0x78] sm:$0xff] %v3540_v23  ;;  %v4452_v23 = vld [vmem:[#allocation9 + $0xf8] sm:$0xff] }
 0x6db   : > { %3570 = vst [vmem:[#allocation9 + $0x68] sm:$0xff] %v3538_v34  ;;  %v4453_v34 = vld [vmem:[#allocation9 + $0xe8] sm:$0xff] }
 0x6e3   : > { %v4252_v22 = vpop.f32.mrb[136].mxu1 }
 0x6e4   : > { %v3471_v43 = vadd.f32 %v4252_v22, %v7554_v6  ;;  %v3462_v33 = vpop.f32.mrb[137].mxu1 }
 0x6e5   : > { %v3463_v18 = vadd.f32 %v7554_v6, %v3462_v33  ;;  %v4253_v53 = vpop.f32.mrb[138].mxu1 }
 0x6e6   : > { %v3543_v60 = vadd.f32 %v4438_v40, %v3471_v43  ;;  %v3474_v35 = vadd.f32 %v4253_v53, %v7554_v6  ;;  %v3465_v57 = vpop.f32.mrb[139].mxu1 }
 0x6e7   : > { %v3541_v11 = vadd.f32 %v4439_v7, %v3463_v18  ;;  %v3466_v19 = vadd.f32 %v7554_v6, %v3465_v57 }
 0x6e8   : > { %3575 = vst [vmem:[#allocation9 + $0x90] sm:$0xff] %v3543_v60  ;;  %v3544_v31 = vadd.f32 %v4440_v63, %v3474_v35 }
 0x6e9   : > { %3573 = vst [vmem:[#allocation9 + $0x80] sm:$0xff] %v3541_v11  ;;  %v3542_v16 = vadd.f32 %v4441_v38, %v3466_v19 }
 0x6ea   : > { %3576 = vst [vmem:[#allocation9 + $0x98] sm:$0xff] %v3544_v31 }
 0x6eb   : > { %3574 = vst [vmem:[#allocation9 + $0x88] sm:$0xff] %v3542_v16 }
 0x6f3   : > { %v4256_v26 = vpop.f32.mrb[140].mxu1 }
 0x6f4   : > { %v3487_v30 = vadd.f32 %v4256_v26, %v7554_v6  ;;  %v3478_v28 = vpop.f32.mrb[141].mxu1 }
 0x6f5   : > { %v3479_v49 = vadd.f32 %v7554_v6, %v3478_v28  ;;  %v4257_v27 = vpop.f32.mrb[142].mxu1 }
 0x6f6   : > { %v3547_v37 = vadd.f32 %v4442_v62, %v3487_v30  ;;  %v3490_v17 = vadd.f32 %v4257_v27, %v7554_v6  ;;  %v3481_v45 = vpop.f32.mrb[143].mxu1 }
 0x6f7   : > { %v3545_v55 = vadd.f32 %v4443_v13, %v3479_v49  ;;  %v3482_v2 = vadd.f32 %v7554_v6, %v3481_v45 }
 0x6f8   : > { %3579 = vst [vmem:[#allocation9 + $0xb0] sm:$0xff] %v3547_v37  ;;  %v3548_v51 = vadd.f32 %v4444_v15, %v3490_v17 }
 0x6f9   : > { %3577 = vst [vmem:[#allocation9 + $0xa0] sm:$0xff] %v3545_v55  ;;  %v3546_v41 = vadd.f32 %v4445_v4, %v3482_v2 }
 0x6fa   : > { %3580 = vst [vmem:[#allocation9 + $0xb8] sm:$0xff] %v3548_v51 }
 0x6fb   : > { %3578 = vst [vmem:[#allocation9 + $0xa8] sm:$0xff] %v3546_v41 }
 0x703   : > { %v4260_v9 = vpop.f32.mrb[144].mxu1 }
 0x704   : > { %v3503_v61 = vadd.f32 %v4260_v9, %v7554_v6  ;;  %v3494_v52 = vpop.f32.mrb[145].mxu1 }
 0x705   : > { %v3495_v32 = vadd.f32 %v7554_v6, %v3494_v52  ;;  %v4261_v54 = vpop.f32.mrb[146].mxu1 }
 0x706   : > { %v3551_v25 = vadd.f32 %v4446_v8, %v3503_v61  ;;  %v3506_v58 = vadd.f32 %v4261_v54, %v7554_v6  ;;  %v3497_v56 = vpop.f32.mrb[147].mxu1 }
 0x707   : > { %v3549_v21 = vadd.f32 %v4447_v10, %v3495_v32  ;;  %v3498_v29 = vadd.f32 %v7554_v6, %v3497_v56 }
 0x708   : > { %3583 = vst [vmem:[#allocation9 + $0xd0] sm:$0xff] %v3551_v25  ;;  %v3552_v36 = vadd.f32 %v4448_v1, %v3506_v58 }
 0x709   : > { %3581 = vst [vmem:[#allocation9 + $0xc0] sm:$0xff] %v3549_v21  ;;  %v3550_v24 = vadd.f32 %v4449_v46, %v3498_v29 }
 0x70a   : > { %3584 = vst [vmem:[#allocation9 + $0xd8] sm:$0xff] %v3552_v36 }
 0x70b   : > { %3582 = vst [vmem:[#allocation9 + $0xc8] sm:$0xff] %v3550_v24 }
 0x713   : > { %v4264_v59 = vpop.f32.mrb[148].mxu1 }
 0x714   : > { %v3519_v20 = vadd.f32 %v4264_v59, %v7554_v6  ;;  %v3510_v0 = vpop.f32.mrb[149].mxu1 }
 0x715   : > { %v3511_v12 = vadd.f32 %v7554_v6, %v3510_v0  ;;  %v4265_v39 = vpop.f32.mrb[150].mxu1 }
 0x716   : > { %v3555_v48 = vadd.f32 %v4450_v50, %v3519_v20  ;;  %v3522_v5 = vadd.f32 %v4265_v39, %v7554_v6  ;;  %v3513_v42 = vpop.f32.mrb[151].mxu1 }
 0x717   : > { %v3553_v44 = vadd.f32 %v4451_v3, %v3511_v12  ;;  %v3514_v47 = vadd.f32 %v7554_v6, %v3513_v42 }
 0x718   : > { %3587 = vst [vmem:[#allocation9 + $0xf0] sm:$0xff] %v3555_v48  ;;  %v3556_v14 = vadd.f32 %v4452_v23, %v3522_v5 }
 0x719   : > { %3585 = vst [vmem:[#allocation9 + $0xe0] sm:$0xff] %v3553_v44  ;;  %v3554_v22 = vadd.f32 %v4453_v34, %v3514_v47 }
 0x71a   : > { %3588 = vst [vmem:[#allocation9 + $0xf8] sm:$0xff] %v3556_v14 }
 0x71b   : > { %3586 = vst [vmem:[#allocation9 + $0xe8] sm:$0xff] %v3554_v22 }
 0x71c   : > { %4525 = shalt.err (!%p4522_p2)
}
 0x71d   : > { %s4526_s25 = scalar_lea.hbm %s7632_s8, 4096 }
 0x71e   : > { %p4527_p11 = scmp.ne.s32.totalorder %s7632_s8, %s4526_s25  ;;  %p4532_p7 = scmp.lt.u32.totalorder %s4526_s25, %s7632_s8 }
 0x720   : > { %p4528_p13 = pnand %p4527_p11, %p4303_p10 }
 0x722   : > { %p4529_p3 = pneg %p4528_p13 }
 0x724   : > { %p4534_p6 = pnand %p4532_p7, %p4529_p3 }
 0x726   : > { %4537 = shalt.err (!%p4534_p6)
}
 0x727   : > { %s4592_s23 = smov 128   ;;  %s4593_s24 = smov 8  }
 0x728   : > { %4289 = dma.vmem_to_hbm [thread:$0]  (%p4303_p10), %s3596_s10, 4096, %s7632_s8, [#allocation6], %s4592_s23, %s4592_s23, %s4593_s24  }
 0x729   : > { %4563 = dma.done.wait (%p4303_p10), [#allocation6], 4096  }
 0x72a   : > { %4565 = vsyncadd (%p4303_p10), [#allocation6], 4294963200 }
 0x72b PF: > { %p20_p9 = scmp.ge.s32.totalorder %s4684_s15, 5   ;;  %s7974_s27 = smov %s4572_s28 }
 0x72c   : > { %s7975_s28 = smov %s4576_s29  ;;  %s7976_s29 = smov %s4710_s19 }
 0x72d   : > { %s7977_s30 = smov %s4684_s15  ;;  %22 = sbr.rel (!%p20_p9) target bundleno = 5 (0x5), region = 107 }
 0x734   :  { %3611 = vsyncpa [#allocation5], 1 }
 0x735   :  { %3613 = vsyncpa [#allocation5 + $0x1], 1 }
 0x736   :  { %3614 = vsyncpa [#allocation8], 1 }
 0x737   :  { %3616 = vsyncpa [#allocation8 + $0x1], 1 }
 0x738   :  { %3617 = vsyncpa [#allocation6], 1 }
 0x739   :  { %3619 = vsyncpa [#allocation6 + $0x1], 1 }

</bundles_post_ra>
